<compile_context>
chip_gen: v5e
topology: v5e:2x2
jax: 0.10.0
libtpu: 0.0.40
codegen_flags: <defaults>
</compile_context>

<pallas_src>
import jax
import jax.numpy as jnp
from jax.experimental import pallas as pl
from jax.experimental.pallas import tpu as pltpu

LANE = 128


def _rup(d):
    return ((d + LANE - 1) // LANE) * LANE


def _pad(a, shape):
    return jnp.pad(a, [(0, t - s) for s, t in zip(a.shape, shape)])


# ---------------------------------------------------------------------------
# Fused kernel: TSEncoder (input Linear + 2 dilated ConvBlocks) -> flatten ->
# projection MLP -> predictor MLP.  Everything whole-resident in VMEM per
# batch block; all matmuls bf16 on the MXU with f32 accumulation; bias adds,
# GELU, masks and residuals stay f32 (v5e has no bf16 VPU/EUP path).
# ---------------------------------------------------------------------------
def _simsiam_kernel(x_ref,
                    win_ref, bin_ref,
                    c1w0_ref, c1b0_ref, c2w0_ref, c2b0_ref,
                    c1w1_ref, c1b1_ref, c2w1_ref, c2b1_ref,
                    pw1_ref, pb1_ref,
                    w1_ref, b1_ref, w2_ref, b2_ref, w3_ref, b3_ref,
                    wp1_ref, bp1_ref, wp2_ref, bp2_ref,
                    feat_ref, v_ref, p_ref):
    f32, bf16 = jnp.float32, jnp.bfloat16
    T, bb, cin = x_ref.shape          # time-major block: rows are (t, b)
    bt = T * bb

    # Row index (row = t*bb + b).  Conv boundary masks hoisted here and reused by
    # both convs of each ConvBlock (JAX does not CSE the iota/compare).
    row = jax.lax.broadcasted_iota(jnp.int32, (bt, 1), 0)
    pm1, nm1 = row >= 1 * bb, row < (T - 1) * bb      # dilation-1 taps in range
    pm2, nm2 = row >= 2 * bb, row < (T - 2) * bb      # dilation-2 taps in range

    def gelu(v):                      # tanh-approx GELU (EUP slot)
        return jax.nn.gelu(v, approximate=True)

    def linear(h, w_ref_, b_ref_):
        return jnp.dot(h.astype(bf16), w_ref_[...],
                       preferred_element_type=f32) + b_ref_[...]

    def conv1d(h, w_ref_, b_ref_, d, pmask, nmask):
        # Conv1d(k=3, dilation=d, 'same' zero pad), per sample.  Time-major rows:
        # a +/-d time shift is a +/-(d*bb)-row sublane roll (XLU); out-of-range
        # taps are masked to zero.  Taps cast to bf16 *before* the concat so the
        # (bt, 3*Cin_p) temp is half-width, then ONE wide MXU matmul.
        prev = jnp.where(pmask, pltpu.roll(h, shift=d * bb, axis=0), 0.0).astype(bf16)
        nxt = jnp.where(nmask, pltpu.roll(h, shift=bt - d * bb, axis=0), 0.0).astype(bf16)
        cat = jnp.concatenate([prev, h.astype(bf16), nxt], axis=-1)
        return jnp.dot(cat, w_ref_[...], preferred_element_type=f32) + b_ref_[...]

    # ------------------------------ TSEncoder ------------------------------
    x = x_ref[...].reshape(bt, cin).astype(f32)
    # NaN handling (zero any timestep with a NaN channel), VPU only.
    x = jnp.where(jnp.any(jnp.isnan(x), axis=-1, keepdims=True), 0.0, x)

    h = linear(x, win_ref, bin_ref)                        # input_fc: (bt, H_p)

    # ConvBlock 0: dilation 1, identity residual.
    res = h
    u = conv1d(gelu(h), c1w0_ref, c1b0_ref, 1, pm1, nm1)
    u = conv1d(gelu(u), c2w0_ref, c2b0_ref, 1, pm1, nm1)
    h = u + res

    # ConvBlock 1 (final): dilation 2, 1x1-conv projector residual.
    res = linear(h, pw1_ref, pb1_ref)
    u = conv1d(gelu(h), c1w1_ref, c1b1_ref, 2, pm2, nm2)
    u = conv1d(gelu(u), c2w1_ref, c2b1_ref, 2, pm2, nm2)
    feat = u + res                                         # (bt, Co_p); repr_dropout = id (eval)

    cop = feat.shape[-1]
    feat3 = feat.reshape(T, bb, cop).astype(bf16)          # free leading-axis split
    feat_ref[...] = feat3                                  # bf16 lane-dense store (starts early)

    # -------------------- projection MLP + predictor MLP --------------------
    # linear1 over the flattened (bb, T*Co) features, done on the LIVE feat value
    # (no output-ref read-back, no strided per-timestep slices): one T-batched MXU
    # contraction against w1 (T, Co_p, F_p), then a cheap sum over the T batch axis.
    partial = jax.lax.dot_general(
        feat3, w1_ref[...],
        dimension_numbers=(((2,), (1,)), ((0,), (0,))),
        preferred_element_type=f32)                        # (T, bb, F_p)
    h1 = jnp.maximum(jnp.sum(partial, axis=0) + b1_ref[...], 0.0)   # linear1 + ReLU
    h2 = jnp.maximum(linear(h1, w2_ref, b2_ref), 0.0)      # linear2 + ReLU
    v = linear(h2, w3_ref, b3_ref)                         # linear3
    hpr = jnp.maximum(linear(v, wp1_ref, bp1_ref), 0.0)    # predictor[0] + ReLU
    p = linear(hpr, wp2_ref, bp2_ref)                      # predictor[2]

    v_ref[...] = v
    p_ref[...] = p


# ---------------------------------------------------------------------------
# Parameter construction: real-sized weights, zero-padded to 128-lane multiples
# on the feature dims (padding is exactly neutral: zero rows/cols/biases keep
# padded channels at 0 through GELU/ReLU/residuals).  Matmul weights in bf16.
# The input_fc weight keeps the REAL input-channel count (x is passed unpadded).
# ---------------------------------------------------------------------------
def init_params(key, input_size, hidden, output_size, win_size, proj_size):
    ks = jax.random.split(key, 22)
    w = lambda i, shape, scale=0.1: scale * jax.random.normal(ks[i], shape, jnp.float32)
    feat = output_size * win_size
    f2, p2 = feat // 2, proj_size // 2
    hp, cop = _rup(hidden), _rup(output_size)
    fp, f2p, pp, p2p = _rup(feat), _rup(f2), _rup(proj_size), _rup(p2)

    def wpad(a, shape):                      # plain weight -> padded bf16
        return _pad(a, shape).astype(jnp.bfloat16)

    def bpad(a, n):                          # bias -> padded f32 (1, n)
        return _pad(a, (1, n))

    def cpad(a, cinp, coutp):                # (3, Cin, Cout) -> (3*Cin_p, Cout_p) bf16
        return _pad(a, (3, cinp, coutp)).reshape(3 * cinp, coutp).astype(jnp.bfloat16)

    # linear1 weight stored as (T, Co_p, F_p): row t*Co + c of the real (feat, feat)
    # weight lands at [t, c, :feat].
    w1p = _pad(w(12, (feat, feat)).reshape(win_size, output_size, feat),
               (win_size, cop, fp)).astype(jnp.bfloat16)

    # TODO(synk): real PyTorch checkpoints store Linear as (out,in) and Conv1d as
    # (Cout,Cin,k); they must be transposed/permuted into these (in,out)/(3,Cin,Cout)
    # layouts before padding.
    return dict(
        # TSEncoder.input_fc (real input-channel K, padded output lanes)
        win=wpad(w(0, (input_size, hidden)), (input_size, hp)),
        bin=bpad(w(1, (1, hidden)), hp),
        # ConvBlock 0 (dilation 1)
        c1w0=cpad(w(2, (3, hidden, hidden)), hp, hp), c1b0=bpad(w(3, (1, hidden)), hp),
        c2w0=cpad(w(4, (3, hidden, hidden)), hp, hp), c2b0=bpad(w(5, (1, hidden)), hp),
        # ConvBlock 1 (dilation 2, final) + 1x1 projector residual
        c1w1=cpad(w(6, (3, hidden, output_size)), hp, cop), c1b1=bpad(w(7, (1, output_size)), cop),
        c2w1=cpad(w(8, (3, output_size, output_size)), cop, cop), c2b1=bpad(w(9, (1, output_size)), cop),
        pw1=wpad(w(10, (hidden, output_size)), (hp, cop)), pb1=bpad(w(11, (1, output_size)), cop),
        # projection MLP
        w1=w1p, b1=bpad(w(13, (1, feat)), fp),
        w2=wpad(w(14, (feat, f2)), (fp, f2p)), b2=bpad(w(15, (1, f2)), f2p),
        w3=wpad(w(16, (f2, proj_size)), (f2p, pp)), b3=bpad(w(17, (1, proj_size)), pp),
        # predictor MLP
        wp1=wpad(w(18, (proj_size, p2)), (pp, p2p)), bp1=bpad(w(19, (1, p2)), p2p),
        wp2=wpad(w(20, (p2, proj_size)), (p2p, pp)), bp2=bpad(w(21, (1, proj_size)), pp),
    )


def _choose_bb(b, t):
    """Samples per grid block: keep bb a multiple of 16 (else 8) so output blocks
    stay sublane-aligned, target 256-1024 rows (bb*t) per block, and prefer >= 2
    grid steps so ("parallel",) can shard steps across v7x's two TensorCores."""
    for step in (16, 8):
        cands = [d for d in range(step, b, step) if b % d == 0 and d * t <= 1024]
        if cands:
            good = [d for d in cands if d * t >= 256]
            return max(good) if good else max(cands)
    return b


def simsiam_forward(x, params, output_size, proj_size, single_buffer_weights=True):
    """x: (B, T, C) float32.  Returns (feat (B,T,Co) f32, v_i (B,P) f32, p_i (B,P) f32)."""
    b, t, c = x.shape
    hp = params["bin"].shape[1]
    cop = params["pb1"].shape[1]
    fp = params["b1"].shape[1]
    pp = params["b3"].shape[1]

    bb = _choose_bb(b, t)
    grid = (b // bb,)

    # Time-major slab (T, B, C): the per-sample conv time shift becomes a
    # +/-(d*bb)-row roll inside the kernel and the projection head's T-batched
    # contraction needs no in-kernel transpose.  x stays unpadded f32.
    x_tm = jnp.transpose(x, (1, 0, 2))

    weights = (params["win"], params["bin"],
               params["c1w0"], params["c1b0"], params["c2w0"], params["c2b0"],
               params["c1w1"], params["c1b1"], params["c2w1"], params["c2b1"],
               params["pw1"], params["pb1"],
               params["w1"], params["b1"], params["w2"], params["b2"],
               params["w3"], params["b3"],
               params["wp1"], params["bp1"], params["wp2"], params["bp2"])
    args = (x_tm,) + weights

    # VMEM budget: double-buffered x/out blocks + (single-buffered) weights +
    # live f32 activation slabs + conv concat temps + linear1 partial products.
    nbytes = lambda a: a.size * a.dtype.itemsize
    wbytes = sum(nbytes(a) for a in weights)
    bt, wide = bb * t, max(hp, cop)
    est = (wbytes
           + 2 * bt * c * 4
           + 2 * (bt * cop * 2 + 2 * bb * pp * 4)
           + bt * (10 * wide * 4 + 2 * 3 * wide * 2 + fp * 4)
           + bb * fp * 8 + bb * pp * 16)
    vmem_limit = int(min(56 * 2 ** 20, max(16 * 2 ** 20, 2 * est)))

    out_shape = (jax.ShapeDtypeStruct((t, b, cop), jnp.bfloat16),   # bf16 feat writeback
                 jax.ShapeDtypeStruct((b, pp), jnp.float32),
                 jax.ShapeDtypeStruct((b, pp), jnp.float32))
    out_specs = (pl.BlockSpec((t, bb, cop), lambda i: (0, i, 0)),
                 pl.BlockSpec((bb, pp), lambda i: (i, 0)),
                 pl.BlockSpec((bb, pp), lambda i: (i, 0)))

    def wspec(a, single_buffer):
        zero = lambda i, _n=a.ndim: (0,) * _n
        if single_buffer:
            # Weight block indices never change across grid steps -> single buffer
            # to halve their VMEM residency (matters under v7x's 64 MiB VMEM).
            return pl.BlockSpec(a.shape, zero, pipeline_mode=pl.Buffered(1))
        return pl.BlockSpec(a.shape, zero)

    def run(single_buffer):
        in_specs = [pl.BlockSpec((t, bb, c), lambda i: (0, i, 0))]
        in_specs += [wspec(a, single_buffer) for a in weights]
        return pl.pallas_call(
            _simsiam_kernel,
            out_shape=out_shape,
            grid=grid,
            in_specs=in_specs,
            out_specs=out_specs,
            compiler_params=pltpu.CompilerParams(
                dimension_semantics=("parallel",),
                vmem_limit_bytes=vmem_limit),
        )(*args)

    if single_buffer_weights:
        try:
            feat_p, v_p, p_p = run(True)
        except Exception:   # graceful fallback if this JAX rejects Buffered(1)
            feat_p, v_p, p_p = run(False)
    else:
        feat_p, v_p, p_p = run(False)

    # Slice the real (unpadded) channels back out; restore (B, T, Co) and f32
    # (wrapper-side layout plumbing / cast, outside the kernel's hot path).
    feat = jnp.transpose(feat_p, (1, 0, 2))[:, :, :output_size].astype(jnp.float32)
    return feat, v_p[:, :proj_size], p_p[:, :proj_size]


if __name__ == "__main__":
    # Small shapes consistent with the module:
    B = 2        # batch
    C_IN = 4     # input_size
    T = 8        # win_size
    H = 16       # encoder hidden_dims
    C_OUT = 8    # output_size (embedding size)
    PROJ = 16    # proj_size   (feat_size = C_OUT * T = 64)

    key = jax.random.PRNGKey(0)
    k_param, k_x = jax.random.split(key)
    params = init_params(k_param, C_IN, H, C_OUT, T, PROJ)
    x = jax.random.normal(k_x, (B, T, C_IN), jnp.float32)

    feat, v_i, p_i = simsiam_forward(x, params, C_OUT, PROJ)
    jax.block_until_ready((feat, v_i, p_i))

    assert feat.shape == (B, T, C_OUT)
    assert v_i.shape == (B, PROJ)
    assert p_i.shape == (B, PROJ)
    assert jnp.all(jnp.isfinite(feat)) and jnp.all(jnp.isfinite(v_i)) and jnp.all(jnp.isfinite(p_i))
    print("KERNEL_OK")
</pallas_src>

<mosaic_0001>
module attributes {stable_mosaic.version = 11 : i64} {
  func.func @_simsiam_kernel(%arg0: i32, %arg1: memref<8x2x4xf32, #tpu.memory_space<vmem>>, %arg2: memref<4x128xbf16, #tpu.memory_space<vmem>>, %arg3: memref<1x128xf32, #tpu.memory_space<vmem>>, %arg4: memref<384x128xbf16, #tpu.memory_space<vmem>>, %arg5: memref<1x128xf32, #tpu.memory_space<vmem>>, %arg6: memref<384x128xbf16, #tpu.memory_space<vmem>>, %arg7: memref<1x128xf32, #tpu.memory_space<vmem>>, %arg8: memref<384x128xbf16, #tpu.memory_space<vmem>>, %arg9: memref<1x128xf32, #tpu.memory_space<vmem>>, %arg10: memref<384x128xbf16, #tpu.memory_space<vmem>>, %arg11: memref<1x128xf32, #tpu.memory_space<vmem>>, %arg12: memref<128x128xbf16, #tpu.memory_space<vmem>>, %arg13: memref<1x128xf32, #tpu.memory_space<vmem>>, %arg14: memref<8x128x128xbf16, #tpu.memory_space<vmem>>, %arg15: memref<1x128xf32, #tpu.memory_space<vmem>>, %arg16: memref<128x128xbf16, #tpu.memory_space<vmem>>, %arg17: memref<1x128xf32, #tpu.memory_space<vmem>>, %arg18: memref<128x128xbf16, #tpu.memory_space<vmem>>, %arg19: memref<1x128xf32, #tpu.memory_space<vmem>>, %arg20: memref<128x128xbf16, #tpu.memory_space<vmem>>, %arg21: memref<1x128xf32, #tpu.memory_space<vmem>>, %arg22: memref<128x128xbf16, #tpu.memory_space<vmem>>, %arg23: memref<1x128xf32, #tpu.memory_space<vmem>>, %arg24: memref<8x2x128xbf16, #tpu.memory_space<vmem>>, %arg25: memref<2x128xf32, #tpu.memory_space<vmem>>, %arg26: memref<2x128xf32, #tpu.memory_space<vmem>>) attributes {dimension_semantics = [#tpu.dimension_semantics<parallel>], iteration_bounds = array<i64: 1>, scalar_prefetch = 0 : i64, scratch_operands = 0 : i64, tpu.core_type = #tpu.core_type<tc>, window_params = [{transform_indices = @transform_0, window_bounds = array<i64: 8, 2, 4>}, {pipeline_mode = #tpu.pipeline_mode<synchronous>, transform_indices = @transform_1, window_bounds = array<i64: 4, 128>}, {pipeline_mode = #tpu.pipeline_mode<synchronous>, transform_indices = @transform_2, window_bounds = array<i64: 1, 128>}, {pipeline_mode = #tpu.pipeline_mode<synchronous>, transform_indices = @transform_3, window_bounds = array<i64: 384, 128>}, {pipeline_mode = #tpu.pipeline_mode<synchronous>, transform_indices = @transform_4, window_bounds = array<i64: 1, 128>}, {pipeline_mode = #tpu.pipeline_mode<synchronous>, transform_indices = @transform_5, window_bounds = array<i64: 384, 128>}, {pipeline_mode = #tpu.pipeline_mode<synchronous>, transform_indices = @transform_6, window_bounds = array<i64: 1, 128>}, {pipeline_mode = #tpu.pipeline_mode<synchronous>, transform_indices = @transform_7, window_bounds = array<i64: 384, 128>}, {pipeline_mode = #tpu.pipeline_mode<synchronous>, transform_indices = @transform_8, window_bounds = array<i64: 1, 128>}, {pipeline_mode = #tpu.pipeline_mode<synchronous>, transform_indices = @transform_9, window_bounds = array<i64: 384, 128>}, {pipeline_mode = #tpu.pipeline_mode<synchronous>, transform_indices = @transform_10, window_bounds = array<i64: 1, 128>}, {pipeline_mode = #tpu.pipeline_mode<synchronous>, transform_indices = @transform_11, window_bounds = array<i64: 128, 128>}, {pipeline_mode = #tpu.pipeline_mode<synchronous>, transform_indices = @transform_12, window_bounds = array<i64: 1, 128>}, {pipeline_mode = #tpu.pipeline_mode<synchronous>, transform_indices = @transform_13, window_bounds = array<i64: 8, 128, 128>}, {pipeline_mode = #tpu.pipeline_mode<synchronous>, transform_indices = @transform_14, window_bounds = array<i64: 1, 128>}, {pipeline_mode = #tpu.pipeline_mode<synchronous>, transform_indices = @transform_15, window_bounds = array<i64: 128, 128>}, {pipeline_mode = #tpu.pipeline_mode<synchronous>, transform_indices = @transform_16, window_bounds = array<i64: 1, 128>}, {pipeline_mode = #tpu.pipeline_mode<synchronous>, transform_indices = @transform_17, window_bounds = array<i64: 128, 128>}, {pipeline_mode = #tpu.pipeline_mode<synchronous>, transform_indices = @transform_18, window_bounds = array<i64: 1, 128>}, {pipeline_mode = #tpu.pipeline_mode<synchronous>, transform_indices = @transform_19, window_bounds = array<i64: 128, 128>}, {pipeline_mode = #tpu.pipeline_mode<synchronous>, transform_indices = @transform_20, window_bounds = array<i64: 1, 128>}, {pipeline_mode = #tpu.pipeline_mode<synchronous>, transform_indices = @transform_21, window_bounds = array<i64: 128, 128>}, {pipeline_mode = #tpu.pipeline_mode<synchronous>, transform_indices = @transform_22, window_bounds = array<i64: 1, 128>}, {transform_indices = @transform_23, window_bounds = array<i64: 8, 2, 128>}, {transform_indices = @transform_24, window_bounds = array<i64: 2, 128>}, {transform_indices = @transform_25, window_bounds = array<i64: 2, 128>}]} {
    %0 = tpu.iota {dimensions = array<i32: 0>} : vector<16x1xi32>
    %c2_i32 = arith.constant 2 : i32
    %1 = vector.broadcast %c2_i32 : i32 to vector<16x1xi32>
    %2 = arith.cmpi sge, %0, %1 : vector<16x1xi32>
    %c14_i32 = arith.constant 14 : i32
    %3 = vector.broadcast %c14_i32 : i32 to vector<16x1xi32>
    %4 = arith.cmpi slt, %0, %3 : vector<16x1xi32>
    %c4_i32 = arith.constant 4 : i32
    %5 = vector.broadcast %c4_i32 : i32 to vector<16x1xi32>
    %6 = arith.cmpi sge, %0, %5 : vector<16x1xi32>
    %c12_i32 = arith.constant 12 : i32
    %7 = vector.broadcast %c12_i32 : i32 to vector<16x1xi32>
    %8 = arith.cmpi slt, %0, %7 : vector<16x1xi32>
    %c0 = arith.constant 0 : index
    %c0_0 = arith.constant 0 : index
    %c0_1 = arith.constant 0 : index
    %9 = vector.load %arg1[%c0, %c0_0, %c0_1] : memref<8x2x4xf32, #tpu.memory_space<vmem>>, vector<8x2x4xf32>
    %10 = vector.shape_cast %9 : vector<8x2x4xf32> to vector<16x4xf32>
    %11 = arith.cmpf one, %10, %10 : vector<16x4xf32>
    %cst = arith.constant 1.000000e+00 : f32
    %cst_2 = arith.constant 0.000000e+00 : f32
    %12 = vector.broadcast %cst : f32 to vector<16x4xf32>
    %13 = vector.broadcast %cst_2 : f32 to vector<16x4xf32>
    %14 = arith.select %11, %12, %13 : vector<16x4xi1>, vector<16x4xf32>
    %cst_3 = arith.constant dense<0xFF800000> : vector<16xf32>
    %15 = vector.multi_reduction <maximumf>, %14, %cst_3 [1] : vector<16x4xf32> to vector<16xf32>
    %cst_4 = arith.constant 0.000000e+00 : f32
    %16 = vector.broadcast %cst_4 : f32 to vector<16xf32>
    %17 = arith.cmpf ogt, %15, %16 : vector<16xf32>
    %18 = vector.shape_cast %17 : vector<16xi1> to vector<16x1xi1>
    %cst_5 = arith.constant 0.000000e+00 : f32
    %19 = vector.shape_cast %18 : vector<16x1xi1> to vector<16x1xi1>
    %20 = vector.broadcast %19 : vector<16x1xi1> to vector<16x4xi1>
    %21 = vector.broadcast %cst_5 : f32 to vector<16x4xf32>
    %22 = arith.select %20, %21, %10 : vector<16x4xi1>, vector<16x4xf32>
    %23 = arith.truncf %22 : vector<16x4xf32> to vector<16x4xbf16>
    %c0_6 = arith.constant 0 : index
    %c0_7 = arith.constant 0 : index
    %24 = vector.load %arg2[%c0_6, %c0_7] : memref<4x128xbf16, #tpu.memory_space<vmem>>, vector<4x128xbf16>
    %cst_8 = arith.constant dense<0.000000e+00> : vector<16x128xf32>
    %25 = tpu.matmul %23, %24, %cst_8 {dimension_numbers = #tpu.dot_dimension_numbers<[1], [0], [0], [1], [0, 0, 1, 1], [], []>} : vector<16x4xbf16>, vector<4x128xbf16>, vector<16x128xf32> -> vector<16x128xf32>
    %c0_9 = arith.constant 0 : index
    %c0_10 = arith.constant 0 : index
    %26 = vector.load %arg3[%c0_9, %c0_10] : memref<1x128xf32, #tpu.memory_space<vmem>>, vector<1x128xf32>
    %27 = vector.broadcast %26 : vector<1x128xf32> to vector<16x128xf32>
    %28 = arith.addf %25, %27 : vector<16x128xf32>
    %29 = arith.mulf %28, %28 : vector<16x128xf32>
    %30 = arith.mulf %28, %29 : vector<16x128xf32>
    %cst_11 = arith.constant 4.471500e-02 : f32
    %31 = vector.broadcast %cst_11 : f32 to vector<16x128xf32>
    %32 = arith.mulf %31, %30 : vector<16x128xf32>
    %33 = arith.addf %28, %32 : vector<16x128xf32>
    %cst_12 = arith.constant 0.797884583 : f32
    %34 = vector.broadcast %cst_12 : f32 to vector<16x128xf32>
    %35 = arith.mulf %34, %33 : vector<16x128xf32>
    %36 = math.tanh %35 : vector<16x128xf32>
    %cst_13 = arith.constant 1.000000e+00 : f32
    %37 = vector.broadcast %cst_13 : f32 to vector<16x128xf32>
    %38 = arith.addf %37, %36 : vector<16x128xf32>
    %cst_14 = arith.constant 5.000000e-01 : f32
    %39 = vector.broadcast %cst_14 : f32 to vector<16x128xf32>
    %40 = arith.mulf %39, %38 : vector<16x128xf32>
    %41 = arith.mulf %28, %40 : vector<16x128xf32>
    %c2_i32_15 = arith.constant 2 : i32
    %42 = tpu.dynamic_rotate %41 by %c2_i32_15 dim 0 : vector<16x128xf32>, i32 -> vector<16x128xf32>
    %cst_16 = arith.constant 0.000000e+00 : f32
    %43 = vector.shape_cast %2 : vector<16x1xi1> to vector<16x1xi1>
    %44 = vector.broadcast %43 : vector<16x1xi1> to vector<16x128xi1>
    %45 = vector.broadcast %cst_16 : f32 to vector<16x128xf32>
    %46 = arith.select %44, %42, %45 : vector<16x128xi1>, vector<16x128xf32>
    %47 = arith.truncf %46 : vector<16x128xf32> to vector<16x128xbf16>
    %c14_i32_17 = arith.constant 14 : i32
    %48 = tpu.dynamic_rotate %41 by %c14_i32_17 dim 0 : vector<16x128xf32>, i32 -> vector<16x128xf32>
    %cst_18 = arith.constant 0.000000e+00 : f32
    %49 = vector.shape_cast %4 : vector<16x1xi1> to vector<16x1xi1>
    %50 = vector.broadcast %49 : vector<16x1xi1> to vector<16x128xi1>
    %51 = vector.broadcast %cst_18 : f32 to vector<16x128xf32>
    %52 = arith.select %50, %48, %51 : vector<16x128xi1>, vector<16x128xf32>
    %53 = arith.truncf %52 : vector<16x128xf32> to vector<16x128xbf16>
    %54 = arith.truncf %41 : vector<16x128xf32> to vector<16x128xbf16>
    %55 = tpu.concatenate %47, %54, %53 in 1 : vector<16x128xbf16>, vector<16x128xbf16>, vector<16x128xbf16> -> vector<16x384xbf16>
    %c0_19 = arith.constant 0 : index
    %c0_20 = arith.constant 0 : index
    %56 = vector.load %arg4[%c0_19, %c0_20] : memref<384x128xbf16, #tpu.memory_space<vmem>>, vector<384x128xbf16>
    %cst_21 = arith.constant dense<0.000000e+00> : vector<16x128xf32>
    %57 = tpu.matmul %55, %56, %cst_21 {dimension_numbers = #tpu.dot_dimension_numbers<[1], [0], [0], [1], [0, 0, 1, 1], [], []>} : vector<16x384xbf16>, vector<384x128xbf16>, vector<16x128xf32> -> vector<16x128xf32>
    %c0_22 = arith.constant 0 : index
    %c0_23 = arith.constant 0 : index
    %58 = vector.load %arg5[%c0_22, %c0_23] : memref<1x128xf32, #tpu.memory_space<vmem>>, vector<1x128xf32>
    %59 = vector.broadcast %58 : vector<1x128xf32> to vector<16x128xf32>
    %60 = arith.addf %57, %59 : vector<16x128xf32>
    %61 = arith.mulf %60, %60 : vector<16x128xf32>
    %62 = arith.mulf %60, %61 : vector<16x128xf32>
    %cst_24 = arith.constant 4.471500e-02 : f32
    %63 = vector.broadcast %cst_24 : f32 to vector<16x128xf32>
    %64 = arith.mulf %63, %62 : vector<16x128xf32>
    %65 = arith.addf %60, %64 : vector<16x128xf32>
    %cst_25 = arith.constant 0.797884583 : f32
    %66 = vector.broadcast %cst_25 : f32 to vector<16x128xf32>
    %67 = arith.mulf %66, %65 : vector<16x128xf32>
    %68 = math.tanh %67 : vector<16x128xf32>
    %cst_26 = arith.constant 1.000000e+00 : f32
    %69 = vector.broadcast %cst_26 : f32 to vector<16x128xf32>
    %70 = arith.addf %69, %68 : vector<16x128xf32>
    %cst_27 = arith.constant 5.000000e-01 : f32
    %71 = vector.broadcast %cst_27 : f32 to vector<16x128xf32>
    %72 = arith.mulf %71, %70 : vector<16x128xf32>
    %73 = arith.mulf %60, %72 : vector<16x128xf32>
    %c2_i32_28 = arith.constant 2 : i32
    %74 = tpu.dynamic_rotate %73 by %c2_i32_28 dim 0 : vector<16x128xf32>, i32 -> vector<16x128xf32>
    %cst_29 = arith.constant 0.000000e+00 : f32
    %75 = vector.shape_cast %2 : vector<16x1xi1> to vector<16x1xi1>
    %76 = vector.broadcast %75 : vector<16x1xi1> to vector<16x128xi1>
    %77 = vector.broadcast %cst_29 : f32 to vector<16x128xf32>
    %78 = arith.select %76, %74, %77 : vector<16x128xi1>, vector<16x128xf32>
    %79 = arith.truncf %78 : vector<16x128xf32> to vector<16x128xbf16>
    %c14_i32_30 = arith.constant 14 : i32
    %80 = tpu.dynamic_rotate %73 by %c14_i32_30 dim 0 : vector<16x128xf32>, i32 -> vector<16x128xf32>
    %cst_31 = arith.constant 0.000000e+00 : f32
    %81 = vector.shape_cast %4 : vector<16x1xi1> to vector<16x1xi1>
    %82 = vector.broadcast %81 : vector<16x1xi1> to vector<16x128xi1>
    %83 = vector.broadcast %cst_31 : f32 to vector<16x128xf32>
    %84 = arith.select %82, %80, %83 : vector<16x128xi1>, vector<16x128xf32>
    %85 = arith.truncf %84 : vector<16x128xf32> to vector<16x128xbf16>
    %86 = arith.truncf %73 : vector<16x128xf32> to vector<16x128xbf16>
    %87 = tpu.concatenate %79, %86, %85 in 1 : vector<16x128xbf16>, vector<16x128xbf16>, vector<16x128xbf16> -> vector<16x384xbf16>
    %c0_32 = arith.constant 0 : index
    %c0_33 = arith.constant 0 : index
    %88 = vector.load %arg6[%c0_32, %c0_33] : memref<384x128xbf16, #tpu.memory_space<vmem>>, vector<384x128xbf16>
    %cst_34 = arith.constant dense<0.000000e+00> : vector<16x128xf32>
    %89 = tpu.matmul %87, %88, %cst_34 {dimension_numbers = #tpu.dot_dimension_numbers<[1], [0], [0], [1], [0, 0, 1, 1], [], []>} : vector<16x384xbf16>, vector<384x128xbf16>, vector<16x128xf32> -> vector<16x128xf32>
    %c0_35 = arith.constant 0 : index
    %c0_36 = arith.constant 0 : index
    %90 = vector.load %arg7[%c0_35, %c0_36] : memref<1x128xf32, #tpu.memory_space<vmem>>, vector<1x128xf32>
    %91 = vector.broadcast %90 : vector<1x128xf32> to vector<16x128xf32>
    %92 = arith.addf %89, %91 : vector<16x128xf32>
    %93 = arith.addf %92, %28 : vector<16x128xf32>
    %94 = arith.truncf %93 : vector<16x128xf32> to vector<16x128xbf16>
    %c0_37 = arith.constant 0 : index
    %c0_38 = arith.constant 0 : index
    %95 = vector.load %arg12[%c0_37, %c0_38] : memref<128x128xbf16, #tpu.memory_space<vmem>>, vector<128x128xbf16>
    %cst_39 = arith.constant dense<0.000000e+00> : vector<16x128xf32>
    %96 = tpu.matmul %94, %95, %cst_39 {dimension_numbers = #tpu.dot_dimension_numbers<[1], [0], [0], [1], [0, 0, 1, 1], [], []>} : vector<16x128xbf16>, vector<128x128xbf16>, vector<16x128xf32> -> vector<16x128xf32>
    %c0_40 = arith.constant 0 : index
    %c0_41 = arith.constant 0 : index
    %97 = vector.load %arg13[%c0_40, %c0_41] : memref<1x128xf32, #tpu.memory_space<vmem>>, vector<1x128xf32>
    %98 = vector.broadcast %97 : vector<1x128xf32> to vector<16x128xf32>
    %99 = arith.addf %96, %98 : vector<16x128xf32>
    %100 = arith.mulf %93, %93 : vector<16x128xf32>
    %101 = arith.mulf %93, %100 : vector<16x128xf32>
    %cst_42 = arith.constant 4.471500e-02 : f32
    %102 = vector.broadcast %cst_42 : f32 to vector<16x128xf32>
    %103 = arith.mulf %102, %101 : vector<16x128xf32>
    %104 = arith.addf %93, %103 : vector<16x128xf32>
    %cst_43 = arith.constant 0.797884583 : f32
    %105 = vector.broadcast %cst_43 : f32 to vector<16x128xf32>
    %106 = arith.mulf %105, %104 : vector<16x128xf32>
    %107 = math.tanh %106 : vector<16x128xf32>
    %cst_44 = arith.constant 1.000000e+00 : f32
    %108 = vector.broadcast %cst_44 : f32 to vector<16x128xf32>
    %109 = arith.addf %108, %107 : vector<16x128xf32>
    %cst_45 = arith.constant 5.000000e-01 : f32
    %110 = vector.broadcast %cst_45 : f32 to vector<16x128xf32>
    %111 = arith.mulf %110, %109 : vector<16x128xf32>
    %112 = arith.mulf %93, %111 : vector<16x128xf32>
    %c4_i32_46 = arith.constant 4 : i32
    %113 = tpu.dynamic_rotate %112 by %c4_i32_46 dim 0 : vector<16x128xf32>, i32 -> vector<16x128xf32>
    %cst_47 = arith.constant 0.000000e+00 : f32
    %114 = vector.shape_cast %6 : vector<16x1xi1> to vector<16x1xi1>
    %115 = vector.broadcast %114 : vector<16x1xi1> to vector<16x128xi1>
    %116 = vector.broadcast %cst_47 : f32 to vector<16x128xf32>
    %117 = arith.select %115, %113, %116 : vector<16x128xi1>, vector<16x128xf32>
    %118 = arith.truncf %117 : vector<16x128xf32> to vector<16x128xbf16>
    %c12_i32_48 = arith.constant 12 : i32
    %119 = tpu.dynamic_rotate %112 by %c12_i32_48 dim 0 : vector<16x128xf32>, i32 -> vector<16x128xf32>
    %cst_49 = arith.constant 0.000000e+00 : f32
    %120 = vector.shape_cast %8 : vector<16x1xi1> to vector<16x1xi1>
    %121 = vector.broadcast %120 : vector<16x1xi1> to vector<16x128xi1>
    %122 = vector.broadcast %cst_49 : f32 to vector<16x128xf32>
    %123 = arith.select %121, %119, %122 : vector<16x128xi1>, vector<16x128xf32>
    %124 = arith.truncf %123 : vector<16x128xf32> to vector<16x128xbf16>
    %125 = arith.truncf %112 : vector<16x128xf32> to vector<16x128xbf16>
    %126 = tpu.concatenate %118, %125, %124 in 1 : vector<16x128xbf16>, vector<16x128xbf16>, vector<16x128xbf16> -> vector<16x384xbf16>
    %c0_50 = arith.constant 0 : index
    %c0_51 = arith.constant 0 : index
    %127 = vector.load %arg8[%c0_50, %c0_51] : memref<384x128xbf16, #tpu.memory_space<vmem>>, vector<384x128xbf16>
    %cst_52 = arith.constant dense<0.000000e+00> : vector<16x128xf32>
    %128 = tpu.matmul %126, %127, %cst_52 {dimension_numbers = #tpu.dot_dimension_numbers<[1], [0], [0], [1], [0, 0, 1, 1], [], []>} : vector<16x384xbf16>, vector<384x128xbf16>, vector<16x128xf32> -> vector<16x128xf32>
    %c0_53 = arith.constant 0 : index
    %c0_54 = arith.constant 0 : index
    %129 = vector.load %arg9[%c0_53, %c0_54] : memref<1x128xf32, #tpu.memory_space<vmem>>, vector<1x128xf32>
    %130 = vector.broadcast %129 : vector<1x128xf32> to vector<16x128xf32>
    %131 = arith.addf %128, %130 : vector<16x128xf32>
    %132 = arith.mulf %131, %131 : vector<16x128xf32>
    %133 = arith.mulf %131, %132 : vector<16x128xf32>
    %cst_55 = arith.constant 4.471500e-02 : f32
    %134 = vector.broadcast %cst_55 : f32 to vector<16x128xf32>
    %135 = arith.mulf %134, %133 : vector<16x128xf32>
    %136 = arith.addf %131, %135 : vector<16x128xf32>
    %cst_56 = arith.constant 0.797884583 : f32
    %137 = vector.broadcast %cst_56 : f32 to vector<16x128xf32>
    %138 = arith.mulf %137, %136 : vector<16x128xf32>
    %139 = math.tanh %138 : vector<16x128xf32>
    %cst_57 = arith.constant 1.000000e+00 : f32
    %140 = vector.broadcast %cst_57 : f32 to vector<16x128xf32>
    %141 = arith.addf %140, %139 : vector<16x128xf32>
    %cst_58 = arith.constant 5.000000e-01 : f32
    %142 = vector.broadcast %cst_58 : f32 to vector<16x128xf32>
    %143 = arith.mulf %142, %141 : vector<16x128xf32>
    %144 = arith.mulf %131, %143 : vector<16x128xf32>
    %c4_i32_59 = arith.constant 4 : i32
    %145 = tpu.dynamic_rotate %144 by %c4_i32_59 dim 0 : vector<16x128xf32>, i32 -> vector<16x128xf32>
    %cst_60 = arith.constant 0.000000e+00 : f32
    %146 = vector.shape_cast %6 : vector<16x1xi1> to vector<16x1xi1>
    %147 = vector.broadcast %146 : vector<16x1xi1> to vector<16x128xi1>
    %148 = vector.broadcast %cst_60 : f32 to vector<16x128xf32>
    %149 = arith.select %147, %145, %148 : vector<16x128xi1>, vector<16x128xf32>
    %150 = arith.truncf %149 : vector<16x128xf32> to vector<16x128xbf16>
    %c12_i32_61 = arith.constant 12 : i32
    %151 = tpu.dynamic_rotate %144 by %c12_i32_61 dim 0 : vector<16x128xf32>, i32 -> vector<16x128xf32>
    %cst_62 = arith.constant 0.000000e+00 : f32
    %152 = vector.shape_cast %8 : vector<16x1xi1> to vector<16x1xi1>
    %153 = vector.broadcast %152 : vector<16x1xi1> to vector<16x128xi1>
    %154 = vector.broadcast %cst_62 : f32 to vector<16x128xf32>
    %155 = arith.select %153, %151, %154 : vector<16x128xi1>, vector<16x128xf32>
    %156 = arith.truncf %155 : vector<16x128xf32> to vector<16x128xbf16>
    %157 = arith.truncf %144 : vector<16x128xf32> to vector<16x128xbf16>
    %158 = tpu.concatenate %150, %157, %156 in 1 : vector<16x128xbf16>, vector<16x128xbf16>, vector<16x128xbf16> -> vector<16x384xbf16>
    %c0_63 = arith.constant 0 : index
    %c0_64 = arith.constant 0 : index
    %159 = vector.load %arg10[%c0_63, %c0_64] : memref<384x128xbf16, #tpu.memory_space<vmem>>, vector<384x128xbf16>
    %cst_65 = arith.constant dense<0.000000e+00> : vector<16x128xf32>
    %160 = tpu.matmul %158, %159, %cst_65 {dimension_numbers = #tpu.dot_dimension_numbers<[1], [0], [0], [1], [0, 0, 1, 1], [], []>} : vector<16x384xbf16>, vector<384x128xbf16>, vector<16x128xf32> -> vector<16x128xf32>
    %c0_66 = arith.constant 0 : index
    %c0_67 = arith.constant 0 : index
    %161 = vector.load %arg11[%c0_66, %c0_67] : memref<1x128xf32, #tpu.memory_space<vmem>>, vector<1x128xf32>
    %162 = vector.broadcast %161 : vector<1x128xf32> to vector<16x128xf32>
    %163 = arith.addf %160, %162 : vector<16x128xf32>
    %164 = arith.addf %163, %99 : vector<16x128xf32>
    %165 = vector.shape_cast %164 : vector<16x128xf32> to vector<8x2x128xf32>
    %166 = arith.truncf %165 : vector<8x2x128xf32> to vector<8x2x128xbf16>
    %c0_68 = arith.constant 0 : index
    %c0_69 = arith.constant 0 : index
    %c0_70 = arith.constant 0 : index
    %167 = vector.load %arg24[%c0_68, %c0_69, %c0_70] : memref<8x2x128xbf16, #tpu.memory_space<vmem>>, vector<8x2x128xbf16>
    tpu.vector_store %arg24[%c0_68, %c0_69, %c0_70], %166 {strides = array<i32>} : memref<8x2x128xbf16, #tpu.memory_space<vmem>>, vector<8x2x128xbf16>,
    %c0_71 = arith.constant 0 : index
    %c0_72 = arith.constant 0 : index
    %c0_73 = arith.constant 0 : index
    %168 = vector.load %arg14[%c0_71, %c0_72, %c0_73] : memref<8x128x128xbf16, #tpu.memory_space<vmem>>, vector<8x128x128xbf16>
    %cst_74 = arith.constant dense<0.000000e+00> : vector<8x2x128xf32>
    %169 = tpu.matmul %166, %168, %cst_74 {dimension_numbers = #tpu.dot_dimension_numbers<[2], [1], [1], [2], [0, 0, 0, 1, 1, 2], [0], [0]>} : vector<8x2x128xbf16>, vector<8x128x128xbf16>, vector<8x2x128xf32> -> vector<8x2x128xf32>
    %cst_75 = arith.constant dense<0.000000e+00> : vector<2x128xf32>
    %170 = vector.multi_reduction <add>, %169, %cst_75 [0] : vector<8x2x128xf32> to vector<2x128xf32>
    %c0_76 = arith.constant 0 : index
    %c0_77 = arith.constant 0 : index
    %171 = vector.load %arg15[%c0_76, %c0_77] : memref<1x128xf32, #tpu.memory_space<vmem>>, vector<1x128xf32>
    %172 = vector.broadcast %171 : vector<1x128xf32> to vector<2x128xf32>
    %173 = arith.addf %170, %172 : vector<2x128xf32>
    %cst_78 = arith.constant 0.000000e+00 : f32
    %174 = vector.broadcast %cst_78 : f32 to vector<2x128xf32>
    %175 = arith.maximumf %173, %174 : vector<2x128xf32>
    %176 = arith.truncf %175 : vector<2x128xf32> to vector<2x128xbf16>
    %c0_79 = arith.constant 0 : index
    %c0_80 = arith.constant 0 : index
    %177 = vector.load %arg16[%c0_79, %c0_80] : memref<128x128xbf16, #tpu.memory_space<vmem>>, vector<128x128xbf16>
    %cst_81 = arith.constant dense<0.000000e+00> : vector<2x128xf32>
    %178 = tpu.matmul %176, %177, %cst_81 {dimension_numbers = #tpu.dot_dimension_numbers<[1], [0], [0], [1], [0, 0, 1, 1], [], []>} : vector<2x128xbf16>, vector<128x128xbf16>, vector<2x128xf32> -> vector<2x128xf32>
    %c0_82 = arith.constant 0 : index
    %c0_83 = arith.constant 0 : index
    %179 = vector.load %arg17[%c0_82, %c0_83] : memref<1x128xf32, #tpu.memory_space<vmem>>, vector<1x128xf32>
    %180 = vector.broadcast %179 : vector<1x128xf32> to vector<2x128xf32>
    %181 = arith.addf %178, %180 : vector<2x128xf32>
    %cst_84 = arith.constant 0.000000e+00 : f32
    %182 = vector.broadcast %cst_84 : f32 to vector<2x128xf32>
    %183 = arith.maximumf %181, %182 : vector<2x128xf32>
    %184 = arith.truncf %183 : vector<2x128xf32> to vector<2x128xbf16>
    %c0_85 = arith.constant 0 : index
    %c0_86 = arith.constant 0 : index
    %185 = vector.load %arg18[%c0_85, %c0_86] : memref<128x128xbf16, #tpu.memory_space<vmem>>, vector<128x128xbf16>
    %cst_87 = arith.constant dense<0.000000e+00> : vector<2x128xf32>
    %186 = tpu.matmul %184, %185, %cst_87 {dimension_numbers = #tpu.dot_dimension_numbers<[1], [0], [0], [1], [0, 0, 1, 1], [], []>} : vector<2x128xbf16>, vector<128x128xbf16>, vector<2x128xf32> -> vector<2x128xf32>
    %c0_88 = arith.constant 0 : index
    %c0_89 = arith.constant 0 : index
    %187 = vector.load %arg19[%c0_88, %c0_89] : memref<1x128xf32, #tpu.memory_space<vmem>>, vector<1x128xf32>
    %188 = vector.broadcast %187 : vector<1x128xf32> to vector<2x128xf32>
    %189 = arith.addf %186, %188 : vector<2x128xf32>
    %190 = arith.truncf %189 : vector<2x128xf32> to vector<2x128xbf16>
    %c0_90 = arith.constant 0 : index
    %c0_91 = arith.constant 0 : index
    %191 = vector.load %arg20[%c0_90, %c0_91] : memref<128x128xbf16, #tpu.memory_space<vmem>>, vector<128x128xbf16>
    %cst_92 = arith.constant dense<0.000000e+00> : vector<2x128xf32>
    %192 = tpu.matmul %190, %191, %cst_92 {dimension_numbers = #tpu.dot_dimension_numbers<[1], [0], [0], [1], [0, 0, 1, 1], [], []>} : vector<2x128xbf16>, vector<128x128xbf16>, vector<2x128xf32> -> vector<2x128xf32>
    %c0_93 = arith.constant 0 : index
    %c0_94 = arith.constant 0 : index
    %193 = vector.load %arg21[%c0_93, %c0_94] : memref<1x128xf32, #tpu.memory_space<vmem>>, vector<1x128xf32>
    %194 = vector.broadcast %193 : vector<1x128xf32> to vector<2x128xf32>
    %195 = arith.addf %192, %194 : vector<2x128xf32>
    %cst_95 = arith.constant 0.000000e+00 : f32
    %196 = vector.broadcast %cst_95 : f32 to vector<2x128xf32>
    %197 = arith.maximumf %195, %196 : vector<2x128xf32>
    %198 = arith.truncf %197 : vector<2x128xf32> to vector<2x128xbf16>
    %c0_96 = arith.constant 0 : index
    %c0_97 = arith.constant 0 : index
    %199 = vector.load %arg22[%c0_96, %c0_97] : memref<128x128xbf16, #tpu.memory_space<vmem>>, vector<128x128xbf16>
    %cst_98 = arith.constant dense<0.000000e+00> : vector<2x128xf32>
    %200 = tpu.matmul %198, %199, %cst_98 {dimension_numbers = #tpu.dot_dimension_numbers<[1], [0], [0], [1], [0, 0, 1, 1], [], []>} : vector<2x128xbf16>, vector<128x128xbf16>, vector<2x128xf32> -> vector<2x128xf32>
    %c0_99 = arith.constant 0 : index
    %c0_100 = arith.constant 0 : index
    %201 = vector.load %arg23[%c0_99, %c0_100] : memref<1x128xf32, #tpu.memory_space<vmem>>, vector<1x128xf32>
    %202 = vector.broadcast %201 : vector<1x128xf32> to vector<2x128xf32>
    %203 = arith.addf %200, %202 : vector<2x128xf32>
    %c0_101 = arith.constant 0 : index
    %c0_102 = arith.constant 0 : index
    %204 = vector.load %arg25[%c0_101, %c0_102] : memref<2x128xf32, #tpu.memory_space<vmem>>, vector<2x128xf32>
    tpu.vector_store %arg25[%c0_101, %c0_102], %189 {strides = array<i32>} : memref<2x128xf32, #tpu.memory_space<vmem>>, vector<2x128xf32>,
    %c0_103 = arith.constant 0 : index
    %c0_104 = arith.constant 0 : index
    %205 = vector.load %arg26[%c0_103, %c0_104] : memref<2x128xf32, #tpu.memory_space<vmem>>, vector<2x128xf32>
    tpu.vector_store %arg26[%c0_103, %c0_104], %203 {strides = array<i32>} : memref<2x128xf32, #tpu.memory_space<vmem>>, vector<2x128xf32>,
    return
  }
  func.func @transform_0(%arg0: i32) -> (i32, i32, i32) {
    %c0_i32 = arith.constant 0 : i32
    %c0_i32_0 = arith.constant 0 : i32
    %c0_i32_1 = arith.constant 0 : i32
    return %c0_i32, %arg0, %c0_i32_0 : i32, i32, i32
  }
  func.func @transform_1(%arg0: i32) -> (i32, i32) {
    %c0_i32 = arith.constant 0 : i32
    %c0_i32_0 = arith.constant 0 : i32
    %c0_i32_1 = arith.constant 0 : i32
    return %c0_i32, %c0_i32_0 : i32, i32
  }
  func.func @transform_2(%arg0: i32) -> (i32, i32) {
    %c0_i32 = arith.constant 0 : i32
    %c0_i32_0 = arith.constant 0 : i32
    %c0_i32_1 = arith.constant 0 : i32
    return %c0_i32, %c0_i32_0 : i32, i32
  }
  func.func @transform_3(%arg0: i32) -> (i32, i32) {
    %c0_i32 = arith.constant 0 : i32
    %c0_i32_0 = arith.constant 0 : i32
    %c0_i32_1 = arith.constant 0 : i32
    return %c0_i32, %c0_i32_0 : i32, i32
  }
  func.func @transform_4(%arg0: i32) -> (i32, i32) {
    %c0_i32 = arith.constant 0 : i32
    %c0_i32_0 = arith.constant 0 : i32
    %c0_i32_1 = arith.constant 0 : i32
    return %c0_i32, %c0_i32_0 : i32, i32
  }
  func.func @transform_5(%arg0: i32) -> (i32, i32) {
    %c0_i32 = arith.constant 0 : i32
    %c0_i32_0 = arith.constant 0 : i32
    %c0_i32_1 = arith.constant 0 : i32
    return %c0_i32, %c0_i32_0 : i32, i32
  }
  func.func @transform_6(%arg0: i32) -> (i32, i32) {
    %c0_i32 = arith.constant 0 : i32
    %c0_i32_0 = arith.constant 0 : i32
    %c0_i32_1 = arith.constant 0 : i32
    return %c0_i32, %c0_i32_0 : i32, i32
  }
  func.func @transform_7(%arg0: i32) -> (i32, i32) {
    %c0_i32 = arith.constant 0 : i32
    %c0_i32_0 = arith.constant 0 : i32
    %c0_i32_1 = arith.constant 0 : i32
    return %c0_i32, %c0_i32_0 : i32, i32
  }
  func.func @transform_8(%arg0: i32) -> (i32, i32) {
    %c0_i32 = arith.constant 0 : i32
    %c0_i32_0 = arith.constant 0 : i32
    %c0_i32_1 = arith.constant 0 : i32
    return %c0_i32, %c0_i32_0 : i32, i32
  }
  func.func @transform_9(%arg0: i32) -> (i32, i32) {
    %c0_i32 = arith.constant 0 : i32
    %c0_i32_0 = arith.constant 0 : i32
    %c0_i32_1 = arith.constant 0 : i32
    return %c0_i32, %c0_i32_0 : i32, i32
  }
  func.func @transform_10(%arg0: i32) -> (i32, i32) {
    %c0_i32 = arith.constant 0 : i32
    %c0_i32_0 = arith.constant 0 : i32
    %c0_i32_1 = arith.constant 0 : i32
    return %c0_i32, %c0_i32_0 : i32, i32
  }
  func.func @transform_11(%arg0: i32) -> (i32, i32) {
    %c0_i32 = arith.constant 0 : i32
    %c0_i32_0 = arith.constant 0 : i32
    %c0_i32_1 = arith.constant 0 : i32
    return %c0_i32, %c0_i32_0 : i32, i32
  }
  func.func @transform_12(%arg0: i32) -> (i32, i32) {
    %c0_i32 = arith.constant 0 : i32
    %c0_i32_0 = arith.constant 0 : i32
    %c0_i32_1 = arith.constant 0 : i32
    return %c0_i32, %c0_i32_0 : i32, i32
  }
  func.func @transform_13(%arg0: i32) -> (i32, i32, i32) {
    %c0_i32 = arith.constant 0 : i32
    %c0_i32_0 = arith.constant 0 : i32
    %c0_i32_1 = arith.constant 0 : i32
    %c0_i32_2 = arith.constant 0 : i32
    return %c0_i32, %c0_i32_0, %c0_i32_1 : i32, i32, i32
  }
  func.func @transform_14(%arg0: i32) -> (i32, i32) {
    %c0_i32 = arith.constant 0 : i32
    %c0_i32_0 = arith.constant 0 : i32
    %c0_i32_1 = arith.constant 0 : i32
    return %c0_i32, %c0_i32_0 : i32, i32
  }
  func.func @transform_15(%arg0: i32) -> (i32, i32) {
    %c0_i32 = arith.constant 0 : i32
    %c0_i32_0 = arith.constant 0 : i32
    %c0_i32_1 = arith.constant 0 : i32
    return %c0_i32, %c0_i32_0 : i32, i32
  }
  func.func @transform_16(%arg0: i32) -> (i32, i32) {
    %c0_i32 = arith.constant 0 : i32
    %c0_i32_0 = arith.constant 0 : i32
    %c0_i32_1 = arith.constant 0 : i32
    return %c0_i32, %c0_i32_0 : i32, i32
  }
  func.func @transform_17(%arg0: i32) -> (i32, i32) {
    %c0_i32 = arith.constant 0 : i32
    %c0_i32_0 = arith.constant 0 : i32
    %c0_i32_1 = arith.constant 0 : i32
    return %c0_i32, %c0_i32_0 : i32, i32
  }
  func.func @transform_18(%arg0: i32) -> (i32, i32) {
    %c0_i32 = arith.constant 0 : i32
    %c0_i32_0 = arith.constant 0 : i32
    %c0_i32_1 = arith.constant 0 : i32
    return %c0_i32, %c0_i32_0 : i32, i32
  }
  func.func @transform_19(%arg0: i32) -> (i32, i32) {
    %c0_i32 = arith.constant 0 : i32
    %c0_i32_0 = arith.constant 0 : i32
    %c0_i32_1 = arith.constant 0 : i32
    return %c0_i32, %c0_i32_0 : i32, i32
  }
  func.func @transform_20(%arg0: i32) -> (i32, i32) {
    %c0_i32 = arith.constant 0 : i32
    %c0_i32_0 = arith.constant 0 : i32
    %c0_i32_1 = arith.constant 0 : i32
    return %c0_i32, %c0_i32_0 : i32, i32
  }
  func.func @transform_21(%arg0: i32) -> (i32, i32) {
    %c0_i32 = arith.constant 0 : i32
    %c0_i32_0 = arith.constant 0 : i32
    %c0_i32_1 = arith.constant 0 : i32
    return %c0_i32, %c0_i32_0 : i32, i32
  }
  func.func @transform_22(%arg0: i32) -> (i32, i32) {
    %c0_i32 = arith.constant 0 : i32
    %c0_i32_0 = arith.constant 0 : i32
    %c0_i32_1 = arith.constant 0 : i32
    return %c0_i32, %c0_i32_0 : i32, i32
  }
  func.func @transform_23(%arg0: i32) -> (i32, i32, i32) {
    %c0_i32 = arith.constant 0 : i32
    %c0_i32_0 = arith.constant 0 : i32
    %c0_i32_1 = arith.constant 0 : i32
    return %c0_i32, %arg0, %c0_i32_0 : i32, i32, i32
  }
  func.func @transform_24(%arg0: i32) -> (i32, i32) {
    %c0_i32 = arith.constant 0 : i32
    %c0_i32_0 = arith.constant 0 : i32
    return %arg0, %c0_i32 : i32, i32
  }
  func.func @transform_25(%arg0: i32) -> (i32, i32) {
    %c0_i32 = arith.constant 0 : i32
    %c0_i32_0 = arith.constant 0 : i32
    return %arg0, %c0_i32 : i32, i32
  }
}

module attributes {stable_mosaic.version = 11 : i64} {
  func.func @_simsiam_kernel(%arg0: i32, %arg1: memref<8x2x4xf32, #tpu.memory_space<vmem>>, %arg2: memref<4x128xbf16, #tpu.memory_space<vmem>>, %arg3: memref<1x128xf32, #tpu.memory_space<vmem>>, %arg4: memref<384x128xbf16, #tpu.memory_space<vmem>>, %arg5: memref<1x128xf32, #tpu.memory_space<vmem>>, %arg6: memref<384x128xbf16, #tpu.memory_space<vmem>>, %arg7: memref<1x128xf32, #tpu.memory_space<vmem>>, %arg8: memref<384x128xbf16, #tpu.memory_space<vmem>>, %arg9: memref<1x128xf32, #tpu.memory_space<vmem>>, %arg10: memref<384x128xbf16, #tpu.memory_space<vmem>>, %arg11: memref<1x128xf32, #tpu.memory_space<vmem>>, %arg12: memref<128x128xbf16, #tpu.memory_space<vmem>>, %arg13: memref<1x128xf32, #tpu.memory_space<vmem>>, %arg14: memref<8x128x128xbf16, #tpu.memory_space<vmem>>, %arg15: memref<1x128xf32, #tpu.memory_space<vmem>>, %arg16: memref<128x128xbf16, #tpu.memory_space<vmem>>, %arg17: memref<1x128xf32, #tpu.memory_space<vmem>>, %arg18: memref<128x128xbf16, #tpu.memory_space<vmem>>, %arg19: memref<1x128xf32, #tpu.memory_space<vmem>>, %arg20: memref<128x128xbf16, #tpu.memory_space<vmem>>, %arg21: memref<1x128xf32, #tpu.memory_space<vmem>>, %arg22: memref<128x128xbf16, #tpu.memory_space<vmem>>, %arg23: memref<1x128xf32, #tpu.memory_space<vmem>>, %arg24: memref<8x2x128xbf16, #tpu.memory_space<vmem>>, %arg25: memref<2x128xf32, #tpu.memory_space<vmem>>, %arg26: memref<2x128xf32, #tpu.memory_space<vmem>>) attributes {dimension_semantics = [#tpu.dimension_semantics<parallel>], iteration_bounds = array<i64: 1>, scalar_prefetch = 0 : i64, scratch_operands = 0 : i64, tpu.core_type = #tpu.core_type<tc>, window_params = [{transform_indices = @transform_0, window_bounds = array<i64: 8, 2, 4>}, {pipeline_mode = #tpu.pipeline_mode<synchronous>, transform_indices = @transform_1, window_bounds = array<i64: 4, 128>}, {pipeline_mode = #tpu.pipeline_mode<synchronous>, transform_indices = @transform_2, window_bounds = array<i64: 1, 128>}, {pipeline_mode = #tpu.pipeline_mode<synchronous>, transform_indices = @transform_3, window_bounds = array<i64: 384, 128>}, {pipeline_mode = #tpu.pipeline_mode<synchronous>, transform_indices = @transform_4, window_bounds = array<i64: 1, 128>}, {pipeline_mode = #tpu.pipeline_mode<synchronous>, transform_indices = @transform_5, window_bounds = array<i64: 384, 128>}, {pipeline_mode = #tpu.pipeline_mode<synchronous>, transform_indices = @transform_6, window_bounds = array<i64: 1, 128>}, {pipeline_mode = #tpu.pipeline_mode<synchronous>, transform_indices = @transform_7, window_bounds = array<i64: 384, 128>}, {pipeline_mode = #tpu.pipeline_mode<synchronous>, transform_indices = @transform_8, window_bounds = array<i64: 1, 128>}, {pipeline_mode = #tpu.pipeline_mode<synchronous>, transform_indices = @transform_9, window_bounds = array<i64: 384, 128>}, {pipeline_mode = #tpu.pipeline_mode<synchronous>, transform_indices = @transform_10, window_bounds = array<i64: 1, 128>}, {pipeline_mode = #tpu.pipeline_mode<synchronous>, transform_indices = @transform_11, window_bounds = array<i64: 128, 128>}, {pipeline_mode = #tpu.pipeline_mode<synchronous>, transform_indices = @transform_12, window_bounds = array<i64: 1, 128>}, {pipeline_mode = #tpu.pipeline_mode<synchronous>, transform_indices = @transform_13, window_bounds = array<i64: 8, 128, 128>}, {pipeline_mode = #tpu.pipeline_mode<synchronous>, transform_indices = @transform_14, window_bounds = array<i64: 1, 128>}, {pipeline_mode = #tpu.pipeline_mode<synchronous>, transform_indices = @transform_15, window_bounds = array<i64: 128, 128>}, {pipeline_mode = #tpu.pipeline_mode<synchronous>, transform_indices = @transform_16, window_bounds = array<i64: 1, 128>}, {pipeline_mode = #tpu.pipeline_mode<synchronous>, transform_indices = @transform_17, window_bounds = array<i64: 128, 128>}, {pipeline_mode = #tpu.pipeline_mode<synchronous>, transform_indices = @transform_18, window_bounds = array<i64: 1, 128>}, {pipeline_mode = #tpu.pipeline_mode<synchronous>, transform_indices = @transform_19, window_bounds = array<i64: 128, 128>}, {pipeline_mode = #tpu.pipeline_mode<synchronous>, transform_indices = @transform_20, window_bounds = array<i64: 1, 128>}, {pipeline_mode = #tpu.pipeline_mode<synchronous>, transform_indices = @transform_21, window_bounds = array<i64: 128, 128>}, {pipeline_mode = #tpu.pipeline_mode<synchronous>, transform_indices = @transform_22, window_bounds = array<i64: 1, 128>}, {transform_indices = @transform_23, window_bounds = array<i64: 8, 2, 128>}, {transform_indices = @transform_24, window_bounds = array<i64: 2, 128>}, {transform_indices = @transform_25, window_bounds = array<i64: 2, 128>}]} {
    %0 = tpu.iota {dimensions = array<i32: 0>} : vector<16x1xi32>
    %c2_i32 = arith.constant 2 : i32
    %1 = vector.broadcast %c2_i32 : i32 to vector<16x1xi32>
    %2 = arith.cmpi sge, %0, %1 : vector<16x1xi32>
    %c14_i32 = arith.constant 14 : i32
    %3 = vector.broadcast %c14_i32 : i32 to vector<16x1xi32>
    %4 = arith.cmpi slt, %0, %3 : vector<16x1xi32>
    %c4_i32 = arith.constant 4 : i32
    %5 = vector.broadcast %c4_i32 : i32 to vector<16x1xi32>
    %6 = arith.cmpi sge, %0, %5 : vector<16x1xi32>
    %c12_i32 = arith.constant 12 : i32
    %7 = vector.broadcast %c12_i32 : i32 to vector<16x1xi32>
    %8 = arith.cmpi slt, %0, %7 : vector<16x1xi32>
    %c0 = arith.constant 0 : index
    %c0_0 = arith.constant 0 : index
    %c0_1 = arith.constant 0 : index
    %9 = vector.load %arg1[%c0, %c0_0, %c0_1] : memref<8x2x4xf32, #tpu.memory_space<vmem>>, vector<8x2x4xf32>
    %10 = vector.shape_cast %9 : vector<8x2x4xf32> to vector<16x4xf32>
    %11 = arith.cmpf one, %10, %10 : vector<16x4xf32>
    %cst = arith.constant 1.000000e+00 : f32
    %cst_2 = arith.constant 0.000000e+00 : f32
    %12 = vector.broadcast %cst : f32 to vector<16x4xf32>
    %13 = vector.broadcast %cst_2 : f32 to vector<16x4xf32>
    %14 = arith.select %11, %12, %13 : vector<16x4xi1>, vector<16x4xf32>
    %cst_3 = arith.constant dense<0xFF800000> : vector<16xf32>
    %15 = vector.multi_reduction <maximumf>, %14, %cst_3 [1] : vector<16x4xf32> to vector<16xf32>
    %cst_4 = arith.constant 0.000000e+00 : f32
    %16 = vector.broadcast %cst_4 : f32 to vector<16xf32>
    %17 = arith.cmpf ogt, %15, %16 : vector<16xf32>
    %18 = vector.shape_cast %17 : vector<16xi1> to vector<16x1xi1>
    %cst_5 = arith.constant 0.000000e+00 : f32
    %19 = vector.shape_cast %18 : vector<16x1xi1> to vector<16x1xi1>
    %20 = vector.broadcast %19 : vector<16x1xi1> to vector<16x4xi1>
    %21 = vector.broadcast %cst_5 : f32 to vector<16x4xf32>
    %22 = arith.select %20, %21, %10 : vector<16x4xi1>, vector<16x4xf32>
    %23 = arith.truncf %22 : vector<16x4xf32> to vector<16x4xbf16>
    %c0_6 = arith.constant 0 : index
    %c0_7 = arith.constant 0 : index
    %24 = vector.load %arg2[%c0_6, %c0_7] : memref<4x128xbf16, #tpu.memory_space<vmem>>, vector<4x128xbf16>
    %cst_8 = arith.constant dense<0.000000e+00> : vector<16x128xf32>
    %25 = tpu.matmul %23, %24, %cst_8 {dimension_numbers = #tpu.dot_dimension_numbers<[1], [0], [0], [1], [0, 0, 1, 1], [], []>} : vector<16x4xbf16>, vector<4x128xbf16>, vector<16x128xf32> -> vector<16x128xf32>
    %c0_9 = arith.constant 0 : index
    %c0_10 = arith.constant 0 : index
    %26 = vector.load %arg3[%c0_9, %c0_10] : memref<1x128xf32, #tpu.memory_space<vmem>>, vector<1x128xf32>
    %27 = vector.broadcast %26 : vector<1x128xf32> to vector<16x128xf32>
    %28 = arith.addf %25, %27 : vector<16x128xf32>
    %29 = arith.mulf %28, %28 : vector<16x128xf32>
    %30 = arith.mulf %28, %29 : vector<16x128xf32>
    %cst_11 = arith.constant 4.471500e-02 : f32
    %31 = vector.broadcast %cst_11 : f32 to vector<16x128xf32>
    %32 = arith.mulf %31, %30 : vector<16x128xf32>
    %33 = arith.addf %28, %32 : vector<16x128xf32>
    %cst_12 = arith.constant 0.797884583 : f32
    %34 = vector.broadcast %cst_12 : f32 to vector<16x128xf32>
    %35 = arith.mulf %34, %33 : vector<16x128xf32>
    %36 = math.tanh %35 : vector<16x128xf32>
    %cst_13 = arith.constant 1.000000e+00 : f32
    %37 = vector.broadcast %cst_13 : f32 to vector<16x128xf32>
    %38 = arith.addf %37, %36 : vector<16x128xf32>
    %cst_14 = arith.constant 5.000000e-01 : f32
    %39 = vector.broadcast %cst_14 : f32 to vector<16x128xf32>
    %40 = arith.mulf %39, %38 : vector<16x128xf32>
    %41 = arith.mulf %28, %40 : vector<16x128xf32>
    %c2_i32_15 = arith.constant 2 : i32
    %42 = tpu.dynamic_rotate %41 by %c2_i32_15 dim 0 : vector<16x128xf32>, i32 -> vector<16x128xf32>
    %cst_16 = arith.constant 0.000000e+00 : f32
    %43 = vector.shape_cast %2 : vector<16x1xi1> to vector<16x1xi1>
    %44 = vector.broadcast %43 : vector<16x1xi1> to vector<16x128xi1>
    %45 = vector.broadcast %cst_16 : f32 to vector<16x128xf32>
    %46 = arith.select %44, %42, %45 : vector<16x128xi1>, vector<16x128xf32>
    %47 = arith.truncf %46 : vector<16x128xf32> to vector<16x128xbf16>
    %c14_i32_17 = arith.constant 14 : i32
    %48 = tpu.dynamic_rotate %41 by %c14_i32_17 dim 0 : vector<16x128xf32>, i32 -> vector<16x128xf32>
    %cst_18 = arith.constant 0.000000e+00 : f32
    %49 = vector.shape_cast %4 : vector<16x1xi1> to vector<16x1xi1>
    %50 = vector.broadcast %49 : vector<16x1xi1> to vector<16x128xi1>
    %51 = vector.broadcast %cst_18 : f32 to vector<16x128xf32>
    %52 = arith.select %50, %48, %51 : vector<16x128xi1>, vector<16x128xf32>
    %53 = arith.truncf %52 : vector<16x128xf32> to vector<16x128xbf16>
    %54 = arith.truncf %41 : vector<16x128xf32> to vector<16x128xbf16>
    %55 = tpu.concatenate %47, %54, %53 in 1 : vector<16x128xbf16>, vector<16x128xbf16>, vector<16x128xbf16> -> vector<16x384xbf16>
    %c0_19 = arith.constant 0 : index
    %c0_20 = arith.constant 0 : index
    %56 = vector.load %arg4[%c0_19, %c0_20] : memref<384x128xbf16, #tpu.memory_space<vmem>>, vector<384x128xbf16>
    %cst_21 = arith.constant dense<0.000000e+00> : vector<16x128xf32>
    %57 = tpu.matmul %55, %56, %cst_21 {dimension_numbers = #tpu.dot_dimension_numbers<[1], [0], [0], [1], [0, 0, 1, 1], [], []>} : vector<16x384xbf16>, vector<384x128xbf16>, vector<16x128xf32> -> vector<16x128xf32>
    %c0_22 = arith.constant 0 : index
    %c0_23 = arith.constant 0 : index
    %58 = vector.load %arg5[%c0_22, %c0_23] : memref<1x128xf32, #tpu.memory_space<vmem>>, vector<1x128xf32>
    %59 = vector.broadcast %58 : vector<1x128xf32> to vector<16x128xf32>
    %60 = arith.addf %57, %59 : vector<16x128xf32>
    %61 = arith.mulf %60, %60 : vector<16x128xf32>
    %62 = arith.mulf %60, %61 : vector<16x128xf32>
    %cst_24 = arith.constant 4.471500e-02 : f32
    %63 = vector.broadcast %cst_24 : f32 to vector<16x128xf32>
    %64 = arith.mulf %63, %62 : vector<16x128xf32>
    %65 = arith.addf %60, %64 : vector<16x128xf32>
    %cst_25 = arith.constant 0.797884583 : f32
    %66 = vector.broadcast %cst_25 : f32 to vector<16x128xf32>
    %67 = arith.mulf %66, %65 : vector<16x128xf32>
    %68 = math.tanh %67 : vector<16x128xf32>
    %cst_26 = arith.constant 1.000000e+00 : f32
    %69 = vector.broadcast %cst_26 : f32 to vector<16x128xf32>
    %70 = arith.addf %69, %68 : vector<16x128xf32>
    %cst_27 = arith.constant 5.000000e-01 : f32
    %71 = vector.broadcast %cst_27 : f32 to vector<16x128xf32>
    %72 = arith.mulf %71, %70 : vector<16x128xf32>
    %73 = arith.mulf %60, %72 : vector<16x128xf32>
    %c2_i32_28 = arith.constant 2 : i32
    %74 = tpu.dynamic_rotate %73 by %c2_i32_28 dim 0 : vector<16x128xf32>, i32 -> vector<16x128xf32>
    %cst_29 = arith.constant 0.000000e+00 : f32
    %75 = vector.shape_cast %2 : vector<16x1xi1> to vector<16x1xi1>
    %76 = vector.broadcast %75 : vector<16x1xi1> to vector<16x128xi1>
    %77 = vector.broadcast %cst_29 : f32 to vector<16x128xf32>
    %78 = arith.select %76, %74, %77 : vector<16x128xi1>, vector<16x128xf32>
    %79 = arith.truncf %78 : vector<16x128xf32> to vector<16x128xbf16>
    %c14_i32_30 = arith.constant 14 : i32
    %80 = tpu.dynamic_rotate %73 by %c14_i32_30 dim 0 : vector<16x128xf32>, i32 -> vector<16x128xf32>
    %cst_31 = arith.constant 0.000000e+00 : f32
    %81 = vector.shape_cast %4 : vector<16x1xi1> to vector<16x1xi1>
    %82 = vector.broadcast %81 : vector<16x1xi1> to vector<16x128xi1>
    %83 = vector.broadcast %cst_31 : f32 to vector<16x128xf32>
    %84 = arith.select %82, %80, %83 : vector<16x128xi1>, vector<16x128xf32>
    %85 = arith.truncf %84 : vector<16x128xf32> to vector<16x128xbf16>
    %86 = arith.truncf %73 : vector<16x128xf32> to vector<16x128xbf16>
    %87 = tpu.concatenate %79, %86, %85 in 1 : vector<16x128xbf16>, vector<16x128xbf16>, vector<16x128xbf16> -> vector<16x384xbf16>
    %c0_32 = arith.constant 0 : index
    %c0_33 = arith.constant 0 : index
    %88 = vector.load %arg6[%c0_32, %c0_33] : memref<384x128xbf16, #tpu.memory_space<vmem>>, vector<384x128xbf16>
    %cst_34 = arith.constant dense<0.000000e+00> : vector<16x128xf32>
    %89 = tpu.matmul %87, %88, %cst_34 {dimension_numbers = #tpu.dot_dimension_numbers<[1], [0], [0], [1], [0, 0, 1, 1], [], []>} : vector<16x384xbf16>, vector<384x128xbf16>, vector<16x128xf32> -> vector<16x128xf32>
    %c0_35 = arith.constant 0 : index
    %c0_36 = arith.constant 0 : index
    %90 = vector.load %arg7[%c0_35, %c0_36] : memref<1x128xf32, #tpu.memory_space<vmem>>, vector<1x128xf32>
    %91 = vector.broadcast %90 : vector<1x128xf32> to vector<16x128xf32>
    %92 = arith.addf %89, %91 : vector<16x128xf32>
    %93 = arith.addf %92, %28 : vector<16x128xf32>
    %94 = arith.truncf %93 : vector<16x128xf32> to vector<16x128xbf16>
    %c0_37 = arith.constant 0 : index
    %c0_38 = arith.constant 0 : index
    %95 = vector.load %arg12[%c0_37, %c0_38] : memref<128x128xbf16, #tpu.memory_space<vmem>>, vector<128x128xbf16>
    %cst_39 = arith.constant dense<0.000000e+00> : vector<16x128xf32>
    %96 = tpu.matmul %94, %95, %cst_39 {dimension_numbers = #tpu.dot_dimension_numbers<[1], [0], [0], [1], [0, 0, 1, 1], [], []>} : vector<16x128xbf16>, vector<128x128xbf16>, vector<16x128xf32> -> vector<16x128xf32>
    %c0_40 = arith.constant 0 : index
    %c0_41 = arith.constant 0 : index
    %97 = vector.load %arg13[%c0_40, %c0_41] : memref<1x128xf32, #tpu.memory_space<vmem>>, vector<1x128xf32>
    %98 = vector.broadcast %97 : vector<1x128xf32> to vector<16x128xf32>
    %99 = arith.addf %96, %98 : vector<16x128xf32>
    %100 = arith.mulf %93, %93 : vector<16x128xf32>
    %101 = arith.mulf %93, %100 : vector<16x128xf32>
    %cst_42 = arith.constant 4.471500e-02 : f32
    %102 = vector.broadcast %cst_42 : f32 to vector<16x128xf32>
    %103 = arith.mulf %102, %101 : vector<16x128xf32>
    %104 = arith.addf %93, %103 : vector<16x128xf32>
    %cst_43 = arith.constant 0.797884583 : f32
    %105 = vector.broadcast %cst_43 : f32 to vector<16x128xf32>
    %106 = arith.mulf %105, %104 : vector<16x128xf32>
    %107 = math.tanh %106 : vector<16x128xf32>
    %cst_44 = arith.constant 1.000000e+00 : f32
    %108 = vector.broadcast %cst_44 : f32 to vector<16x128xf32>
    %109 = arith.addf %108, %107 : vector<16x128xf32>
    %cst_45 = arith.constant 5.000000e-01 : f32
    %110 = vector.broadcast %cst_45 : f32 to vector<16x128xf32>
    %111 = arith.mulf %110, %109 : vector<16x128xf32>
    %112 = arith.mulf %93, %111 : vector<16x128xf32>
    %c4_i32_46 = arith.constant 4 : i32
    %113 = tpu.dynamic_rotate %112 by %c4_i32_46 dim 0 : vector<16x128xf32>, i32 -> vector<16x128xf32>
    %cst_47 = arith.constant 0.000000e+00 : f32
    %114 = vector.shape_cast %6 : vector<16x1xi1> to vector<16x1xi1>
    %115 = vector.broadcast %114 : vector<16x1xi1> to vector<16x128xi1>
    %116 = vector.broadcast %cst_47 : f32 to vector<16x128xf32>
    %117 = arith.select %115, %113, %116 : vector<16x128xi1>, vector<16x128xf32>
    %118 = arith.truncf %117 : vector<16x128xf32> to vector<16x128xbf16>
    %c12_i32_48 = arith.constant 12 : i32
    %119 = tpu.dynamic_rotate %112 by %c12_i32_48 dim 0 : vector<16x128xf32>, i32 -> vector<16x128xf32>
    %cst_49 = arith.constant 0.000000e+00 : f32
    %120 = vector.shape_cast %8 : vector<16x1xi1> to vector<16x1xi1>
    %121 = vector.broadcast %120 : vector<16x1xi1> to vector<16x128xi1>
    %122 = vector.broadcast %cst_49 : f32 to vector<16x128xf32>
    %123 = arith.select %121, %119, %122 : vector<16x128xi1>, vector<16x128xf32>
    %124 = arith.truncf %123 : vector<16x128xf32> to vector<16x128xbf16>
    %125 = arith.truncf %112 : vector<16x128xf32> to vector<16x128xbf16>
    %126 = tpu.concatenate %118, %125, %124 in 1 : vector<16x128xbf16>, vector<16x128xbf16>, vector<16x128xbf16> -> vector<16x384xbf16>
    %c0_50 = arith.constant 0 : index
    %c0_51 = arith.constant 0 : index
    %127 = vector.load %arg8[%c0_50, %c0_51] : memref<384x128xbf16, #tpu.memory_space<vmem>>, vector<384x128xbf16>
    %cst_52 = arith.constant dense<0.000000e+00> : vector<16x128xf32>
    %128 = tpu.matmul %126, %127, %cst_52 {dimension_numbers = #tpu.dot_dimension_numbers<[1], [0], [0], [1], [0, 0, 1, 1], [], []>} : vector<16x384xbf16>, vector<384x128xbf16>, vector<16x128xf32> -> vector<16x128xf32>
    %c0_53 = arith.constant 0 : index
    %c0_54 = arith.constant 0 : index
    %129 = vector.load %arg9[%c0_53, %c0_54] : memref<1x128xf32, #tpu.memory_space<vmem>>, vector<1x128xf32>
    %130 = vector.broadcast %129 : vector<1x128xf32> to vector<16x128xf32>
    %131 = arith.addf %128, %130 : vector<16x128xf32>
    %132 = arith.mulf %131, %131 : vector<16x128xf32>
    %133 = arith.mulf %131, %132 : vector<16x128xf32>
    %cst_55 = arith.constant 4.471500e-02 : f32
    %134 = vector.broadcast %cst_55 : f32 to vector<16x128xf32>
    %135 = arith.mulf %134, %133 : vector<16x128xf32>
    %136 = arith.addf %131, %135 : vector<16x128xf32>
    %cst_56 = arith.constant 0.797884583 : f32
    %137 = vector.broadcast %cst_56 : f32 to vector<16x128xf32>
    %138 = arith.mulf %137, %136 : vector<16x128xf32>
    %139 = math.tanh %138 : vector<16x128xf32>
    %cst_57 = arith.constant 1.000000e+00 : f32
    %140 = vector.broadcast %cst_57 : f32 to vector<16x128xf32>
    %141 = arith.addf %140, %139 : vector<16x128xf32>
    %cst_58 = arith.constant 5.000000e-01 : f32
    %142 = vector.broadcast %cst_58 : f32 to vector<16x128xf32>
    %143 = arith.mulf %142, %141 : vector<16x128xf32>
    %144 = arith.mulf %131, %143 : vector<16x128xf32>
    %c4_i32_59 = arith.constant 4 : i32
    %145 = tpu.dynamic_rotate %144 by %c4_i32_59 dim 0 : vector<16x128xf32>, i32 -> vector<16x128xf32>
    %cst_60 = arith.constant 0.000000e+00 : f32
    %146 = vector.shape_cast %6 : vector<16x1xi1> to vector<16x1xi1>
    %147 = vector.broadcast %146 : vector<16x1xi1> to vector<16x128xi1>
    %148 = vector.broadcast %cst_60 : f32 to vector<16x128xf32>
    %149 = arith.select %147, %145, %148 : vector<16x128xi1>, vector<16x128xf32>
    %150 = arith.truncf %149 : vector<16x128xf32> to vector<16x128xbf16>
    %c12_i32_61 = arith.constant 12 : i32
    %151 = tpu.dynamic_rotate %144 by %c12_i32_61 dim 0 : vector<16x128xf32>, i32 -> vector<16x128xf32>
    %cst_62 = arith.constant 0.000000e+00 : f32
    %152 = vector.shape_cast %8 : vector<16x1xi1> to vector<16x1xi1>
    %153 = vector.broadcast %152 : vector<16x1xi1> to vector<16x128xi1>
    %154 = vector.broadcast %cst_62 : f32 to vector<16x128xf32>
    %155 = arith.select %153, %151, %154 : vector<16x128xi1>, vector<16x128xf32>
    %156 = arith.truncf %155 : vector<16x128xf32> to vector<16x128xbf16>
    %157 = arith.truncf %144 : vector<16x128xf32> to vector<16x128xbf16>
    %158 = tpu.concatenate %150, %157, %156 in 1 : vector<16x128xbf16>, vector<16x128xbf16>, vector<16x128xbf16> -> vector<16x384xbf16>
    %c0_63 = arith.constant 0 : index
    %c0_64 = arith.constant 0 : index
    %159 = vector.load %arg10[%c0_63, %c0_64] : memref<384x128xbf16, #tpu.memory_space<vmem>>, vector<384x128xbf16>
    %cst_65 = arith.constant dense<0.000000e+00> : vector<16x128xf32>
    %160 = tpu.matmul %158, %159, %cst_65 {dimension_numbers = #tpu.dot_dimension_numbers<[1], [0], [0], [1], [0, 0, 1, 1], [], []>} : vector<16x384xbf16>, vector<384x128xbf16>, vector<16x128xf32> -> vector<16x128xf32>
    %c0_66 = arith.constant 0 : index
    %c0_67 = arith.constant 0 : index
    %161 = vector.load %arg11[%c0_66, %c0_67] : memref<1x128xf32, #tpu.memory_space<vmem>>, vector<1x128xf32>
    %162 = vector.broadcast %161 : vector<1x128xf32> to vector<16x128xf32>
    %163 = arith.addf %160, %162 : vector<16x128xf32>
    %164 = arith.addf %163, %99 : vector<16x128xf32>
    %165 = vector.shape_cast %164 : vector<16x128xf32> to vector<8x2x128xf32>
    %166 = arith.truncf %165 : vector<8x2x128xf32> to vector<8x2x128xbf16>
    %c0_68 = arith.constant 0 : index
    %c0_69 = arith.constant 0 : index
    %c0_70 = arith.constant 0 : index
    %167 = vector.load %arg24[%c0_68, %c0_69, %c0_70] : memref<8x2x128xbf16, #tpu.memory_space<vmem>>, vector<8x2x128xbf16>
    tpu.vector_store %arg24[%c0_68, %c0_69, %c0_70], %166 {strides = array<i32>} : memref<8x2x128xbf16, #tpu.memory_space<vmem>>, vector<8x2x128xbf16>,
    %c0_71 = arith.constant 0 : index
    %c0_72 = arith.constant 0 : index
    %c0_73 = arith.constant 0 : index
    %168 = vector.load %arg14[%c0_71, %c0_72, %c0_73] : memref<8x128x128xbf16, #tpu.memory_space<vmem>>, vector<8x128x128xbf16>
    %cst_74 = arith.constant dense<0.000000e+00> : vector<8x2x128xf32>
    %169 = tpu.matmul %166, %168, %cst_74 {dimension_numbers = #tpu.dot_dimension_numbers<[2], [1], [1], [2], [0, 0, 0, 1, 1, 2], [0], [0]>} : vector<8x2x128xbf16>, vector<8x128x128xbf16>, vector<8x2x128xf32> -> vector<8x2x128xf32>
    %cst_75 = arith.constant dense<0.000000e+00> : vector<2x128xf32>
    %170 = vector.multi_reduction <add>, %169, %cst_75 [0] : vector<8x2x128xf32> to vector<2x128xf32>
    %c0_76 = arith.constant 0 : index
    %c0_77 = arith.constant 0 : index
    %171 = vector.load %arg15[%c0_76, %c0_77] : memref<1x128xf32, #tpu.memory_space<vmem>>, vector<1x128xf32>
    %172 = vector.broadcast %171 : vector<1x128xf32> to vector<2x128xf32>
    %173 = arith.addf %170, %172 : vector<2x128xf32>
    %cst_78 = arith.constant 0.000000e+00 : f32
    %174 = vector.broadcast %cst_78 : f32 to vector<2x128xf32>
    %175 = arith.maximumf %173, %174 : vector<2x128xf32>
    %176 = arith.truncf %175 : vector<2x128xf32> to vector<2x128xbf16>
    %c0_79 = arith.constant 0 : index
    %c0_80 = arith.constant 0 : index
    %177 = vector.load %arg16[%c0_79, %c0_80] : memref<128x128xbf16, #tpu.memory_space<vmem>>, vector<128x128xbf16>
    %cst_81 = arith.constant dense<0.000000e+00> : vector<2x128xf32>
    %178 = tpu.matmul %176, %177, %cst_81 {dimension_numbers = #tpu.dot_dimension_numbers<[1], [0], [0], [1], [0, 0, 1, 1], [], []>} : vector<2x128xbf16>, vector<128x128xbf16>, vector<2x128xf32> -> vector<2x128xf32>
    %c0_82 = arith.constant 0 : index
    %c0_83 = arith.constant 0 : index
    %179 = vector.load %arg17[%c0_82, %c0_83] : memref<1x128xf32, #tpu.memory_space<vmem>>, vector<1x128xf32>
    %180 = vector.broadcast %179 : vector<1x128xf32> to vector<2x128xf32>
    %181 = arith.addf %178, %180 : vector<2x128xf32>
    %cst_84 = arith.constant 0.000000e+00 : f32
    %182 = vector.broadcast %cst_84 : f32 to vector<2x128xf32>
    %183 = arith.maximumf %181, %182 : vector<2x128xf32>
    %184 = arith.truncf %183 : vector<2x128xf32> to vector<2x128xbf16>
    %c0_85 = arith.constant 0 : index
    %c0_86 = arith.constant 0 : index
    %185 = vector.load %arg18[%c0_85, %c0_86] : memref<128x128xbf16, #tpu.memory_space<vmem>>, vector<128x128xbf16>
    %cst_87 = arith.constant dense<0.000000e+00> : vector<2x128xf32>
    %186 = tpu.matmul %184, %185, %cst_87 {dimension_numbers = #tpu.dot_dimension_numbers<[1], [0], [0], [1], [0, 0, 1, 1], [], []>} : vector<2x128xbf16>, vector<128x128xbf16>, vector<2x128xf32> -> vector<2x128xf32>
    %c0_88 = arith.constant 0 : index
    %c0_89 = arith.constant 0 : index
    %187 = vector.load %arg19[%c0_88, %c0_89] : memref<1x128xf32, #tpu.memory_space<vmem>>, vector<1x128xf32>
    %188 = vector.broadcast %187 : vector<1x128xf32> to vector<2x128xf32>
    %189 = arith.addf %186, %188 : vector<2x128xf32>
    %190 = arith.truncf %189 : vector<2x128xf32> to vector<2x128xbf16>
    %c0_90 = arith.constant 0 : index
    %c0_91 = arith.constant 0 : index
    %191 = vector.load %arg20[%c0_90, %c0_91] : memref<128x128xbf16, #tpu.memory_space<vmem>>, vector<128x128xbf16>
    %cst_92 = arith.constant dense<0.000000e+00> : vector<2x128xf32>
    %192 = tpu.matmul %190, %191, %cst_92 {dimension_numbers = #tpu.dot_dimension_numbers<[1], [0], [0], [1], [0, 0, 1, 1], [], []>} : vector<2x128xbf16>, vector<128x128xbf16>, vector<2x128xf32> -> vector<2x128xf32>
    %c0_93 = arith.constant 0 : index
    %c0_94 = arith.constant 0 : index
    %193 = vector.load %arg21[%c0_93, %c0_94] : memref<1x128xf32, #tpu.memory_space<vmem>>, vector<1x128xf32>
    %194 = vector.broadcast %193 : vector<1x128xf32> to vector<2x128xf32>
    %195 = arith.addf %192, %194 : vector<2x128xf32>
    %cst_95 = arith.constant 0.000000e+00 : f32
    %196 = vector.broadcast %cst_95 : f32 to vector<2x128xf32>
    %197 = arith.maximumf %195, %196 : vector<2x128xf32>
    %198 = arith.truncf %197 : vector<2x128xf32> to vector<2x128xbf16>
    %c0_96 = arith.constant 0 : index
    %c0_97 = arith.constant 0 : index
    %199 = vector.load %arg22[%c0_96, %c0_97] : memref<128x128xbf16, #tpu.memory_space<vmem>>, vector<128x128xbf16>
    %cst_98 = arith.constant dense<0.000000e+00> : vector<2x128xf32>
    %200 = tpu.matmul %198, %199, %cst_98 {dimension_numbers = #tpu.dot_dimension_numbers<[1], [0], [0], [1], [0, 0, 1, 1], [], []>} : vector<2x128xbf16>, vector<128x128xbf16>, vector<2x128xf32> -> vector<2x128xf32>
    %c0_99 = arith.constant 0 : index
    %c0_100 = arith.constant 0 : index
    %201 = vector.load %arg23[%c0_99, %c0_100] : memref<1x128xf32, #tpu.memory_space<vmem>>, vector<1x128xf32>
    %202 = vector.broadcast %201 : vector<1x128xf32> to vector<2x128xf32>
    %203 = arith.addf %200, %202 : vector<2x128xf32>
    %c0_101 = arith.constant 0 : index
    %c0_102 = arith.constant 0 : index
    %204 = vector.load %arg25[%c0_101, %c0_102] : memref<2x128xf32, #tpu.memory_space<vmem>>, vector<2x128xf32>
    tpu.vector_store %arg25[%c0_101, %c0_102], %189 {strides = array<i32>} : memref<2x128xf32, #tpu.memory_space<vmem>>, vector<2x128xf32>,
    %c0_103 = arith.constant 0 : index
    %c0_104 = arith.constant 0 : index
    %205 = vector.load %arg26[%c0_103, %c0_104] : memref<2x128xf32, #tpu.memory_space<vmem>>, vector<2x128xf32>
    tpu.vector_store %arg26[%c0_103, %c0_104], %203 {strides = array<i32>} : memref<2x128xf32, #tpu.memory_space<vmem>>, vector<2x128xf32>,
    return
  }
  func.func @transform_0(%arg0: i32) -> (i32, i32, i32) {
    %c0_i32 = arith.constant 0 : i32
    %c0_i32_0 = arith.constant 0 : i32
    %c0_i32_1 = arith.constant 0 : i32
    return %c0_i32, %arg0, %c0_i32_0 : i32, i32, i32
  }
  func.func @transform_1(%arg0: i32) -> (i32, i32) {
    %c0_i32 = arith.constant 0 : i32
    %c0_i32_0 = arith.constant 0 : i32
    %c0_i32_1 = arith.constant 0 : i32
    return %c0_i32, %c0_i32_0 : i32, i32
  }
  func.func @transform_2(%arg0: i32) -> (i32, i32) {
    %c0_i32 = arith.constant 0 : i32
    %c0_i32_0 = arith.constant 0 : i32
    %c0_i32_1 = arith.constant 0 : i32
    return %c0_i32, %c0_i32_0 : i32, i32
  }
  func.func @transform_3(%arg0: i32) -> (i32, i32) {
    %c0_i32 = arith.constant 0 : i32
    %c0_i32_0 = arith.constant 0 : i32
    %c0_i32_1 = arith.constant 0 : i32
    return %c0_i32, %c0_i32_0 : i32, i32
  }
  func.func @transform_4(%arg0: i32) -> (i32, i32) {
    %c0_i32 = arith.constant 0 : i32
    %c0_i32_0 = arith.constant 0 : i32
    %c0_i32_1 = arith.constant 0 : i32
    return %c0_i32, %c0_i32_0 : i32, i32
  }
  func.func @transform_5(%arg0: i32) -> (i32, i32) {
    %c0_i32 = arith.constant 0 : i32
    %c0_i32_0 = arith.constant 0 : i32
    %c0_i32_1 = arith.constant 0 : i32
    return %c0_i32, %c0_i32_0 : i32, i32
  }
  func.func @transform_6(%arg0: i32) -> (i32, i32) {
    %c0_i32 = arith.constant 0 : i32
    %c0_i32_0 = arith.constant 0 : i32
    %c0_i32_1 = arith.constant 0 : i32
    return %c0_i32, %c0_i32_0 : i32, i32
  }
  func.func @transform_7(%arg0: i32) -> (i32, i32) {
    %c0_i32 = arith.constant 0 : i32
    %c0_i32_0 = arith.constant 0 : i32
    %c0_i32_1 = arith.constant 0 : i32
    return %c0_i32, %c0_i32_0 : i32, i32
  }
  func.func @transform_8(%arg0: i32) -> (i32, i32) {
    %c0_i32 = arith.constant 0 : i32
    %c0_i32_0 = arith.constant 0 : i32
    %c0_i32_1 = arith.constant 0 : i32
    return %c0_i32, %c0_i32_0 : i32, i32
  }
  func.func @transform_9(%arg0: i32) -> (i32, i32) {
    %c0_i32 = arith.constant 0 : i32
    %c0_i32_0 = arith.constant 0 : i32
    %c0_i32_1 = arith.constant 0 : i32
    return %c0_i32, %c0_i32_0 : i32, i32
  }
  func.func @transform_10(%arg0: i32) -> (i32, i32) {
    %c0_i32 = arith.constant 0 : i32
    %c0_i32_0 = arith.constant 0 : i32
    %c0_i32_1 = arith.constant 0 : i32
    return %c0_i32, %c0_i32_0 : i32, i32
  }
  func.func @transform_11(%arg0: i32) -> (i32, i32) {
    %c0_i32 = arith.constant 0 : i32
    %c0_i32_0 = arith.constant 0 : i32
    %c0_i32_1 = arith.constant 0 : i32
    return %c0_i32, %c0_i32_0 : i32, i32
  }
  func.func @transform_12(%arg0: i32) -> (i32, i32) {
    %c0_i32 = arith.constant 0 : i32
    %c0_i32_0 = arith.constant 0 : i32
    %c0_i32_1 = arith.constant 0 : i32
    return %c0_i32, %c0_i32_0 : i32, i32
  }
  func.func @transform_13(%arg0: i32) -> (i32, i32, i32) {
    %c0_i32 = arith.constant 0 : i32
    %c0_i32_0 = arith.constant 0 : i32
    %c0_i32_1 = arith.constant 0 : i32
    %c0_i32_2 = arith.constant 0 : i32
    return %c0_i32, %c0_i32_0, %c0_i32_1 : i32, i32, i32
  }
  func.func @transform_14(%arg0: i32) -> (i32, i32) {
    %c0_i32 = arith.constant 0 : i32
    %c0_i32_0 = arith.constant 0 : i32
    %c0_i32_1 = arith.constant 0 : i32
    return %c0_i32, %c0_i32_0 : i32, i32
  }
  func.func @transform_15(%arg0: i32) -> (i32, i32) {
    %c0_i32 = arith.constant 0 : i32
    %c0_i32_0 = arith.constant 0 : i32
    %c0_i32_1 = arith.constant 0 : i32
    return %c0_i32, %c0_i32_0 : i32, i32
  }
  func.func @transform_16(%arg0: i32) -> (i32, i32) {
    %c0_i32 = arith.constant 0 : i32
    %c0_i32_0 = arith.constant 0 : i32
    %c0_i32_1 = arith.constant 0 : i32
    return %c0_i32, %c0_i32_0 : i32, i32
  }
  func.func @transform_17(%arg0: i32) -> (i32, i32) {
    %c0_i32 = arith.constant 0 : i32
    %c0_i32_0 = arith.constant 0 : i32
    %c0_i32_1 = arith.constant 0 : i32
    return %c0_i32, %c0_i32_0 : i32, i32
  }
  func.func @transform_18(%arg0: i32) -> (i32, i32) {
    %c0_i32 = arith.constant 0 : i32
    %c0_i32_0 = arith.constant 0 : i32
    %c0_i32_1 = arith.constant 0 : i32
    return %c0_i32, %c0_i32_0 : i32, i32
  }
  func.func @transform_19(%arg0: i32) -> (i32, i32) {
    %c0_i32 = arith.constant 0 : i32
    %c0_i32_0 = arith.constant 0 : i32
    %c0_i32_1 = arith.constant 0 : i32
    return %c0_i32, %c0_i32_0 : i32, i32
  }
  func.func @transform_20(%arg0: i32) -> (i32, i32) {
    %c0_i32 = arith.constant 0 : i32
    %c0_i32_0 = arith.constant 0 : i32
    %c0_i32_1 = arith.constant 0 : i32
    return %c0_i32, %c0_i32_0 : i32, i32
  }
  func.func @transform_21(%arg0: i32) -> (i32, i32) {
    %c0_i32 = arith.constant 0 : i32
    %c0_i32_0 = arith.constant 0 : i32
    %c0_i32_1 = arith.constant 0 : i32
    return %c0_i32, %c0_i32_0 : i32, i32
  }
  func.func @transform_22(%arg0: i32) -> (i32, i32) {
    %c0_i32 = arith.constant 0 : i32
    %c0_i32_0 = arith.constant 0 : i32
    %c0_i32_1 = arith.constant 0 : i32
    return %c0_i32, %c0_i32_0 : i32, i32
  }
  func.func @transform_23(%arg0: i32) -> (i32, i32, i32) {
    %c0_i32 = arith.constant 0 : i32
    %c0_i32_0 = arith.constant 0 : i32
    %c0_i32_1 = arith.constant 0 : i32
    return %c0_i32, %arg0, %c0_i32_0 : i32, i32, i32
  }
  func.func @transform_24(%arg0: i32) -> (i32, i32) {
    %c0_i32 = arith.constant 0 : i32
    %c0_i32_0 = arith.constant 0 : i32
    return %arg0, %c0_i32 : i32, i32
  }
  func.func @transform_25(%arg0: i32) -> (i32, i32) {
    %c0_i32 = arith.constant 0 : i32
    %c0_i32_0 = arith.constant 0 : i32
    return %arg0, %c0_i32 : i32, i32
  }
}

</mosaic_0001>

<bundles_post_ra>
// kernel: tpu_custom_call.1
= control target key start
LH: loop header
LB: loop body
LE: loop exit
PB: predicated region body
PF: predicated region fallthrough
CT: control target
= control target key end

     0   :  { %s4425_s0 = inlined_call_operand.vmem [shape: f32[8,2,4], index: 0, kind: input, shape index: {}]   ;;  %s4426_s1 = inlined_call_operand.vmem [shape: bf16[4,128], index: 1, kind: input, shape index: {}]   ;;  %s4427_s2 = inlined_call_operand.vmem [shape: f32[1,128], index: 2, kind: input, shape index: {}]   ;;  %s4428_s3 = inlined_call_operand.hbm [shape: bf16[384,128], index: 3, kind: input, shape index: {}]   ;;  %s4429_s4 = inlined_call_operand.vmem [shape: f32[1,128], index: 4, kind: input, shape index: {}]   ;;  %s4430_s5 = inlined_call_operand.hbm [shape: bf16[384,128], index: 5, kind: input, shape index: {}]   ;;  %s4431_s6 = inlined_call_operand.vmem [shape: f32[1,128], index: 6, kind: input, shape index: {}]   ;;  %s4432_s7 = inlined_call_operand.hbm [shape: bf16[384,128], index: 7, kind: input, shape index: {}]   ;;  %s4433_s8 = inlined_call_operand.vmem [shape: f32[1,128], index: 8, kind: input, shape index: {}]   ;;  %s4434_s9 = inlined_call_operand.hbm [shape: bf16[384,128], index: 9, kind: input, shape index: {}]   ;;  %s4435_s10 = inlined_call_operand.vmem [shape: f32[1,128], index: 10, kind: input, shape index: {}]   ;;  %s4436_s11 = inlined_call_operand.hbm [shape: bf16[128,128], index: 11, kind: input, shape index: {}]   ;;  %s4437_s12 = inlined_call_operand.vmem [shape: f32[1,128], index: 12, kind: input, shape index: {}]   ;;  %s4438_s13 = inlined_call_operand.hbm [shape: bf16[8,128,128], index: 13, kind: input, shape index: {}]   ;;  %s4439_s14 = inlined_call_operand.vmem [shape: f32[1,128], index: 14, kind: input, shape index: {}]   ;;  %s4440_s15 = inlined_call_operand.hbm [shape: bf16[128,128], index: 15, kind: input, shape index: {}]   ;;  %s4441_s16 = inlined_call_operand.vmem [shape: f32[1,128], index: 16, kind: input, shape index: {}]   ;;  %s4442_s17 = inlined_call_operand.hbm [shape: bf16[128,128], index: 17, kind: input, shape index: {}]   ;;  %s4443_s18 = inlined_call_operand.vmem [shape: f32[1,128], index: 18, kind: input, shape index: {}]   ;;  %s4444_s19 = inlined_call_operand.hbm [shape: bf16[128,128], index: 19, kind: input, shape index: {}]   ;;  %s4445_s20 = inlined_call_operand.vmem [shape: f32[1,128], index: 20, kind: input, shape index: {}]   ;;  %s4446_s21 = inlined_call_operand.hbm [shape: bf16[128,128], index: 21, kind: input, shape index: {}]   ;;  %s4447_s22 = inlined_call_operand.vmem [shape: f32[1,128], index: 22, kind: input, shape index: {}]   ;;  %s4448_s23 = inlined_call_operand.hbm [shape: bf16[8,2,128], index: 23, kind: output, shape index: {0}]   ;;  %s4449_s24 = inlined_call_operand.hbm [shape: f32[2,128], index: 24, kind: output, shape index: {1}]   ;;  %s4450_s25 = inlined_call_operand.hbm [shape: f32[2,128], index: 25, kind: output, shape index: {2}]  }
   0x1   :  { %4452 = sst [smem:[#allocation31_spill]] %s4425_s0 }
   0x2   :  { %4453 = sst [smem:[#allocation32_spill]] %s4426_s1 }
   0x3   :  { %4454 = sst [smem:[#allocation33_spill]] %s4427_s2 }
   0x4   :  { %4455 = sst [smem:[#allocation34_spill]] %s4428_s3 }
   0x5   :  { %4456 = sst [smem:[#allocation35_spill]] %s4429_s4 }
   0x6   :  { %4457 = sst [smem:[#allocation36_spill]] %s4430_s5 }
   0x7   :  { %4458 = sst [smem:[#allocation37_spill]] %s4431_s6 }
   0x8   :  { %4459 = sst [smem:[#allocation38_spill]] %s4432_s7 }
   0x9   :  { %4460 = sst [smem:[#allocation39_spill]] %s4433_s8 }
   0xa   :  { %4461 = sst [smem:[#allocation40_spill]] %s4434_s9 }
   0xb   :  { %31 = vsyncpa [#allocation3], 0 }
   0xc   :  { %32 = vsyncpa [#allocation6], 0 }
   0xd   :  { %33 = vsyncpa [#allocation9], 0 }
   0xe   :  { %34 = vsyncpa [#allocation12], 0 }
   0xf   :  { %35 = vsyncpa [#allocation15], 0 }
  0x10   :  { %36 = vsyncpa [#allocation18], 0 }
  0x11   :  { %37 = vsyncpa [#allocation4], 0 }
  0x12   :  { %38 = vsyncpa [#allocation21], 0  ;;  %s4462_s6 = sld [smem:[#allocation36_spill]]  ;;  %s4061_s7 = smov [#allocation5]  }
  0x13   :  { %s66_s3 = sshll.u32 %s4061_s7, 4  ;;  %s4463_s8 = sld [smem:[#allocation40_spill]]  ;;  %s67_s3 = int_to_ptr.vmem [resolvable:$true] %s66_s3 }
  0x14   :  { %s4062_s4 = smov 64   ;;  %s4063_s28 = smov 4  }
  0x15   :  { %s4064_s9 = smov [#allocation8]   ;;  %s124_s2 = sshll.u32 %s4438_s13, 4  ;;  %s125_s2 = int_to_ptr.hbm [resolvable:$true] %s124_s2 }
  0x16   :  { %s96_s5 = sshll.u32 %s4064_s9, 4  ;;  %s154_s26 = sshll.u32 %s4442_s17, 4  ;;  %s97_s5 = int_to_ptr.vmem [resolvable:$true] %s96_s5  ;;  %s155_s26 = int_to_ptr.hbm [resolvable:$true] %s154_s26 }
  0x17   :  { %s4065_s1 = smov [#allocation11]   ;;  %s4464_s0 = sld [smem:[#allocation34_spill]] }
  0x18   :  { %s64_s30 = sshll.u32 %s4462_s6, 4  ;;  %s4067_s7 = smov [#allocation2]   ;;  %s65_s30 = int_to_ptr.hbm [resolvable:$true] %s64_s30 }
  0x19   :  { %s94_s27 = sshll.u32 %s4463_s8, 4  ;;  %s126_s8 = sshll.u32 %s4065_s1, 4  ;;  %s95_s27 = int_to_ptr.hbm [resolvable:$true] %s94_s27  ;;  %s127_s8 = int_to_ptr.vmem [resolvable:$true] %s126_s8 }
  0x1a   :  { %72 = dma.hbm_to_vmem [thread:$0]  %s65_s30, 3072, %s67_s3, [#allocation6], %s4062_s4, %s4062_s4, %s4063_s28  }
  0x1b   :  { %102 = dma.hbm_to_vmem [thread:$0]  %s95_s27, 3072, %s97_s5, [#allocation9], %s4062_s4, %s4062_s4, %s4063_s28  }
  0x1c   :  { %132 = dma.hbm_to_vmem [thread:$0]  %s125_s2, 8192, %s127_s8, [#allocation12], %s4062_s4, %s4062_s4, %s4063_s28  }
  0x1d   :  { %s4066_s30 = smov [#allocation14]   ;;  %s49_s29 = sshll.u32 %s4464_s0, 4  ;;  %s50_s29 = int_to_ptr.hbm [resolvable:$true] %s49_s29 }
  0x1e   :  { %s156_s13 = sshll.u32 %s4066_s30, 4  ;;  %s4465_s5 = sld [smem:[#allocation38_spill]]  ;;  %s157_s13 = int_to_ptr.vmem [resolvable:$true] %s156_s13 }
  0x1f   :  { %162 = dma.hbm_to_vmem [thread:$0]  %s155_s26, 1024, %s157_s13, [#allocation15], %s4062_s4, %s4062_s4, %s4063_s28  }
  0x20   :  { %s51_s1 = sshll.u32 %s4067_s7, 4  ;;  %s4068_s2 = smov [#allocation7]   ;;  %s52_s1 = int_to_ptr.vmem [resolvable:$true] %s51_s1 }
  0x21   :  { %57 = dma.hbm_to_vmem [thread:$0]  %s50_s29, 3072, %s52_s1, [#allocation3], %s4062_s4, %s4062_s4, %s4063_s28  }
  0x22   :  { %s81_s8 = sshll.u32 %s4068_s2, 4  ;;  %s109_s9 = sshll.u32 %s4436_s11, 4  ;;  %s82_s8 = int_to_ptr.vmem [resolvable:$true] %s81_s8  ;;  %s110_s9 = int_to_ptr.hbm [resolvable:$true] %s109_s9 }
  0x23   :  { %s139_s0 = sshll.u32 %s4440_s15, 4  ;;  %s4069_s17 = smov [#allocation10]   ;;  %s140_s0 = int_to_ptr.hbm [resolvable:$true] %s139_s0 }
  0x24   :  { %s79_s6 = sshll.u32 %s4465_s5, 4  ;;  %s111_s27 = sshll.u32 %s4069_s17, 4  ;;  %s80_s6 = int_to_ptr.hbm [resolvable:$true] %s79_s6  ;;  %s112_s27 = int_to_ptr.vmem [resolvable:$true] %s111_s27 }
  0x25   :  { %87 = dma.hbm_to_vmem [thread:$0]  %s80_s6, 3072, %s82_s8, [#allocation6], %s4062_s4, %s4062_s4, %s4063_s28  }
  0x26   :  { %117 = dma.hbm_to_vmem [thread:$0]  %s110_s9, 1024, %s112_s27, [#allocation9], %s4062_s4, %s4062_s4, %s4063_s28  }
  0x27   :  { %s4070_s29 = smov [#allocation13]   ;;  %s169_s1 = sshll.u32 %s4444_s19, 4  ;;  %s170_s1 = int_to_ptr.hbm [resolvable:$true] %s169_s1 }
  0x28   :  { %s141_s11 = sshll.u32 %s4070_s29, 4  ;;  %s184_s2 = sshll.u32 %s4446_s21, 4  ;;  %s142_s11 = int_to_ptr.vmem [resolvable:$true] %s141_s11  ;;  %s185_s2 = int_to_ptr.hbm [resolvable:$true] %s184_s2 }
  0x29   :  { %147 = dma.hbm_to_vmem [thread:$0]  %s140_s0, 1024, %s142_s11, [#allocation12], %s4062_s4, %s4062_s4, %s4063_s28  }
  0x2a   :  { %s4071_s8 = smov [#allocation16]   ;;  %s4072_s3 = smov [#allocation17]  }
  0x2b   :  { %s171_s30 = sshll.u32 %s4071_s8, 4  ;;  %s186_s19 = sshll.u32 %s4072_s3, 4  ;;  %s172_s30 = int_to_ptr.vmem [resolvable:$true] %s171_s30  ;;  %s187_s19 = int_to_ptr.vmem [resolvable:$true] %s186_s19 }
  0x2c   :  { %177 = dma.hbm_to_vmem [thread:$0]  %s170_s1, 1024, %s172_s30, [#allocation15], %s4062_s4, %s4062_s4, %s4063_s28  }
  0x2d   :  { %192 = dma.hbm_to_vmem [thread:$0]  %s185_s2, 1024, %s187_s19, [#allocation18], %s4062_s4, %s4062_s4, %s4063_s28  }
  0x2e   :  { %4045 = dma.done.wait [#allocation3], 3072  }
  0x2f   :  { %4046 = vsyncadd [#allocation3], 4294964224 }
  0x30   :  { %4047 = dma.done.wait [#allocation6], 6144  }
  0x31   :  { %4048 = vsyncadd [#allocation6], 4294961152 }
  0x32   :  { %4049 = dma.done.wait [#allocation9], 4096  }
  0x33   :  { %4050 = vsyncadd [#allocation9], 4294963200 }
  0x34   :  { %4051 = dma.done.wait [#allocation12], 9216  }
  0x35   :  { %4052 = vsyncadd [#allocation12], 4294958080 }
  0x36   :  { %4053 = dma.done.wait [#allocation15], 2048  }
  0x37   :  { %4054 = vsyncadd [#allocation15], 4294965248 }
  0x38   :  { %4055 = dma.done.wait [#allocation18], 1024  }
  0x39   :  { %4056 = vsyncadd [#allocation18], 4294966272  ;;  %s4466_s26 = sld [smem:[#allocation31_spill]]  ;;  %v4073_v6 = vmov 0.0   ;;  %vm298_vm8 = vcmask 31744   ;;  %vm349_vm9 = vcmask 1041408  }
  0x3a   :  { %s4467_s3 = sld [smem:[#allocation32_spill]]  ;;  %v3503_v30 = vld [vmem:[#allocation2 + $0x78] sm:$0xff]  ;;  %v3502_v32 = vld [vmem:[#allocation2 + $0x70] sm:$0xff]  ;;  %v3501_v35 = vld [vmem:[#allocation2 + $0x68] sm:$0xff]  ;;  %s2652_s19 = sshll.u32 %s4449_s24, 4  ;;  %s2653_s19 = int_to_ptr.hbm [resolvable:$true] %s2652_s19 }
  0x3b   :  { %641 = vmatpush.bf16.msra.mxu2 %v3503_v30  ;;  %v3495_v31 = vld [vmem:[#allocation2 + $0x38] sm:$0xff]  ;;  %v3494_v34 = vld [vmem:[#allocation2 + $0x30] sm:$0xff]  ;;  %v3493_v37 = vld [vmem:[#allocation2 + $0x28] sm:$0xff]  ;;  %s4468_s9 = sld [smem:[#allocation33_spill]]  ;;  %s4074_s21 = smov [#allocation20]  }
  0x3c   :  { %v3511_v33 = vld [vmem:[#allocation2 + $0xb8] sm:$0xff]  ;;  %627 = vmatpush.bf16.msra.mxu1 %v3495_v31  ;;  %v3510_v36 = vld [vmem:[#allocation2 + $0xb0] sm:$0xff]  ;;  %v3500_v38 = vld [vmem:[#allocation2 + $0x60] sm:$0xff]  ;;  %s4469_s0 = sld [smem:[#allocation35_spill]]  ;;  %s4076_s28 = smov 16  }
  0x3d   :  { %655 = vmatpush.bf16.msra.mxu3 %v3511_v33  ;;  %v3509_v39 = vld [vmem:[#allocation2 + $0xa8] sm:$0xff]  ;;  %v3492_v40 = vld [vmem:[#allocation2 + $0x20] sm:$0xff]  ;;  %v3499_v41 = vld [vmem:[#allocation2 + $0x58] sm:$0xff]  ;;  %s4470_s17 = sld [smem:[#allocation37_spill]]  ;;  %s4078_s24 = smov [#allocation22]  }
  0x3e   :  { %v3508_v42 = vld [vmem:[#allocation2 + $0xa0] sm:$0xff]  ;;  %v3491_v43 = vld [vmem:[#allocation2 + $0x18] sm:$0xff]  ;;  %v3498_v44 = vld [vmem:[#allocation2 + $0x50] sm:$0xff]  ;;  %s4471_s11 = sld [smem:[#allocation39_spill]]  ;;  %s2663_s1 = sshll.u32 %s4450_s25, 4  ;;  %s2664_s1 = int_to_ptr.hbm [resolvable:$true] %s2663_s1 }
  0x3f   :  { %v247_v0 = vld [vmem:[%s4466_s26] sm:$0x3]  ;;  %v248_v1 = vld [vmem:[%s4466_s26 + $0x2] sm:$0x3]  ;;  %v249_v2 = vld [vmem:[%s4466_s26 + $0x4] sm:$0x3]  ;;  %642 = vmatpush.bf16.msra.mxu2 %v3502_v32 }
  0x40   :  { %v250_v3 = vld [vmem:[%s4466_s26 + $0x6] sm:$0x3]  ;;  %vm255_vm0 = vcmp.ne.f32.partialorder %v247_v0, %v247_v0  ;;  %vm256_vm1 = vcmp.ne.f32.partialorder %v248_v1, %v248_v1  ;;  %vm257_vm2 = vcmp.ne.f32.partialorder %v249_v2, %v249_v2  ;;  %v251_v4 = vld [vmem:[%s4466_s26 + $0x8] sm:$0x3]  ;;  %v252_v5 = vld [vmem:[%s4466_s26 + $0xa] sm:$0x3]  ;;  %628 = vmatpush.bf16.msra.mxu1 %v3494_v34 }
  0x41   :  { %vm258_vm3 = vcmp.ne.f32.partialorder %v250_v3, %v250_v3  ;;  %v263_v7 = vsel %vm255_vm0, 1.0, %v4073_v6  ;;  %v264_v8 = vsel %vm256_vm1, 1.0, %v4073_v6  ;;  %v265_v9 = vsel %vm257_vm2, 1.0, %v4073_v6  ;;  %v253_v10 = vld [vmem:[%s4466_s26 + $0xc] sm:$0x3]  ;;  %656 = vmatpush.bf16.msra.mxu3 %v3510_v36  ;;  %v3507_v45 = vld [vmem:[#allocation2 + $0x98] sm:$0xff] }
  0x42   :  { %v266_v11 = vsel %vm258_vm3, 1.0, %v4073_v6  ;;  %279 = vst [vmem:[#allocation1] ss:$4 sm:$0xff] %v263_v7  ;;  %v254_v12 = vld [vmem:[%s4466_s26 + $0xe] sm:$0x3]  ;;  %vm259_vm4 = vcmp.ne.f32.partialorder %v251_v4, %v251_v4  ;;  %vm260_vm5 = vcmp.ne.f32.partialorder %v252_v5, %v252_v5  ;;  %vm261_vm6 = vcmp.ne.f32.partialorder %v253_v10, %v253_v10  ;;  %v3490_v47 = vld [vmem:[#allocation2 + $0x10] sm:$0xff] }
  0x43   :  { %281 = vst [vmem:[#allocation1 + $0x1] ss:$4 sm:$0xff] %v264_v8  ;;  %vm262_vm7 = vcmp.ne.f32.partialorder %v254_v12, %v254_v12  ;;  %v267_v13 = vsel %vm259_vm4, 1.0, %v4073_v6  ;;  %v268_v14 = vsel %vm260_vm5, 1.0, %v4073_v6  ;;  %v269_v15 = vsel %vm261_vm6, 1.0, %v4073_v6  ;;  %643 = vmatpush.bf16.msra.mxu2 %v3501_v35  ;;  %v3497_v48 = vld [vmem:[#allocation2 + $0x48] sm:$0xff] }
  0x44   :  { %283 = vst [vmem:[#allocation1 + $0x2] ss:$4 sm:$0xff] %v265_v9  ;;  %v270_v16 = vsel %vm262_vm7, 1.0, %v4073_v6  ;;  %v341_v21 = vld [vmem:[%s4467_s3] sm:$0x3]  ;;  %629 = vmatpush.bf16.msra.mxu1 %v3493_v37  ;;  %v3506_v49 = vld [vmem:[#allocation2 + $0x90] sm:$0xff]  ;;  %v236_v8 = vlaneseq }
  0x45   :  { %285 = vst [vmem:[#allocation1 + $0x3] ss:$4 sm:$0xff] %v266_v11  ;;  %v351_v22 = vsel %vm349_vm9, %v341_v21, 0  ;;  %657 = vmatpush.bf16.msra.mxu3 %v3509_v39  ;;  %v3706_v46 = vld [vmem:[%s4468_s9] ss:$0 sm:$0xff]  ;;  %v3489_v52 = vld [vmem:[#allocation2 + $0x8] sm:$0xff] }
  0x46   :  { %287 = vst [vmem:[#allocation1 + $0x20] ss:$4 sm:$0xff] %v267_v13  ;;  %360 = vmatpush.bf16.msra.mxu0 %v351_v22  ;;  %v3496_v53 = vld [vmem:[#allocation2 + $0x40] sm:$0xff]  ;;  %v3505_v54 = vld [vmem:[#allocation2 + $0x88] sm:$0xff]  ;;  %v4316_v11 = vshrl.u32 %v236_v8, 7  ;;  %s2650_s9 = sshll.u32 %s4074_s21, 4  ;;  %s2651_s9 = int_to_ptr.vmem [resolvable:$true] %s2650_s9 }
  0x47   :  { %289 = vst [vmem:[#allocation1 + $0x21] ss:$4 sm:$0xff] %v268_v14  ;;  %644 = vmatpush.bf16.msra.mxu2 %v3500_v38  ;;  %v3488_v58 = vld [vmem:[#allocation2] sm:$0xff]  ;;  %v3529_v8 = vld [vmem:[#allocation5 + $0x88] sm:$0xff]  ;;  %s4075_s26 = smov [#allocation19]  }
  0x48   :  { %291 = vst [vmem:[#allocation1 + $0x22] ss:$4 sm:$0xff] %v269_v15  ;;  %630 = vmatpush.bf16.msra.mxu1 %v3492_v40  ;;  %v3504_v59 = vld [vmem:[#allocation2 + $0x80] sm:$0xff]  ;;  %v4319_v15 = vadd.s32 8, %v4316_v11  ;;  %vm239_vm12 = vcmp.ge.s32.totalorder %v4316_v11, 2  ;;  %vm387_vm13 = vcmp.lt.s32.totalorder %v4316_v11, 2 }
  0x49   :  { %293 = vst [vmem:[#allocation1 + $0x23] ss:$4 sm:$0xff] %v270_v16  ;;  %658 = vmatpush.bf16.msra.mxu3 %v3508_v42  ;;  %vm400_vm14 = vcmp.lt.s32.totalorder %v4316_v11, 6  ;;  %v3519_v42 = vld [vmem:[#allocation5 + $0x38] sm:$0xff]  ;;  %vm1066_vm1 = vcmp.lt.s32.totalorder %v4316_v11, 4  ;;  %vm243_vm2 = vcmp.ge.s32.totalorder %v4316_v11, 4 }
  0x4a   :  { %vm242_vm15 = vcmp.lt.s32.totalorder %v4319_v15, 14  ;;  %919 = vmatpush.bf16.msrb.mxu0 %v3519_v42  ;;  %vm246_vm0 = vcmp.lt.s32.totalorder %v4319_v15, 12  ;;  %v3617_v11 = vld [vmem:[#allocation11 + $0xc8] sm:$0xff]  ;;  %v3592_v15 = vld [vmem:[#allocation11] sm:$0xff]  ;;  %s2636_s13 = sshll.u32 %s4075_s26, 4  ;;  %s2637_s13 = int_to_ptr.vmem [resolvable:$true] %s2636_s13 }
  0x4b   :  { %645 = vmatpush.bf16.msra.mxu2 %v3499_v41  ;;  %v3527_v41 = vld [vmem:[#allocation5 + $0x78] sm:$0xff] }
  0x4c   :  { %v294_v17 = vld.sshfl [vmem:[#allocation1] sm:$0xff pattern:$0x73625140]  ;;  %631 = vmatpush.bf16.msra.mxu1 %v3491_v43  ;;  %v3526_v43 = vld [vmem:[#allocation5 + $0x70] sm:$0xff] }
  0x4d   :  { %v299_v18 = vsel %vm298_vm8, %v294_v17, -inf  ;;  %319 = vst [vmem:[#allocation1] ss:$4 sm:$0xff] %v247_v0  ;;  %659 = vmatpush.bf16.msra.mxu3 %v3507_v45  ;;  %v3518_v45 = vld [vmem:[#allocation5 + $0x30] sm:$0xff] }
  0x4e   :  { %321 = vst [vmem:[#allocation1 + $0x1] ss:$4 sm:$0xff] %v248_v1  ;;  %300 = vmax.xlane.f32.xlu0 %v299_v18  ;;  %920 = vmatpush.bf16.msrb.mxu0 %v3518_v45 }
  0x4f   :  { %323 = vst [vmem:[#allocation1 + $0x2] ss:$4 sm:$0xff] %v249_v2  ;;  %646 = vmatpush.bf16.msra.mxu2 %v3498_v44  ;;  %v3535_v44 = vld [vmem:[#allocation5 + $0xb8] sm:$0xff] }
  0x50   :  { %325 = vst [vmem:[#allocation1 + $0x3] ss:$4 sm:$0xff] %v250_v3  ;;  %v295_v19 = vld.sshfl [vmem:[#allocation1 + $0x20] sm:$0xff pattern:$0x73625140]  ;;  %632 = vmatpush.bf16.msra.mxu1 %v3490_v47  ;;  %v3534_v47 = vld [vmem:[#allocation5 + $0xb0] sm:$0xff] }
  0x51   :  { %327 = vst [vmem:[#allocation1 + $0x20] ss:$4 sm:$0xff] %v251_v4  ;;  %v302_v20 = vsel %vm298_vm8, %v295_v19, -inf  ;;  %660 = vmatpush.bf16.msra.mxu3 %v3506_v49  ;;  %v3524_v49 = vld [vmem:[#allocation5 + $0x60] sm:$0xff] }
  0x52   :  { %329 = vst [vmem:[#allocation1 + $0x21] ss:$4 sm:$0xff] %v252_v5 }
  0x53   :  { %331 = vst [vmem:[#allocation1 + $0x22] ss:$4 sm:$0xff] %v253_v10  ;;  %647 = vmatpush.bf16.msra.mxu2 %v3497_v48  ;;  %v3517_v48 = vld [vmem:[#allocation5 + $0x28] sm:$0xff] }
  0x54   :  { %333 = vst [vmem:[#allocation1 + $0x23] ss:$4 sm:$0xff] %v254_v12  ;;  %633 = vmatpush.bf16.msra.mxu1 %v3489_v52  ;;  %921 = vmatpush.bf16.msrb.mxu0 %v3517_v48  ;;  %v3707_v52 = vld [vmem:[%s4469_s0] ss:$0 sm:$0xff] }
  0x55   :  { %661 = vmatpush.bf16.msra.mxu3 %v3505_v54  ;;  %v3523_v54 = vld [vmem:[#allocation5 + $0x58] sm:$0xff] }
  0x56   :  { %303 = vmax.xlane.f32.xlu0 %v302_v20 }
  0x57   :  { %v334_v24 = vld.sshfl [vmem:[#allocation1] sm:$0xff pattern:$0x73625140]  ;;  %648 = vmatpush.bf16.msra.mxu2 %v3496_v53  ;;  %v3516_v53 = vld [vmem:[#allocation5 + $0x20] sm:$0xff] }
  0x58   :  { %634 = vmatpush.bf16.msra.mxu1 %v3488_v58  ;;  %922 = vmatpush.bf16.msrb.mxu0 %v3516_v53 }
  0x59   :  { %662 = vmatpush.bf16.msra.mxu3 %v3504_v59  ;;  %v3515_v59 = vld [vmem:[#allocation5 + $0x18] sm:$0xff] }
  0x5b   :  { %v335_v25 = vld.sshfl [vmem:[#allocation1 + $0x20] sm:$0xff pattern:$0x73625140]  ;;  %947 = vmatpush.bf16.msrb.mxu2 %v3535_v44 }
  0x5c   :  { %933 = vmatpush.bf16.msrb.mxu1 %v3527_v41  ;;  %923 = vmatpush.bf16.msrb.mxu0 %v3515_v59 }
  0x5f   :  { %948 = vmatpush.bf16.msrb.mxu2 %v3534_v47 }
  0x60   :  { %934 = vmatpush.bf16.msrb.mxu1 %v3526_v43 }
  0xc1   :  { %v301_v23 = vpop.xlane.xlu0 %300 }
  0xc2   :  { %vm305_vm10 = vcmp.gt.f32.partialorder %v301_v23, 0.0 }
  0xc3   :  { %v338_v27 = vsel %vm305_vm10, 0.0, %v334_v24 }
  0xc9   :  { %v304_v26 = vpop.xlane.xlu0 %303 }
  0xca   :  { %vm306_vm11 = vcmp.gt.f32.partialorder %v304_v26, 0.0 }
  0xcb   :  { %v339_v28 = vsel %vm306_vm11, 0.0, %v335_v25 }
  0xcc   :  { %v340_v29 = vpack.c.bf16 %v339_v28, %v338_v27 }
  0xce   :  { %2687 = vmatmul.msk.bf16.vlgmr.msra.gmra.mxu0 %vm298_vm8, %v340_v29 }
 0x14b   :  { %v362_v50 = vpop.f32.mrf.mxu0 }
 0x14c   :  { %v4303_v51 = vadd.f32 %v3706_v46, %v362_v50  ;;  %v3533_v50 = vld [vmem:[#allocation5 + $0xa8] sm:$0xff] }
 0x14d   :  { %949 = vmatpush.bf16.msrb.mxu2 %v3533_v50 }
 0x14e   :  { %v367_v55 = vmul.f32 %v4303_v51, %v4303_v51 }
 0x150   :  { %v369_v56 = vmul.f32 %v367_v55, %v4303_v51  ;;  %v3532_v55 = vld [vmem:[#allocation5 + $0xa0] sm:$0xff] }
 0x151   :  { %950 = vmatpush.bf16.msrb.mxu2 %v3532_v55 }
 0x152   :  { %v371_v57 = vmul.f32 0.044715, %v369_v56 }
 0x153   :  { %v364_v60 = vpop.f32.mrf.mxu0 }
 0x154   :  { %v373_v61 = vadd.f32 %v371_v57, %v4303_v51  ;;  %v4309_v62 = vadd.f32 %v3706_v46, %v364_v60  ;;  %v3525_v46 = vld [vmem:[#allocation5 + $0x68] sm:$0xff]  ;;  %v3522_v60 = vld [vmem:[#allocation5 + $0x50] sm:$0xff] }
 0x155   :  { %935 = vmatpush.bf16.msrb.mxu1 %v3525_v46 }
 0x156   :  { %v368_v63 = vmul.f32 %v4309_v62, %v4309_v62  ;;  %v375_v0 = vmul.f32 0.7978846, %v373_v61  ;;  %v3531_v61 = vld [vmem:[#allocation5 + $0x98] sm:$0xff] }
 0x157   :  { %951 = vmatpush.bf16.msrb.mxu2 %v3531_v61 }
 0x158   :  { %v370_v1 = vmul.f32 %v368_v63, %v4309_v62  ;;  %3717 = vtanh.f32 %v375_v0  ;;  %v3514_v0 = vld [vmem:[#allocation5 + $0x10] sm:$0xff] }
 0x159   :  { %936 = vmatpush.bf16.msrb.mxu1 %v3524_v49  ;;  %924 = vmatpush.bf16.msrb.mxu0 %v3514_v0 }
 0x15a   :  { %v372_v2 = vmul.f32 0.044715, %v370_v1  ;;  %v3521_v1 = vld [vmem:[#allocation5 + $0x48] sm:$0xff] }
 0x15c   :  { %v374_v3 = vadd.f32 %v372_v2, %v4309_v62  ;;  %v3530_v2 = vld [vmem:[#allocation5 + $0x90] sm:$0xff] }
 0x15d   :  { %937 = vmatpush.bf16.msrb.mxu1 %v3523_v54  ;;  %952 = vmatpush.bf16.msrb.mxu2 %v3530_v2  ;;  %v3540_v2 = vld [vmem:[#allocation10 + $0x20] sm:$0xff] }
 0x15e   :  { %v3718_v4 = vpop.eup %3717  ;;  %v376_v5 = vmul.f32 0.7978846, %v374_v3 }
 0x15f   :  { %v379_v6 = vadd.f32 1.0, %v3718_v4 }
 0x160   :  { %3719 = vtanh.f32 %v376_v5 }
 0x161   :  { %v381_v7 = vmul.f32 0.5, %v379_v6  ;;  %938 = vmatpush.bf16.msrb.mxu1 %v3522_v60  ;;  %v3513_v6 = vld [vmem:[#allocation5 + $0x8] sm:$0xff]  ;;  %953 = vmatpush.bf16.msrb.mxu2 %v3529_v8  ;;  %v3551_v8 = vld [vmem:[#allocation7 + $0x38] sm:$0xff] }
 0x162   :  { %925 = vmatpush.bf16.msrb.mxu0 %v3513_v6  ;;  %v3559_v6 = vld [vmem:[#allocation7 + $0x78] sm:$0xff] }
 0x163   :  { %v383_v10 = vmul.f32 %v381_v7, %v4303_v51  ;;  %v3520_v7 = vld [vmem:[#allocation5 + $0x40] sm:$0xff] }
 0x165   :  { %v411_v14 = vpack.c.bf16 %v383_v10, %v383_v10  ;;  %v385_v17 = vrot.slane %v383_v10, 6  ;;  %v398_v20 = vrot.slane %v383_v10, 2  ;;  %939 = vmatpush.bf16.msrb.mxu1 %v3521_v1  ;;  %v3541_v1 = vld [vmem:[#allocation10 + $0x28] sm:$0xff] }
 0x166   :  { %v3720_v9 = vpop.eup %3719 }
 0x167   :  { %v380_v12 = vadd.f32 1.0, %v3720_v9  ;;  %v421_v22 = vunpack.c.l.b16 %v411_v14 }
 0x169   :  { %v382_v13 = vmul.f32 0.5, %v380_v12  ;;  %940 = vmatpush.bf16.msrb.mxu1 %v3520_v7  ;;  %v3536_v7 = vld [vmem:[#allocation10] sm:$0xff] }
 0x16b   :  { %v384_v16 = vmul.f32 %v382_v13, %v4309_v62 }
 0x16d   :  { %v412_v18 = vpack.c.bf16 %v384_v16, %v384_v16  ;;  %v386_v19 = vrot.slane %v384_v16, 6  ;;  %v399_v21 = vrot.slane %v384_v16, 2 }
 0x16f   :  { %v422_v23 = vunpack.c.l.b16 %v412_v18  ;;  %v388_v24 = vsel %vm387_vm13, %v385_v17, %v386_v19  ;;  %v389_v25 = vsel %vm387_vm13, %v386_v19, %v385_v17  ;;  %v401_v26 = vsel %vm400_vm14, %v398_v20, %v399_v21  ;;  %v3512_v17 = vld [vmem:[#allocation5] sm:$0xff] }
 0x170   :  { %v394_v27 = vsel %vm239_vm12, %v389_v25, 0.0  ;;  %v397_v28 = vpack.c.bf16 %v388_v24, %v388_v24  ;;  %v402_v29 = vsel %vm400_vm14, %v399_v21, %v398_v20  ;;  %v409_v30 = vpack.c.bf16 %v401_v26, %v401_v26  ;;  %v3528_v18 = vld [vmem:[#allocation5 + $0x80] sm:$0xff]  ;;  %926 = vmatpush.bf16.msrb.mxu0 %v3512_v17  ;;  %v3543_v25 = vld [vmem:[#allocation10 + $0x38] sm:$0xff] }
 0x171   :  { %v423_v31 = vpack.c.b16 %v422_v23, %v421_v22  ;;  %v396_v32 = vpack.c.bf16 %v394_v27, %v394_v27  ;;  %v408_v33 = vsel %vm242_vm15, %v402_v29, 0.0  ;;  %954 = vmatpush.bf16.msrb.mxu2 %v3528_v18  ;;  %1032 = vmatpush.bf16.msrb.mxu3 %v3543_v25  ;;  %v3542_v27 = vld [vmem:[#allocation10 + $0x30] sm:$0xff]  ;;  %v3556_v17 = vld [vmem:[#allocation7 + $0x60] sm:$0xff]  ;;  %v3565_v18 = vld [vmem:[#allocation7 + $0xa8] sm:$0xff] }
 0x172   :  { %v416_v34 = vunpack.c.l.b16 %v397_v28  ;;  %v410_v35 = vpack.c.bf16 %v408_v33, %v408_v33  ;;  %v427_v36 = vunpack.c.l.b16 %v409_v30  ;;  %v3547_v25 = vld [vmem:[#allocation7 + $0x18] sm:$0xff] }
 0x173   :  { %649 = vmatmul.bf16.vlgmr.msra.gmra.mxu2 %v423_v31  ;;  %v415_v37 = vunpack.c.l.b16 %v396_v32 }
 0x174   :  { %v428_v38 = vunpack.c.l.b16 %v410_v35  ;;  %1301 = vmatpush.bf16.msra.mxu0 %v3551_v8 }
 0x175   :  { %v417_v39 = vpack.c.b16 %v416_v34, %v415_v37  ;;  %1033 = vmatpush.bf16.msrb.mxu3 %v3542_v27 }
 0x176   :  { %v429_v40 = vpack.c.b16 %v428_v38, %v427_v36 }
 0x177   :  { %635 = vmatmul.bf16.vlgmr.msra.gmra.mxu1 %v417_v39 }
 0x178   :  { %663 = vmatmul.bf16.vlgmr.msra.gmra.mxu3 %v429_v40  ;;  %1315 = vmatpush.bf16.msra.mxu1 %v3559_v6 }
 0x179   :  { %1034 = vmatpush.bf16.msrb.mxu3 %v3541_v1 }
 0x17d   :  { %1035 = vmatpush.bf16.msrb.mxu3 %v3540_v2 }
 0x1f4   :  { %v636_v56 = vpop.f32.mrf.mxu1 }
 0x1f5   :  { %v637_v57 = vadd.f32 %v3707_v52, %v636_v56 }
 0x1f6   :  { %v650_v58 = vpop.f32.mrf.mxu2 }
 0x1f7   :  { %v651_v63 = vadd.f32 %v650_v58, %v637_v57 }
 0x1fb   :  { %v664_v3 = vpop.f32.mrf.mxu3 }
 0x1fc   :  { %v665_v4 = vadd.f32 %v664_v3, %v651_v63  ;;  %v638_v5 = vpop.f32.mrf.mxu1  ;;  %v3539_v3 = vld [vmem:[#allocation10 + $0x18] sm:$0xff] }
 0x1fd   :  { %v639_v10 = vadd.f32 %v3707_v52, %v638_v5  ;;  %1036 = vmatpush.bf16.msrb.mxu3 %v3539_v3  ;;  %v3537_v5 = vld [vmem:[#allocation10 + $0x8] sm:$0xff] }
 0x1fe   :  { %v669_v9 = vmul.f32 %v665_v4, %v665_v4  ;;  %v652_v12 = vpop.f32.mrf.mxu2 }
 0x1ff   :  { %v653_v16 = vadd.f32 %v652_v12, %v639_v10  ;;  %v3567_v10 = vld [vmem:[#allocation7 + $0xb8] sm:$0xff]  ;;  %v3550_v12 = vld [vmem:[#allocation7 + $0x30] sm:$0xff] }
 0x200   :  { %v671_v13 = vmul.f32 %v669_v9, %v665_v4  ;;  %v3558_v9 = vld [vmem:[#allocation7 + $0x70] sm:$0xff]  ;;  %1329 = vmatpush.bf16.msra.mxu2 %v3567_v10  ;;  %1302 = vmatpush.bf16.msra.mxu0 %v3550_v12 }
 0x201   :  { %1316 = vmatpush.bf16.msra.mxu1 %v3558_v9 }
 0x202   :  { %v673_v14 = vmul.f32 0.044715, %v671_v13  ;;  %v3557_v13 = vld [vmem:[#allocation7 + $0x68] sm:$0xff] }
 0x203   :  { %v666_v19 = vpop.f32.mrf.mxu3 }
 0x204   :  { %v675_v20 = vadd.f32 %v673_v14, %v665_v4  ;;  %v667_v21 = vadd.f32 %v666_v19, %v653_v16  ;;  %v3566_v14 = vld [vmem:[#allocation7 + $0xb0] sm:$0xff]  ;;  %v3549_v16 = vld [vmem:[#allocation7 + $0x28] sm:$0xff]  ;;  %v3708_v19 = vld [vmem:[%s4470_s17] ss:$0 sm:$0xff]  ;;  %s4077_s17 = smov 1  }
 0x205   :  { %1317 = vmatpush.bf16.msra.mxu1 %v3557_v13  ;;  %1330 = vmatpush.bf16.msra.mxu2 %v3566_v14 }
 0x206   :  { %v677_v22 = vmul.f32 0.7978846, %v675_v20  ;;  %v670_v23 = vmul.f32 %v667_v21, %v667_v21  ;;  %1303 = vmatpush.bf16.msra.mxu0 %v3549_v16  ;;  %v3548_v20 = vld [vmem:[#allocation7 + $0x20] sm:$0xff] }
 0x208   :  { %3721 = vtanh.f32 %v677_v22  ;;  %v672_v24 = vmul.f32 %v670_v23, %v667_v21  ;;  %v3564_v22 = vld [vmem:[#allocation7 + $0xa0] sm:$0xff] }
 0x209   :  { %1318 = vmatpush.bf16.msra.mxu1 %v3556_v17  ;;  %1331 = vmatpush.bf16.msra.mxu2 %v3565_v18 }
 0x20a   :  { %v674_v26 = vmul.f32 0.044715, %v672_v24  ;;  %1304 = vmatpush.bf16.msra.mxu0 %v3548_v20 }
 0x20c   :  { %v676_v28 = vadd.f32 %v674_v26, %v667_v21  ;;  %v3554_v26 = vld [vmem:[#allocation7 + $0x50] sm:$0xff] }
 0x20d   :  { %1332 = vmatpush.bf16.msra.mxu2 %v3564_v22 }
 0x20e   :  { %v3722_v29 = vpop.eup %3721  ;;  %v678_v30 = vmul.f32 0.7978846, %v676_v28  ;;  %v3563_v28 = vld [vmem:[#allocation7 + $0x98] sm:$0xff]  ;;  %1305 = vmatpush.bf16.msra.mxu0 %v3547_v25 }
 0x20f   :  { %v681_v31 = vadd.f32 1.0, %v3722_v29  ;;  %v3575_v25 = vld [vmem:[#allocation8 + $0x38] sm:$0xff] }
 0x210   :  { %3723 = vtanh.f32 %v678_v30  ;;  %v3546_v30 = vld [vmem:[#allocation7 + $0x10] sm:$0xff] }
 0x211   :  { %v683_v32 = vmul.f32 0.5, %v681_v31  ;;  %v3553_v31 = vld [vmem:[#allocation7 + $0x48] sm:$0xff]  ;;  %1333 = vmatpush.bf16.msra.mxu2 %v3563_v28  ;;  %v3574_v28 = vld [vmem:[#allocation8 + $0x30] sm:$0xff] }
 0x212   :  { %1306 = vmatpush.bf16.msra.mxu0 %v3546_v30  ;;  %v3590_v30 = vld [vmem:[#allocation8 + $0xb0] sm:$0xff] }
 0x213   :  { %v685_v34 = vmul.f32 %v683_v32, %v665_v4  ;;  %v3538_v4 = vld [vmem:[#allocation10 + $0x10] sm:$0xff] }
 0x214   :  { %1037 = vmatpush.bf16.msrb.mxu3 %v3538_v4 }
 0x215   :  { %v703_v37 = vpack.c.bf16 %v685_v34, %v685_v34  ;;  %v687_v39 = vrot.slane %v685_v34, 6  ;;  %v695_v42 = vrot.slane %v685_v34, 2 }
 0x216   :  { %v3724_v33 = vpop.eup %3723 }
 0x217   :  { %v682_v35 = vadd.f32 1.0, %v3724_v33  ;;  %v713_v44 = vunpack.c.l.b16 %v703_v37  ;;  %v3562_v33 = vld [vmem:[#allocation7 + $0x90] sm:$0xff] }
 0x218   :  { %1038 = vmatpush.bf16.msrb.mxu3 %v3537_v5  ;;  %1334 = vmatpush.bf16.msra.mxu2 %v3562_v33  ;;  %v3589_v33 = vld [vmem:[#allocation8 + $0xa8] sm:$0xff] }
 0x219   :  { %v684_v36 = vmul.f32 0.5, %v682_v35 }
 0x21b   :  { %v686_v38 = vmul.f32 %v684_v36, %v667_v21  ;;  %v3555_v21 = vld [vmem:[#allocation7 + $0x58] sm:$0xff] }
 0x21c   :  { %1039 = vmatpush.bf16.msrb.mxu3 %v3536_v7  ;;  %1319 = vmatpush.bf16.msra.mxu1 %v3555_v21 }
 0x21d   :  { %v704_v40 = vpack.c.bf16 %v686_v38, %v686_v38  ;;  %v688_v41 = vrot.slane %v686_v38, 6  ;;  %v696_v43 = vrot.slane %v686_v38, 2  ;;  %v3545_v38 = vld [vmem:[#allocation7 + $0x8] sm:$0xff] }
 0x21e   :  { %1307 = vmatpush.bf16.msra.mxu0 %v3545_v38 }
 0x21f   :  { %v714_v45 = vunpack.c.l.b16 %v704_v40  ;;  %v689_v46 = vsel %vm387_vm13, %v687_v39, %v688_v41  ;;  %v690_v47 = vsel %vm387_vm13, %v688_v41, %v687_v39  ;;  %v697_v48 = vsel %vm400_vm14, %v695_v42, %v696_v43  ;;  %v3552_v39 = vld [vmem:[#allocation7 + $0x40] sm:$0xff]  ;;  %v3561_v40 = vld [vmem:[#allocation7 + $0x88] sm:$0xff] }
 0x220   :  { %v691_v49 = vsel %vm239_vm12, %v690_v47, 0.0  ;;  %v694_v50 = vpack.c.bf16 %v689_v46, %v689_v46  ;;  %v698_v52 = vsel %vm400_vm14, %v696_v43, %v695_v42  ;;  %v701_v53 = vpack.c.bf16 %v697_v48, %v697_v48  ;;  %1320 = vmatpush.bf16.msra.mxu1 %v3554_v26  ;;  %1335 = vmatpush.bf16.msra.mxu2 %v3561_v40  ;;  %v3544_v48 = vld [vmem:[#allocation7] sm:$0xff]  ;;  %v3582_v26 = vld [vmem:[#allocation8 + $0x70] sm:$0xff]  ;;  %v3571_v40 = vld [vmem:[#allocation8 + $0x18] sm:$0xff] }
 0x221   :  { %v715_v54 = vpack.c.b16 %v714_v45, %v713_v44  ;;  %v693_v55 = vpack.c.bf16 %v691_v49, %v691_v49  ;;  %v700_v56 = vsel %vm242_vm15, %v698_v52, 0.0  ;;  %v3560_v49 = vld [vmem:[#allocation7 + $0x80] sm:$0xff]  ;;  %1589 = vmatpush.bf16.msra.mxu3 %v3575_v25 }
 0x222   :  { %v708_v57 = vunpack.c.l.b16 %v694_v50  ;;  %v702_v58 = vpack.c.bf16 %v700_v56, %v700_v56  ;;  %v719_v59 = vunpack.c.l.b16 %v701_v53  ;;  %1308 = vmatpush.bf16.msra.mxu0 %v3544_v48  ;;  %v3612_v25 = vld [vmem:[#allocation11 + $0xa0] sm:$0xff] }
 0x223   :  { %941 = vmatmul.bf16.vlgmr.msrb.gmra.mxu1 %v715_v54  ;;  %v707_v60 = vunpack.c.l.b16 %v693_v55 }
 0x224   :  { %v720_v61 = vunpack.c.l.b16 %v702_v58  ;;  %1321 = vmatpush.bf16.msra.mxu1 %v3553_v31  ;;  %1336 = vmatpush.bf16.msra.mxu2 %v3560_v49  ;;  %v3573_v31 = vld [vmem:[#allocation8 + $0x28] sm:$0xff] }
 0x225   :  { %v709_v63 = vpack.c.b16 %v708_v57, %v707_v60  ;;  %1590 = vmatpush.bf16.msra.mxu3 %v3574_v28  ;;  %v3595_v28 = vld [vmem:[#allocation11 + $0x18] sm:$0xff] }
 0x226   :  { %v721_v0 = vpack.c.b16 %v720_v61, %v719_v59 }
 0x227   :  { %927 = vmatmul.bf16.vlgmr.msrb.gmra.mxu0 %v709_v63 }
 0x228   :  { %955 = vmatmul.bf16.vlgmr.msrb.gmra.mxu2 %v721_v0  ;;  %1322 = vmatpush.bf16.msra.mxu1 %v3552_v39 }
 0x229   :  { %1591 = vmatpush.bf16.msra.mxu3 %v3573_v31  ;;  %v3611_v31 = vld [vmem:[#allocation11 + $0x98] sm:$0xff] }
 0x2a0   :  { %v942_v27 = vpop.f32.mrf.mxu1 }
 0x2a4   :  { %v928_v23 = vpop.f32.mrf.mxu0 }
 0x2a5   :  { %v929_v24 = vadd.f32 %v3708_v19, %v928_v23 }
 0x2a7   :  { %v943_v29 = vadd.f32 %v942_v27, %v929_v24  ;;  %v3583_v24 = vld [vmem:[#allocation8 + $0x78] sm:$0xff] }
 0x2a8   :  { %v944_v42 = vpop.f32.mrf.mxu1  ;;  %1603 = vmatpush.bf16.msrb.mxu0 %v3583_v24  ;;  %v3591_v27 = vld [vmem:[#allocation8 + $0xb8] sm:$0xff]  ;;  %v3604_v24 = vld [vmem:[#allocation11 + $0x60] sm:$0xff] }
 0x2a9   :  { %1617 = vmatpush.bf16.msrb.mxu1 %v3591_v27 }
 0x2ab   :  { %v956_v32 = vpop.f32.mrf.mxu2 }
 0x2ac   :  { %v957_v34 = vadd.f32 %v956_v32, %v943_v29  ;;  %v930_v35 = vpop.f32.mrf.mxu0  ;;  %1604 = vmatpush.bf16.msrb.mxu0 %v3582_v26  ;;  %v3581_v29 = vld [vmem:[#allocation8 + $0x68] sm:$0xff]  ;;  %v3580_v32 = vld [vmem:[#allocation8 + $0x60] sm:$0xff] }
 0x2ad   :  { %v931_v37 = vadd.f32 %v3708_v19, %v930_v35  ;;  %1618 = vmatpush.bf16.msrb.mxu1 %v3590_v30  ;;  %v3572_v35 = vld [vmem:[#allocation8 + $0x20] sm:$0xff] }
 0x2ae   :  { %v961_v36 = vadd.f32 %v957_v34, %v4303_v51  ;;  %v3710_v34 = vld [vmem:[%s4471_s11] ss:$0 sm:$0xff]  ;;  %1592 = vmatpush.bf16.msra.mxu3 %v3572_v35  ;;  %v3620_v26 = vld [vmem:[#allocation11 + $0xe0] sm:$0xff]  ;;  %s2661_s11 = sshll.u32 %s4078_s24, 4  ;;  %s2662_s11 = int_to_ptr.vmem [resolvable:$true] %s2661_s11 }
 0x2af   :  { %v945_v44 = vadd.f32 %v944_v42, %v931_v37  ;;  %v3588_v37 = vld [vmem:[#allocation8 + $0xa0] sm:$0xff]  ;;  %v3587_v42 = vld [vmem:[#allocation8 + $0x98] sm:$0xff] }
 0x2b0   :  { %v1046_v41 = vmul.f32 %v961_v36, %v961_v36  ;;  %1605 = vmatpush.bf16.msrb.mxu0 %v3581_v29  ;;  %v3603_v29 = vld [vmem:[#allocation11 + $0x58] sm:$0xff] }
 0x2b1   :  { %1619 = vmatpush.bf16.msrb.mxu1 %v3589_v33 }
 0x2b2   :  { %v1048_v43 = vmul.f32 %v1046_v41, %v961_v36  ;;  %v3578_v41 = vld [vmem:[#allocation8 + $0x50] sm:$0xff]  ;;  %1593 = vmatpush.bf16.msra.mxu3 %v3571_v40 }
 0x2b3   :  { %v958_v45 = vpop.f32.mrf.mxu2 }
 0x2b4   :  { %v1050_v46 = vmul.f32 0.044715, %v1048_v43  ;;  %v959_v47 = vadd.f32 %v958_v45, %v945_v44  ;;  %1606 = vmatpush.bf16.msrb.mxu0 %v3580_v32  ;;  %v3570_v45 = vld [vmem:[#allocation8 + $0x10] sm:$0xff]  ;;  %v3619_v32 = vld [vmem:[#allocation11 + $0xd8] sm:$0xff] }
 0x2b5   :  { %1620 = vmatpush.bf16.msrb.mxu1 %v3588_v37  ;;  %v3602_v37 = vld [vmem:[#allocation11 + $0x50] sm:$0xff] }
 0x2b6   :  { %v1052_v51 = vadd.f32 %v1050_v46, %v961_v36  ;;  %v962_v50 = vadd.f32 %v959_v47, %v4309_v62  ;;  %v3577_v46 = vld [vmem:[#allocation8 + $0x48] sm:$0xff]  ;;  %v3586_v47 = vld [vmem:[#allocation8 + $0x90] sm:$0xff]  ;;  %1594 = vmatpush.bf16.msra.mxu3 %v3570_v45 }
 0x2b8   :  { %v1054_v52 = vmul.f32 0.7978846, %v1052_v51  ;;  %v1047_v53 = vmul.f32 %v962_v50, %v962_v50  ;;  %v963_v54 = vpack.c.bf16 %v962_v50, %v961_v36 }
 0x2b9   :  { %1621 = vmatpush.bf16.msrb.mxu1 %v3587_v42 }
 0x2ba   :  { %3725 = vtanh.f32 %v1054_v52  ;;  %v1049_v55 = vmul.f32 %v1047_v53, %v962_v50  ;;  %1040 = vmatmul.bf16.vlgmr.msrb.gmra.mxu3 %v963_v54  ;;  %v3576_v52 = vld [vmem:[#allocation8 + $0x40] sm:$0xff]  ;;  %v3585_v53 = vld [vmem:[#allocation8 + $0x88] sm:$0xff] }
 0x2bc   :  { %v1051_v56 = vmul.f32 0.044715, %v1049_v55 }
 0x2bd   :  { %1622 = vmatpush.bf16.msrb.mxu1 %v3586_v47 }
 0x2be   :  { %v1053_v57 = vadd.f32 %v1051_v56, %v962_v50 }
 0x2c0   :  { %v3726_v58 = vpop.eup %3725  ;;  %v1055_v59 = vmul.f32 0.7978846, %v1053_v57 }
 0x2c1   :  { %v1058_v60 = vadd.f32 1.0, %v3726_v58  ;;  %1623 = vmatpush.bf16.msrb.mxu1 %v3585_v53 }
 0x2c2   :  { %3727 = vtanh.f32 %v1055_v59 }
 0x2c3   :  { %v1060_v61 = vmul.f32 0.5, %v1058_v60  ;;  %v3568_v60 = vld [vmem:[#allocation8] sm:$0xff] }
 0x2c5   :  { %v1062_v1 = vmul.f32 %v1060_v61, %v961_v36  ;;  %v3579_v36 = vld [vmem:[#allocation8 + $0x58] sm:$0xff]  ;;  %v3584_v61 = vld [vmem:[#allocation8 + $0x80] sm:$0xff] }
 0x2c6   :  { %1607 = vmatpush.bf16.msrb.mxu0 %v3579_v36  ;;  %1624 = vmatpush.bf16.msrb.mxu1 %v3584_v61  ;;  %v3594_v36 = vld [vmem:[#allocation11 + $0x10] sm:$0xff]  ;;  %v3601_v61 = vld [vmem:[#allocation11 + $0x48] sm:$0xff] }
 0x2c7   :  { %v1085_v3 = vpack.c.bf16 %v1062_v1, %v1062_v1  ;;  %v1064_v4 = vrot.slane %v1062_v1, 4 }
 0x2c8   :  { %v3728_v63 = vpop.eup %3727 }
 0x2c9   :  { %v1059_v0 = vadd.f32 1.0, %v3728_v63  ;;  %v1095_v7 = vunpack.c.l.b16 %v1085_v3  ;;  %v3599_v3 = vld [vmem:[#allocation11 + $0x38] sm:$0xff] }
 0x2ca   :  { %1608 = vmatpush.bf16.msrb.mxu0 %v3578_v41  ;;  %1839 = vmatpush.bf16.msrb.mxu2 %v3599_v3  ;;  %v3639_v3 = vld [vmem:[#allocation11 + $0x178] sm:$0xff] }
 0x2cb   :  { %v1061_v2 = vmul.f32 0.5, %v1059_v0 }
 0x2cd   :  { %v1063_v62 = vmul.f32 %v1061_v2, %v962_v50  ;;  %v3569_v50 = vld [vmem:[#allocation8 + $0x8] sm:$0xff] }
 0x2ce   :  { %1609 = vmatpush.bf16.msrb.mxu0 %v3577_v46  ;;  %1595 = vmatpush.bf16.msra.mxu3 %v3569_v50 }
 0x2cf   :  { %v1065_v5 = vrot.slane %v1063_v62, 4  ;;  %v1086_v6 = vpack.c.bf16 %v1063_v62, %v1063_v62 }
 0x2d1   :  { %v1096_v8 = vunpack.c.l.b16 %v1086_v6  ;;  %v1067_v9 = vsel %vm1066_vm1, %v1064_v4, %v1065_v5  ;;  %v1068_v10 = vsel %vm1066_vm1, %v1065_v5, %v1064_v4  ;;  %v3607_v4 = vld [vmem:[#allocation11 + $0x78] sm:$0xff] }
 0x2d2   :  { %v1073_v12 = vsel %vm243_vm2, %v1068_v10, 0.0  ;;  %v1076_v13 = vpack.c.bf16 %v1067_v9, %v1067_v9  ;;  %v1082_v14 = vsel %vm246_vm0, %v1068_v10, 0.0  ;;  %1610 = vmatpush.bf16.msrb.mxu0 %v3576_v52  ;;  %1596 = vmatpush.bf16.msra.mxu3 %v3568_v60  ;;  %v3615_v5 = vld [vmem:[#allocation11 + $0xb8] sm:$0xff]  ;;  %v3606_v9 = vld [vmem:[#allocation11 + $0x70] sm:$0xff]  ;;  %v3593_v60 = vld [vmem:[#allocation11 + $0x8] sm:$0xff] }
 0x2d3   :  { %v1097_v16 = vpack.c.b16 %v1096_v8, %v1095_v7  ;;  %v1075_v17 = vpack.c.bf16 %v1073_v12, %v1073_v12  ;;  %v1084_v18 = vpack.c.bf16 %v1082_v14, %v1082_v14  ;;  %v3623_v7 = vld [vmem:[#allocation11 + $0xf8] sm:$0xff]  ;;  %v3598_v8 = vld [vmem:[#allocation11 + $0x30] sm:$0xff] }
 0x2d4   :  { %v1090_v19 = vunpack.c.l.b16 %v1076_v13  ;;  %v3614_v12 = vld [vmem:[#allocation11 + $0xb0] sm:$0xff]  ;;  %1840 = vmatpush.bf16.msrb.mxu2 %v3598_v8 }
 0x2d5   :  { %1323 = vmatmul.bf16.vlgmr.msra.gmra.mxu1 %v1097_v16  ;;  %v1089_v20 = vunpack.c.l.b16 %v1075_v17  ;;  %v1102_v21 = vunpack.c.l.b16 %v1084_v18  ;;  %v3622_v13 = vld [vmem:[#allocation11 + $0xf0] sm:$0xff]  ;;  %v3597_v16 = vld [vmem:[#allocation11 + $0x28] sm:$0xff] }
 0x2d6   :  { %1900 = vmatpush.bf16.msrb.mxu3 %v3607_v4  ;;  %2022 = vmatpush.bf16.msra.mxu1 %v3623_v7  ;;  %v3605_v17 = vld [vmem:[#allocation11 + $0x68] sm:$0xff]  ;;  %v3647_v4 = vld [vmem:[#allocation11 + $0x1b8] sm:$0xff]  ;;  %v3638_v7 = vld [vmem:[#allocation11 + $0x170] sm:$0xff] }
 0x2d7   :  { %v1091_v22 = vpack.c.b16 %v1090_v19, %v1089_v20  ;;  %v1103_v23 = vpack.c.b16 %v1102_v21, %v1090_v19  ;;  %v3613_v20 = vld [vmem:[#allocation11 + $0xa8] sm:$0xff]  ;;  %v3646_v8 = vld [vmem:[#allocation11 + $0x1b0] sm:$0xff] }
 0x2d8   :  { %v3621_v21 = vld [vmem:[#allocation11 + $0xe8] sm:$0xff]  ;;  %1841 = vmatpush.bf16.msrb.mxu2 %v3597_v16  ;;  %v3628_v16 = vld [vmem:[#allocation11 + $0x120] sm:$0xff] }
 0x2d9   :  { %1309 = vmatmul.bf16.vlgmr.msra.gmra.mxu0 %v1091_v22  ;;  %1337 = vmatmul.bf16.vlgmr.msra.gmra.mxu2 %v1103_v23  ;;  %v3596_v23 = vld [vmem:[#allocation11 + $0x20] sm:$0xff] }
 0x2da   :  { %1961 = vmatpush.bf16.msra.mxu0 %v3615_v5  ;;  %1901 = vmatpush.bf16.msrb.mxu3 %v3606_v9  ;;  %v3655_v5 = vld [vmem:[#allocation11 + $0x1f8] sm:$0xff]  ;;  %v3654_v9 = vld [vmem:[#allocation11 + $0x1f0] sm:$0xff] }
 0x2db   :  { %2023 = vmatpush.bf16.msra.mxu1 %v3622_v13  ;;  %v3645_v13 = vld [vmem:[#allocation11 + $0x1a8] sm:$0xff] }
 0x2dc   :  { %1842 = vmatpush.bf16.msrb.mxu2 %v3596_v23  ;;  %v3643_v23 = vld [vmem:[#allocation11 + $0x198] sm:$0xff] }
 0x2de   :  { %1962 = vmatpush.bf16.msra.mxu0 %v3614_v12  ;;  %1902 = vmatpush.bf16.msrb.mxu3 %v3605_v17  ;;  %v3637_v12 = vld [vmem:[#allocation11 + $0x168] sm:$0xff]  ;;  %v3636_v17 = vld [vmem:[#allocation11 + $0x160] sm:$0xff] }
 0x2df   :  { %2024 = vmatpush.bf16.msra.mxu1 %v3621_v21 }
 0x2e0   :  { %1843 = vmatpush.bf16.msrb.mxu2 %v3595_v28  ;;  %v3650_v28 = vld [vmem:[#allocation11 + $0x1d0] sm:$0xff] }
 0x2e2   :  { %1963 = vmatpush.bf16.msra.mxu0 %v3613_v20  ;;  %1903 = vmatpush.bf16.msrb.mxu3 %v3604_v24  ;;  %v3627_v20 = vld [vmem:[#allocation11 + $0x118] sm:$0xff] }
 0x2e3   :  { %2025 = vmatpush.bf16.msra.mxu1 %v3620_v26  ;;  %v3651_v24 = vld [vmem:[#allocation11 + $0x1d8] sm:$0xff]  ;;  %v3634_v26 = vld [vmem:[#allocation11 + $0x150] sm:$0xff] }
 0x2e4   :  { %1844 = vmatpush.bf16.msrb.mxu2 %v3594_v36  ;;  %v3640_v36 = vld [vmem:[#allocation11 + $0x180] sm:$0xff] }
 0x2e6   :  { %1964 = vmatpush.bf16.msra.mxu0 %v3612_v25  ;;  %1904 = vmatpush.bf16.msrb.mxu3 %v3603_v29  ;;  %v3626_v25 = vld [vmem:[#allocation11 + $0x110] sm:$0xff]  ;;  %v3625_v29 = vld [vmem:[#allocation11 + $0x108] sm:$0xff] }
 0x2e7   :  { %2026 = vmatpush.bf16.msra.mxu1 %v3619_v32  ;;  %v3649_v32 = vld [vmem:[#allocation11 + $0x1c8] sm:$0xff] }
 0x2e8   :  { %1845 = vmatpush.bf16.msrb.mxu2 %v3593_v60 }
 0x2ea   :  { %1965 = vmatpush.bf16.msra.mxu0 %v3611_v31  ;;  %1905 = vmatpush.bf16.msrb.mxu3 %v3602_v37  ;;  %v3641_v31 = vld [vmem:[#allocation11 + $0x188] sm:$0xff]  ;;  %v3648_v37 = vld [vmem:[#allocation11 + $0x1c0] sm:$0xff] }
 0x2ec   :  { %1846 = vmatpush.bf16.msrb.mxu2 %v3592_v15 }
 0x2ee   :  { %1906 = vmatpush.bf16.msrb.mxu3 %v3601_v61 }
 0x33d   :  { %v1041_v21 = vpop.f32.mrf.mxu3 }
 0x352   :  { %v1324_v43 = vpop.f32.mrf.mxu1 }
 0x356   :  { %v1310_v38 = vpop.f32.mrf.mxu0 }
 0x357   :  { %v1311_v39 = vadd.f32 %v3710_v34, %v1310_v38  ;;  %v3610_v38 = vld [vmem:[#allocation11 + $0x90] sm:$0xff] }
 0x358   :  { %1966 = vmatpush.bf16.msra.mxu0 %v3610_v38  ;;  %v3711_v38 = vld [vmem:[%s4435_s10] ss:$0 sm:$0xff] }
 0x359   :  { %v1325_v44 = vadd.f32 %v1324_v43, %v1311_v39  ;;  %v3618_v39 = vld [vmem:[#allocation11 + $0xd0] sm:$0xff] }
 0x35a   :  { %v1326_v57 = vpop.f32.mrf.mxu1  ;;  %2027 = vmatpush.bf16.msra.mxu1 %v3618_v39 }
 0x35c   :  { %v1338_v48 = vpop.f32.mrf.mxu2 }
 0x35d   :  { %v4372_v49 = vadd.f32 %v1338_v48, %v1325_v44 }
 0x35e   :  { %v1312_v51 = vpop.f32.mrf.mxu0  ;;  %2028 = vmatpush.bf16.msra.mxu1 %v3617_v11 }
 0x35f   :  { %v1343_v54 = vmul.f32 %v4372_v49, %v4372_v49  ;;  %v1313_v55 = vadd.f32 %v3710_v34, %v1312_v51 }
 0x361   :  { %v1345_v56 = vmul.f32 %v1343_v54, %v4372_v49  ;;  %v1327_v59 = vadd.f32 %v1326_v57, %v1313_v55 }
 0x363   :  { %v1347_v58 = vmul.f32 0.044715, %v1345_v56 }
 0x364   :  { %v1340_v63 = vpop.f32.mrf.mxu2 }
 0x365   :  { %v1349_v0 = vadd.f32 %v1347_v58, %v4372_v49  ;;  %v1341_v1 = vadd.f32 %v1340_v63, %v1327_v59  ;;  %v3609_v63 = vld [vmem:[#allocation11 + $0x88] sm:$0xff] }
 0x366   :  { %1967 = vmatpush.bf16.msra.mxu0 %v3609_v63 }
 0x367   :  { %v1351_v2 = vmul.f32 0.7978846, %v1349_v0  ;;  %v1344_v62 = vmul.f32 %v1341_v1, %v1341_v1  ;;  %v3631_v0 = vld [vmem:[#allocation11 + $0x138] sm:$0xff] }
 0x368   :  { %2083 = vmatpush.bf16.msra.mxu2 %v3631_v0 }
 0x369   :  { %3729 = vtanh.f32 %v1351_v2  ;;  %v1346_v6 = vmul.f32 %v1344_v62, %v1341_v1  ;;  %v3608_v2 = vld [vmem:[#allocation11 + $0x80] sm:$0xff] }
 0x36a   :  { %v3616_v62 = vld [vmem:[#allocation11 + $0xc0] sm:$0xff]  ;;  %1968 = vmatpush.bf16.msra.mxu0 %v3608_v2 }
 0x36b   :  { %v1348_v10 = vmul.f32 0.044715, %v1346_v6  ;;  %2029 = vmatpush.bf16.msra.mxu1 %v3616_v62  ;;  %v3630_v6 = vld [vmem:[#allocation11 + $0x130] sm:$0xff] }
 0x36c   :  { %2084 = vmatpush.bf16.msra.mxu2 %v3630_v6  ;;  %v3661_v6 = vld [vmem:[#allocation13 + $0x28] sm:$0xff] }
 0x36d   :  { %v1350_v14 = vadd.f32 %v1348_v10, %v1341_v1  ;;  %v3629_v10 = vld [vmem:[#allocation11 + $0x128] sm:$0xff] }
 0x36f   :  { %v3730_v18 = vpop.eup %3729  ;;  %v1352_v19 = vmul.f32 0.7978846, %v1350_v14  ;;  %v3653_v14 = vld [vmem:[#allocation11 + $0x1e8] sm:$0xff] }
 0x370   :  { %v1355_v22 = vadd.f32 1.0, %v3730_v18  ;;  %2085 = vmatpush.bf16.msra.mxu2 %v3629_v10  ;;  %v3644_v18 = vld [vmem:[#allocation11 + $0x1a0] sm:$0xff]  ;;  %v3657_v10 = vld [vmem:[#allocation13 + $0x8] sm:$0xff] }
 0x371   :  { %3731 = vtanh.f32 %v1352_v19  ;;  %v3652_v19 = vld [vmem:[#allocation11 + $0x1e0] sm:$0xff] }
 0x372   :  { %v1357_v27 = vmul.f32 0.5, %v1355_v22  ;;  %v3635_v22 = vld [vmem:[#allocation11 + $0x158] sm:$0xff] }
 0x374   :  { %v1359_v33 = vmul.f32 %v1357_v27, %v4372_v49  ;;  %2086 = vmatpush.bf16.msra.mxu2 %v3628_v16  ;;  %v3642_v27 = vld [vmem:[#allocation11 + $0x190] sm:$0xff] }
 0x376   :  { %v1373_v41 = vpack.c.bf16 %v1359_v33, %v1359_v33  ;;  %v1361_v42 = vrot.slane %v1359_v33, 4  ;;  %v3624_v33 = vld [vmem:[#allocation11 + $0x100] sm:$0xff] }
 0x377   :  { %v3732_v30 = vpop.eup %3731 }
 0x378   :  { %v1356_v34 = vadd.f32 1.0, %v3732_v30  ;;  %v1383_v45 = vunpack.c.l.b16 %v1373_v41  ;;  %2087 = vmatpush.bf16.msra.mxu2 %v3627_v20  ;;  %v3633_v30 = vld [vmem:[#allocation11 + $0x148] sm:$0xff]  ;;  %v3709_v41 = vld [vmem:[%s4437_s12] ss:$0 sm:$0xff] }
 0x37a   :  { %v1358_v35 = vmul.f32 0.5, %v1356_v34  ;;  %v1043_v34 = vpop.f32.mrf.mxu3 }
 0x37b   :  { %v1044_v60 = vadd.f32 %v3709_v41, %v1043_v34 }
 0x37c   :  { %v1360_v40 = vmul.f32 %v1358_v35, %v1341_v1  ;;  %v3600_v1 = vld [vmem:[#allocation11 + $0x40] sm:$0xff]  ;;  %2088 = vmatpush.bf16.msra.mxu2 %v3626_v25 }
 0x37d   :  { %1907 = vmatpush.bf16.msrb.mxu3 %v3600_v1  ;;  %v3632_v35 = vld [vmem:[#allocation11 + $0x140] sm:$0xff] }
 0x37e   :  { %v1362_v43 = vrot.slane %v1360_v40, 4  ;;  %v1374_v44 = vpack.c.bf16 %v1360_v40, %v1360_v40 }
 0x380   :  { %v1384_v46 = vunpack.c.l.b16 %v1374_v44  ;;  %v1363_v47 = vsel %vm1066_vm1, %v1361_v42, %v1362_v43  ;;  %v1364_v48 = vsel %vm1066_vm1, %v1362_v43, %v1361_v42  ;;  %2089 = vmatpush.bf16.msra.mxu2 %v3625_v29 }
 0x381   :  { %v1365_v49 = vsel %vm243_vm2, %v1364_v48, 0.0  ;;  %v1368_v51 = vpack.c.bf16 %v1363_v47, %v1363_v47  ;;  %v1370_v50 = vsel %vm246_vm0, %v1364_v48, 0.0 }
 0x382   :  { %v1385_v52 = vpack.c.b16 %v1384_v46, %v1383_v45  ;;  %v1367_v53 = vpack.c.bf16 %v1365_v49, %v1365_v49  ;;  %v1372_v54 = vpack.c.bf16 %v1370_v50, %v1370_v50  ;;  %v1042_v45 = vadd.f32 %v3709_v41, %v1041_v21 }
 0x383   :  { %v1378_v55 = vunpack.c.l.b16 %v1368_v51 }
 0x384   :  { %1611 = vmatmul.bf16.vlgmr.msrb.gmra.mxu0 %v1385_v52  ;;  %v1377_v56 = vunpack.c.l.b16 %v1367_v53  ;;  %v1390_v57 = vunpack.c.l.b16 %v1372_v54  ;;  %2090 = vmatpush.bf16.msra.mxu2 %v3624_v33  ;;  %v3667_v33 = vld [vmem:[#allocation14 + $0x18] sm:$0xff] }
 0x385   :  { %2205 = vmatpush.bf16.msrb.mxu0 %v3647_v4  ;;  %v3663_v4 = vld [vmem:[#allocation13 + $0x38] sm:$0xff] }
 0x386   :  { %v1379_v58 = vpack.c.b16 %v1378_v55, %v1377_v56  ;;  %v1391_v59 = vpack.c.b16 %v1390_v57, %v1378_v55 }
 0x388   :  { %1597 = vmatmul.bf16.vlgmr.msra.gmra.mxu3 %v1379_v58  ;;  %1625 = vmatmul.bf16.vlgmr.msrb.gmra.mxu1 %v1391_v59 }
 0x389   :  { %2144 = vmatpush.bf16.msra.mxu3 %v3639_v3  ;;  %2266 = vmatpush.bf16.msrb.mxu1 %v3655_v5  ;;  %v3662_v5 = vld [vmem:[#allocation13 + $0x30] sm:$0xff] }
 0x38a   :  { %2206 = vmatpush.bf16.msrb.mxu0 %v3646_v8  ;;  %v3659_v8 = vld [vmem:[#allocation13 + $0x18] sm:$0xff] }
 0x38d   :  { %2145 = vmatpush.bf16.msra.mxu3 %v3638_v7  ;;  %2267 = vmatpush.bf16.msrb.mxu1 %v3654_v9  ;;  %v3660_v7 = vld [vmem:[#allocation13 + $0x20] sm:$0xff]  ;;  %v3658_v9 = vld [vmem:[#allocation13 + $0x10] sm:$0xff] }
 0x38e   :  { %2207 = vmatpush.bf16.msrb.mxu0 %v3645_v13 }
 0x391   :  { %2146 = vmatpush.bf16.msra.mxu3 %v3637_v12  ;;  %2268 = vmatpush.bf16.msrb.mxu1 %v3653_v14  ;;  %v3656_v12 = vld [vmem:[#allocation13] sm:$0xff] }
 0x392   :  { %2208 = vmatpush.bf16.msrb.mxu0 %v3644_v18 }
 0x395   :  { %2147 = vmatpush.bf16.msra.mxu3 %v3636_v17  ;;  %2269 = vmatpush.bf16.msrb.mxu1 %v3652_v19  ;;  %v3671_v17 = vld [vmem:[#allocation14 + $0x38] sm:$0xff]  ;;  %v3670_v19 = vld [vmem:[#allocation14 + $0x30] sm:$0xff] }
 0x396   :  { %2209 = vmatpush.bf16.msrb.mxu0 %v3643_v23  ;;  %v3669_v23 = vld [vmem:[#allocation14 + $0x28] sm:$0xff] }
 0x399   :  { %2148 = vmatpush.bf16.msra.mxu3 %v3635_v22  ;;  %2270 = vmatpush.bf16.msrb.mxu1 %v3651_v24 }
 0x39a   :  { %2210 = vmatpush.bf16.msrb.mxu0 %v3642_v27 }
 0x39d   :  { %2149 = vmatpush.bf16.msra.mxu3 %v3634_v26  ;;  %2271 = vmatpush.bf16.msrb.mxu1 %v3650_v28  ;;  %v3668_v28 = vld [vmem:[#allocation14 + $0x20] sm:$0xff] }
 0x39e   :  { %2211 = vmatpush.bf16.msrb.mxu0 %v3641_v31 }
 0x3a1   :  { %2150 = vmatpush.bf16.msra.mxu3 %v3633_v30  ;;  %2272 = vmatpush.bf16.msrb.mxu1 %v3649_v32 }
 0x3a2   :  { %2212 = vmatpush.bf16.msrb.mxu0 %v3640_v36 }
 0x3a5   :  { %2151 = vmatpush.bf16.msra.mxu3 %v3632_v35  ;;  %2273 = vmatpush.bf16.msrb.mxu1 %v3648_v37 }
 0x401   :  { %v1612_v39 = vpop.f32.mrf.mxu0 }
 0x405   :  { %v1626_v43 = vpop.f32.mrf.mxu1 }
 0x409   :  { %v1614_v53 = vpop.f32.mrf.mxu0 }
 0x40b   :  { %v1598_v40 = vpop.f32.mrf.mxu3 }
 0x40c   :  { %v1599_v42 = vadd.f32 %v3711_v38, %v1598_v40  ;;  %v3666_v40 = vld [vmem:[#allocation14 + $0x10] sm:$0xff] }
 0x40d   :  { %v1628_v58 = vpop.f32.mrf.mxu1 }
 0x40e   :  { %v1613_v44 = vadd.f32 %v1612_v39, %v1599_v42 }
 0x410   :  { %v1627_v46 = vadd.f32 %v1626_v43, %v1613_v44 }
 0x412   :  { %v1631_v47 = vadd.f32 %v1627_v46, %v1042_v45 }
 0x413   :  { %v1600_v48 = vpop.f32.mrf.mxu3 }
 0x414   :  { %v1601_v49 = vadd.f32 %v3711_v38, %v1600_v48  ;;  %v1647_v51 = vpack.c.bf16 %v1631_v47, %v1631_v47  ;;  %v1635_v50 = vrot.slane %v1631_v47, 2  ;;  %v1636_v52 = vrot.slane %v1631_v47, 4 }
 0x415   :  { %v1637_v54 = vrot.slane %v1631_v47, 6  ;;  %v3712_v47 = vld [vmem:[%s4439_s14] ss:$0 sm:$0xff] }
 0x416   :  { %v1615_v55 = vadd.f32 %v1614_v53, %v1601_v49  ;;  %1655 = vst [vmem:[#allocation19] sm:$0x1] %v1647_v51  ;;  %1847 = vmatmul.bf16.vlgmr.msrb.gmra.mxu2 %v1647_v51  ;;  %v1648_v56 = vpack.c.bf16 %v1635_v50, %v1635_v50  ;;  %v1649_v57 = vpack.c.bf16 %v1636_v52, %v1636_v52 }
 0x417   :  { %v1650_v59 = vpack.c.bf16 %v1637_v54, %v1637_v54  ;;  %2369 = vmatpush.bf16.msrb.mxu2 %v3663_v4  ;;  %v3672_v4 = vld [vmem:[#allocation16] sm:$0xff] }
 0x418   :  { %v1629_v61 = vadd.f32 %v1628_v58, %v1615_v55  ;;  %1656 = vst [vmem:[#allocation19 + $0x1] sm:$0x1] %v1648_v56  ;;  %1908 = vmatmul.bf16.vlgmr.msrb.gmra.mxu3 %v1648_v56  ;;  %1969 = vmatmul.bf16.vlgmr.msra.gmra.mxu0 %v1649_v57  ;;  %v3665_v55 = vld [vmem:[#allocation14 + $0x8] sm:$0xff]  ;;  %v3664_v56 = vld [vmem:[#allocation14] sm:$0xff]  ;;  %v3678_v58 = vld [vmem:[#allocation16 + $0x30] sm:$0xff] }
 0x419   :  { %1657 = vst [vmem:[#allocation19 + $0x2] sm:$0x1] %v1649_v57  ;;  %2030 = vmatmul.bf16.vlgmr.msra.gmra.mxu1 %v1650_v59  ;;  %2452 = vmatpush.bf16.msrb.mxu3 %v3671_v17  ;;  %v3679_v57 = vld [vmem:[#allocation16 + $0x38] sm:$0xff] }
 0x41a   :  { %v1632_v63 = vadd.f32 %v1629_v61, %v1044_v60  ;;  %1658 = vst [vmem:[#allocation19 + $0x3] sm:$0x1] %v1650_v59  ;;  %2534 = vmatpush.bf16.msra.mxu0 %v3679_v57  ;;  %v3677_v59 = vld [vmem:[#allocation16 + $0x28] sm:$0xff]  ;;  %v3676_v60 = vld [vmem:[#allocation16 + $0x20] sm:$0xff]  ;;  %v3675_v61 = vld [vmem:[#allocation16 + $0x18] sm:$0xff] }
 0x41b   :  { %2370 = vmatpush.bf16.msrb.mxu2 %v3662_v5  ;;  %v3687_v5 = vld [vmem:[#allocation17 + $0x38] sm:$0xff] }
 0x41c   :  { %v1651_v11 = vpack.c.bf16 %v1632_v63, %v1632_v63  ;;  %v1638_v15 = vrot.slane %v1632_v63, 2  ;;  %v1639_v0 = vrot.slane %v1632_v63, 4  ;;  %v1640_v1 = vrot.slane %v1632_v63, 6  ;;  %v3674_v63 = vld [vmem:[#allocation16 + $0x10] sm:$0xff]  ;;  %2617 = vmatpush.bf16.msra.mxu1 %v3687_v5 }
 0x41d   :  { %2453 = vmatpush.bf16.msrb.mxu3 %v3670_v19  ;;  %v3680_v19 = vld [vmem:[#allocation17] sm:$0xff] }
 0x41e   :  { %1659 = vst [vmem:[#allocation19 + $0x4] sm:$0x1] %v1651_v11  ;;  %v1652_v2 = vpack.c.bf16 %v1638_v15, %v1638_v15  ;;  %v1653_v62 = vpack.c.bf16 %v1639_v0, %v1639_v0  ;;  %v1654_v3 = vpack.c.bf16 %v1640_v1, %v1640_v1  ;;  %2535 = vmatpush.bf16.msra.mxu0 %v3678_v58  ;;  %v3673_v15 = vld [vmem:[#allocation16 + $0x8] sm:$0xff] }
 0x41f   :  { %2371 = vmatpush.bf16.msrb.mxu2 %v3661_v6  ;;  %v3686_v6 = vld [vmem:[#allocation17 + $0x30] sm:$0xff] }
 0x420   :  { %1660 = vst [vmem:[#allocation19 + $0x5] sm:$0x1] %v1652_v2  ;;  %2618 = vmatpush.bf16.msra.mxu1 %v3686_v6 }
 0x421   :  { %1661 = vst [vmem:[#allocation19 + $0x6] sm:$0x1] %v1653_v62  ;;  %2454 = vmatpush.bf16.msrb.mxu3 %v3669_v23 }
 0x422   :  { %1662 = vst [vmem:[#allocation19 + $0x7] sm:$0x1] %v1654_v3  ;;  %2536 = vmatpush.bf16.msra.mxu0 %v3677_v59 }
 0x423   :  { %2372 = vmatpush.bf16.msrb.mxu2 %v3660_v7  ;;  %v3685_v7 = vld [vmem:[#allocation17 + $0x28] sm:$0xff] }
 0x424   :  { %2619 = vmatpush.bf16.msra.mxu1 %v3685_v7 }
 0x425   :  { %2455 = vmatpush.bf16.msrb.mxu3 %v3668_v28 }
 0x426   :  { %2091 = vmatmul.bf16.vlgmr.msra.gmra.mxu2 %v1651_v11  ;;  %2537 = vmatpush.bf16.msra.mxu0 %v3676_v60  ;;  %v3713_v11 = vld [vmem:[%s4441_s16] ss:$0 sm:$0xff] }
 0x427   :  { %2373 = vmatpush.bf16.msrb.mxu2 %v3659_v8  ;;  %v3684_v8 = vld [vmem:[#allocation17 + $0x20] sm:$0xff] }
 0x428   :  { %2152 = vmatmul.bf16.vlgmr.msra.gmra.mxu3 %v1652_v2  ;;  %2213 = vmatmul.bf16.vlgmr.msrb.gmra.mxu0 %v1653_v62 }
 0x429   :  { %2274 = vmatmul.bf16.vlgmr.msrb.gmra.mxu1 %v1654_v3  ;;  %2456 = vmatpush.bf16.msrb.mxu3 %v3667_v33 }
 0x42a   :  { %2538 = vmatpush.bf16.msra.mxu0 %v3675_v61  ;;  %2620 = vmatpush.bf16.msra.mxu1 %v3684_v8 }
 0x42b   :  { %2374 = vmatpush.bf16.msrb.mxu2 %v3658_v9  ;;  %v3683_v9 = vld [vmem:[#allocation17 + $0x18] sm:$0xff] }
 0x42d   :  { %2457 = vmatpush.bf16.msrb.mxu3 %v3666_v40 }
 0x42e   :  { %2539 = vmatpush.bf16.msra.mxu0 %v3674_v63  ;;  %2621 = vmatpush.bf16.msra.mxu1 %v3683_v9 }
 0x42f   :  { %2375 = vmatpush.bf16.msrb.mxu2 %v3657_v10  ;;  %v3682_v10 = vld [vmem:[#allocation17 + $0x10] sm:$0xff] }
 0x431   :  { %2458 = vmatpush.bf16.msrb.mxu3 %v3665_v55 }
 0x432   :  { %2540 = vmatpush.bf16.msra.mxu0 %v3673_v15  ;;  %2622 = vmatpush.bf16.msra.mxu1 %v3682_v10 }
 0x433   :  { %2376 = vmatpush.bf16.msrb.mxu2 %v3656_v12  ;;  %v3714_v12 = vld [vmem:[%s4443_s18] ss:$0 sm:$0xff] }
 0x435   :  { %2459 = vmatpush.bf16.msrb.mxu3 %v3664_v56 }
 0x436   :  { %2541 = vmatpush.bf16.msra.mxu0 %v3672_v4 }
 0x495   :  { %v1970_v13 = vpop.f32.mrf.mxu0 }
 0x496   :  { %v2031_v14 = vpop.f32.mrf.mxu1  ;;  %v2282_v29 = vsel %vm349_vm9, %v1970_v13, 0.0 }
 0x497   :  { %v2284_v34 = vsel %vm349_vm9, %v2031_v14, 0.0 }
 0x499   :  { %v1848_v16 = vpop.f32.mrf.mxu2 }
 0x49a   :  { %v2279_v24 = vsel %vm349_vm9, %v1848_v16, 0.0 }
 0x49b   :  { %v1909_v18 = vpop.f32.mrf.mxu3 }
 0x49c   :  { %v2280_v21 = vsel %vm349_vm9, %v1909_v18, 0.0  ;;  %v3681_v18 = vld [vmem:[#allocation17 + $0x8] sm:$0xff] }
 0x49d   :  { %v1972_v20 = vpop.f32.mrf.mxu0  ;;  %v2281_v25 = vadd.f32 %v2280_v21, %v2279_v24  ;;  %2623 = vmatpush.bf16.msra.mxu1 %v3681_v18 }
 0x49e   :  { %v2033_v22 = vpop.f32.mrf.mxu1  ;;  %v3715_v20 = vld [vmem:[%s4445_s20] ss:$0 sm:$0xff]  ;;  %s2638_s20 = sshll.u32 %s4448_s23, 4  ;;  %s2639_s20 = int_to_ptr.hbm [resolvable:$true] %s2638_s20 }
 0x49f   :  { %v2283_v30 = vadd.f32 %v2282_v29, %v2281_v25  ;;  %2644 = dma.vmem_to_hbm [thread:$0]  %s2637_s13, 128, %s2639_s20, [#allocation4], %s4076_s28, %s4076_s28, %s4077_s17  }
 0x4a1   :  { %v1850_v26 = vpop.f32.mrf.mxu2  ;;  %v2285_v36 = vadd.f32 %v2284_v34, %v2283_v30  ;;  %2624 = vmatpush.bf16.msra.mxu1 %v3680_v19 }
 0x4a2   :  { %v3716_v26 = vld [vmem:[%s4447_s22] ss:$0 sm:$0xff] }
 0x4a3   :  { %v1911_v27 = vpop.f32.mrf.mxu3 }
 0x4a5   :  { %v2214_v31 = vpop.f32.mrf.mxu0 }
 0x4a6   :  { %v2275_v32 = vpop.f32.mrf.mxu1  ;;  %v2290_v44 = vsel %vm349_vm9, %v2214_v31, 0.0 }
 0x4a7   :  { %v2292_v48 = vsel %vm349_vm9, %v2275_v32, 0.0 }
 0x4a9   :  { %v2092_v35 = vpop.f32.mrf.mxu2 }
 0x4aa   :  { %v2286_v37 = vsel %vm349_vm9, %v2092_v35, 0.0 }
 0x4ab   :  { %v2287_v38 = vadd.f32 %v2286_v37, %v2285_v36  ;;  %v2153_v39 = vpop.f32.mrf.mxu3 }
 0x4ac   :  { %v2288_v41 = vsel %vm349_vm9, %v2153_v39, 0.0 }
 0x4ad   :  { %v2289_v42 = vadd.f32 %v2288_v41, %v2287_v38  ;;  %v2216_v43 = vpop.f32.mrf.mxu0 }
 0x4ae   :  { %v2277_v45 = vpop.f32.mrf.mxu1 }
 0x4af   :  { %v2291_v46 = vadd.f32 %v2290_v44, %v2289_v42 }
 0x4b1   :  { %v2293_v49 = vadd.f32 %v2292_v48, %v2291_v46  ;;  %v2094_v51 = vpop.f32.mrf.mxu2 }
 0x4b3   :  { %v2298_v50 = vadd.f32 %v3712_v47, %v2293_v49  ;;  %v2155_v52 = vpop.f32.mrf.mxu3 }
 0x4b5   :  { %v2299_v53 = vmax.f32 %v2298_v50, 0.0 }
 0x4b7   :  { %v2300_v54 = vpack.c.bf16 %v2299_v53, %v2299_v53 }
 0x4b9   :  { %2377 = vmatmul.bf16.vlgmr.msrb.gmra.mxu2 %v2300_v54 }
 0x53c   :  { %v2378_v0 = vpop.f32.mrf.mxu2 }
 0x53d   :  { %v2379_v1 = vadd.f32 %v3713_v11, %v2378_v0 }
 0x53f   :  { %v2382_v2 = vmax.f32 %v2379_v1, 0.0 }
 0x541   :  { %v2383_v62 = vpack.c.bf16 %v2382_v2, %v2382_v2 }
 0x543   :  { %2460 = vmatmul.bf16.vlgmr.msrb.gmra.mxu3 %v2383_v62 }
 0x544   :  { %v2380_v3 = vpop.f32.mrf.mxu2 }
 0x5c6   :  { %v2461_v13 = vpop.f32.mrf.mxu3 }
 0x5c7   :  { %v2462_v14 = vadd.f32 %v3714_v12, %v2461_v13 }
 0x5c9   :  { %v2465_v16 = vpack.c.bf16 %v2462_v14, %v2462_v14  ;;  %2630 = vst [vmem:[#allocation20] sm:$0x3] %v2462_v14 }
 0x5ca   :  { %2655 = dma.vmem_to_hbm [thread:$0]  %s2651_s9, 32, %s2653_s19, [#allocation21]  }
 0x5cb   :  { %2542 = vmatmul.bf16.vlgmr.msra.gmra.mxu0 %v2465_v16 }
 0x5ce   :  { %v2463_v17 = vpop.f32.mrf.mxu3 }
 0x648   :  { %v2543_v21 = vpop.f32.mrf.mxu0 }
 0x649   :  { %v2544_v22 = vadd.f32 %v3715_v20, %v2543_v21 }
 0x64b   :  { %v2547_v23 = vmax.f32 %v2544_v22, 0.0 }
 0x64d   :  { %v2548_v24 = vpack.c.bf16 %v2547_v23, %v2547_v23 }
 0x64f   :  { %2625 = vmatmul.bf16.vlgmr.msra.gmra.mxu1 %v2548_v24 }
 0x650   :  { %v2545_v25 = vpop.f32.mrf.mxu0 }
 0x6cc   :  { %v2626_v27 = vpop.f32.mrf.mxu1 }
 0x6cd   :  { %v2627_v28 = vadd.f32 %v3716_v26, %v2626_v27 }
 0x6cf   :  { %2631 = vst [vmem:[#allocation22] sm:$0x3] %v2627_v28 }
 0x6d0   :  { %2666 = dma.vmem_to_hbm [thread:$0]  %s2662_s11, 32, %s2664_s1, [#allocation21]  }
 0x6d4   :  { %v2628_v29 = vpop.f32.mrf.mxu1 }
 0x6d5   :  { %4057 = dma.done.wait [#allocation4], 128  }
 0x6d6   :  { %4058 = vsyncadd [#allocation4], 4294967168 }
 0x6d7   :  { %4059 = dma.done.wait [#allocation21], 64  }
 0x6d8   :  { %4060 = vsyncadd [#allocation21], 4294967232 }
 0x6d9   :  { %2679 = vsyncpa [#allocation3], 1 }
 0x6da   :  { %2680 = vsyncpa [#allocation6], 1 }
 0x6db   :  { %2681 = vsyncpa [#allocation9], 1 }
 0x6dc   :  { %2682 = vsyncpa [#allocation12], 1 }
 0x6dd   :  { %2683 = vsyncpa [#allocation15], 1 }
 0x6de   :  { %2684 = vsyncpa [#allocation18], 1 }
 0x6df   :  { %2685 = vsyncpa [#allocation4], 1 }
 0x6e0   :  { %2686 = vsyncpa [#allocation21], 1 }

// kernel: tpu_custom_call.1
= control target key start
LH: loop header
LB: loop body
LE: loop exit
PB: predicated region body
PF: predicated region fallthrough
CT: control target
= control target key end

     0   :  { %s4425_s0 = inlined_call_operand.vmem [shape: f32[8,2,4], index: 0, kind: input, shape index: {}]   ;;  %s4426_s1 = inlined_call_operand.vmem [shape: bf16[4,128], index: 1, kind: input, shape index: {}]   ;;  %s4427_s2 = inlined_call_operand.vmem [shape: f32[1,128], index: 2, kind: input, shape index: {}]   ;;  %s4428_s3 = inlined_call_operand.hbm [shape: bf16[384,128], index: 3, kind: input, shape index: {}]   ;;  %s4429_s4 = inlined_call_operand.vmem [shape: f32[1,128], index: 4, kind: input, shape index: {}]   ;;  %s4430_s5 = inlined_call_operand.hbm [shape: bf16[384,128], index: 5, kind: input, shape index: {}]   ;;  %s4431_s6 = inlined_call_operand.vmem [shape: f32[1,128], index: 6, kind: input, shape index: {}]   ;;  %s4432_s7 = inlined_call_operand.hbm [shape: bf16[384,128], index: 7, kind: input, shape index: {}]   ;;  %s4433_s8 = inlined_call_operand.vmem [shape: f32[1,128], index: 8, kind: input, shape index: {}]   ;;  %s4434_s9 = inlined_call_operand.hbm [shape: bf16[384,128], index: 9, kind: input, shape index: {}]   ;;  %s4435_s10 = inlined_call_operand.vmem [shape: f32[1,128], index: 10, kind: input, shape index: {}]   ;;  %s4436_s11 = inlined_call_operand.hbm [shape: bf16[128,128], index: 11, kind: input, shape index: {}]   ;;  %s4437_s12 = inlined_call_operand.vmem [shape: f32[1,128], index: 12, kind: input, shape index: {}]   ;;  %s4438_s13 = inlined_call_operand.hbm [shape: bf16[8,128,128], index: 13, kind: input, shape index: {}]   ;;  %s4439_s14 = inlined_call_operand.vmem [shape: f32[1,128], index: 14, kind: input, shape index: {}]   ;;  %s4440_s15 = inlined_call_operand.hbm [shape: bf16[128,128], index: 15, kind: input, shape index: {}]   ;;  %s4441_s16 = inlined_call_operand.vmem [shape: f32[1,128], index: 16, kind: input, shape index: {}]   ;;  %s4442_s17 = inlined_call_operand.hbm [shape: bf16[128,128], index: 17, kind: input, shape index: {}]   ;;  %s4443_s18 = inlined_call_operand.vmem [shape: f32[1,128], index: 18, kind: input, shape index: {}]   ;;  %s4444_s19 = inlined_call_operand.hbm [shape: bf16[128,128], index: 19, kind: input, shape index: {}]   ;;  %s4445_s20 = inlined_call_operand.vmem [shape: f32[1,128], index: 20, kind: input, shape index: {}]   ;;  %s4446_s21 = inlined_call_operand.hbm [shape: bf16[128,128], index: 21, kind: input, shape index: {}]   ;;  %s4447_s22 = inlined_call_operand.vmem [shape: f32[1,128], index: 22, kind: input, shape index: {}]   ;;  %s4448_s23 = inlined_call_operand.hbm [shape: bf16[8,2,128], index: 23, kind: output, shape index: {0}]   ;;  %s4449_s24 = inlined_call_operand.hbm [shape: f32[2,128], index: 24, kind: output, shape index: {1}]   ;;  %s4450_s25 = inlined_call_operand.hbm [shape: f32[2,128], index: 25, kind: output, shape index: {2}]  }
   0x1   :  { %4452 = sst [smem:[#allocation31_spill]] %s4425_s0 }
   0x2   :  { %4453 = sst [smem:[#allocation32_spill]] %s4426_s1 }
   0x3   :  { %4454 = sst [smem:[#allocation33_spill]] %s4427_s2 }
   0x4   :  { %4455 = sst [smem:[#allocation34_spill]] %s4428_s3 }
   0x5   :  { %4456 = sst [smem:[#allocation35_spill]] %s4429_s4 }
   0x6   :  { %4457 = sst [smem:[#allocation36_spill]] %s4430_s5 }
   0x7   :  { %4458 = sst [smem:[#allocation37_spill]] %s4431_s6 }
   0x8   :  { %4459 = sst [smem:[#allocation38_spill]] %s4432_s7 }
   0x9   :  { %4460 = sst [smem:[#allocation39_spill]] %s4433_s8 }
   0xa   :  { %4461 = sst [smem:[#allocation40_spill]] %s4434_s9 }
   0xb   :  { %31 = vsyncpa [#allocation3], 0 }
   0xc   :  { %32 = vsyncpa [#allocation6], 0 }
   0xd   :  { %33 = vsyncpa [#allocation9], 0 }
   0xe   :  { %34 = vsyncpa [#allocation12], 0 }
   0xf   :  { %35 = vsyncpa [#allocation15], 0 }
  0x10   :  { %36 = vsyncpa [#allocation18], 0 }
  0x11   :  { %37 = vsyncpa [#allocation4], 0 }
  0x12   :  { %38 = vsyncpa [#allocation21], 0  ;;  %s4462_s6 = sld [smem:[#allocation36_spill]]  ;;  %s4061_s7 = smov [#allocation5]  }
  0x13   :  { %s66_s3 = sshll.u32 %s4061_s7, 4  ;;  %s4463_s8 = sld [smem:[#allocation40_spill]]  ;;  %s67_s3 = int_to_ptr.vmem [resolvable:$true] %s66_s3 }
  0x14   :  { %s4062_s4 = smov 64   ;;  %s4063_s28 = smov 4  }
  0x15   :  { %s4064_s9 = smov [#allocation8]   ;;  %s124_s2 = sshll.u32 %s4438_s13, 4  ;;  %s125_s2 = int_to_ptr.hbm [resolvable:$true] %s124_s2 }
  0x16   :  { %s96_s5 = sshll.u32 %s4064_s9, 4  ;;  %s154_s26 = sshll.u32 %s4442_s17, 4  ;;  %s97_s5 = int_to_ptr.vmem [resolvable:$true] %s96_s5  ;;  %s155_s26 = int_to_ptr.hbm [resolvable:$true] %s154_s26 }
  0x17   :  { %s4065_s1 = smov [#allocation11]   ;;  %s4464_s0 = sld [smem:[#allocation34_spill]] }
  0x18   :  { %s64_s30 = sshll.u32 %s4462_s6, 4  ;;  %s4067_s7 = smov [#allocation2]   ;;  %s65_s30 = int_to_ptr.hbm [resolvable:$true] %s64_s30 }
  0x19   :  { %s94_s27 = sshll.u32 %s4463_s8, 4  ;;  %s126_s8 = sshll.u32 %s4065_s1, 4  ;;  %s95_s27 = int_to_ptr.hbm [resolvable:$true] %s94_s27  ;;  %s127_s8 = int_to_ptr.vmem [resolvable:$true] %s126_s8 }
  0x1a   :  { %72 = dma.hbm_to_vmem [thread:$0]  %s65_s30, 3072, %s67_s3, [#allocation6], %s4062_s4, %s4062_s4, %s4063_s28  }
  0x1b   :  { %102 = dma.hbm_to_vmem [thread:$0]  %s95_s27, 3072, %s97_s5, [#allocation9], %s4062_s4, %s4062_s4, %s4063_s28  }
  0x1c   :  { %132 = dma.hbm_to_vmem [thread:$0]  %s125_s2, 8192, %s127_s8, [#allocation12], %s4062_s4, %s4062_s4, %s4063_s28  }
  0x1d   :  { %s4066_s30 = smov [#allocation14]   ;;  %s49_s29 = sshll.u32 %s4464_s0, 4  ;;  %s50_s29 = int_to_ptr.hbm [resolvable:$true] %s49_s29 }
  0x1e   :  { %s156_s13 = sshll.u32 %s4066_s30, 4  ;;  %s4465_s5 = sld [smem:[#allocation38_spill]]  ;;  %s157_s13 = int_to_ptr.vmem [resolvable:$true] %s156_s13 }
  0x1f   :  { %162 = dma.hbm_to_vmem [thread:$0]  %s155_s26, 1024, %s157_s13, [#allocation15], %s4062_s4, %s4062_s4, %s4063_s28  }
  0x20   :  { %s51_s1 = sshll.u32 %s4067_s7, 4  ;;  %s4068_s2 = smov [#allocation7]   ;;  %s52_s1 = int_to_ptr.vmem [resolvable:$true] %s51_s1 }
  0x21   :  { %57 = dma.hbm_to_vmem [thread:$0]  %s50_s29, 3072, %s52_s1, [#allocation3], %s4062_s4, %s4062_s4, %s4063_s28  }
  0x22   :  { %s81_s8 = sshll.u32 %s4068_s2, 4  ;;  %s109_s9 = sshll.u32 %s4436_s11, 4  ;;  %s82_s8 = int_to_ptr.vmem [resolvable:$true] %s81_s8  ;;  %s110_s9 = int_to_ptr.hbm [resolvable:$true] %s109_s9 }
  0x23   :  { %s139_s0 = sshll.u32 %s4440_s15, 4  ;;  %s4069_s17 = smov [#allocation10]   ;;  %s140_s0 = int_to_ptr.hbm [resolvable:$true] %s139_s0 }
  0x24   :  { %s79_s6 = sshll.u32 %s4465_s5, 4  ;;  %s111_s27 = sshll.u32 %s4069_s17, 4  ;;  %s80_s6 = int_to_ptr.hbm [resolvable:$true] %s79_s6  ;;  %s112_s27 = int_to_ptr.vmem [resolvable:$true] %s111_s27 }
  0x25   :  { %87 = dma.hbm_to_vmem [thread:$0]  %s80_s6, 3072, %s82_s8, [#allocation6], %s4062_s4, %s4062_s4, %s4063_s28  }
  0x26   :  { %117 = dma.hbm_to_vmem [thread:$0]  %s110_s9, 1024, %s112_s27, [#allocation9], %s4062_s4, %s4062_s4, %s4063_s28  }
  0x27   :  { %s4070_s29 = smov [#allocation13]   ;;  %s169_s1 = sshll.u32 %s4444_s19, 4  ;;  %s170_s1 = int_to_ptr.hbm [resolvable:$true] %s169_s1 }
  0x28   :  { %s141_s11 = sshll.u32 %s4070_s29, 4  ;;  %s184_s2 = sshll.u32 %s4446_s21, 4  ;;  %s142_s11 = int_to_ptr.vmem [resolvable:$true] %s141_s11  ;;  %s185_s2 = int_to_ptr.hbm [resolvable:$true] %s184_s2 }
  0x29   :  { %147 = dma.hbm_to_vmem [thread:$0]  %s140_s0, 1024, %s142_s11, [#allocation12], %s4062_s4, %s4062_s4, %s4063_s28  }
  0x2a   :  { %s4071_s8 = smov [#allocation16]   ;;  %s4072_s3 = smov [#allocation17]  }
  0x2b   :  { %s171_s30 = sshll.u32 %s4071_s8, 4  ;;  %s186_s19 = sshll.u32 %s4072_s3, 4  ;;  %s172_s30 = int_to_ptr.vmem [resolvable:$true] %s171_s30  ;;  %s187_s19 = int_to_ptr.vmem [resolvable:$true] %s186_s19 }
  0x2c   :  { %177 = dma.hbm_to_vmem [thread:$0]  %s170_s1, 1024, %s172_s30, [#allocation15], %s4062_s4, %s4062_s4, %s4063_s28  }
  0x2d   :  { %192 = dma.hbm_to_vmem [thread:$0]  %s185_s2, 1024, %s187_s19, [#allocation18], %s4062_s4, %s4062_s4, %s4063_s28  }
  0x2e   :  { %4045 = dma.done.wait [#allocation3], 3072  }
  0x2f   :  { %4046 = vsyncadd [#allocation3], 4294964224 }
  0x30   :  { %4047 = dma.done.wait [#allocation6], 6144  }
  0x31   :  { %4048 = vsyncadd [#allocation6], 4294961152 }
  0x32   :  { %4049 = dma.done.wait [#allocation9], 4096  }
  0x33   :  { %4050 = vsyncadd [#allocation9], 4294963200 }
  0x34   :  { %4051 = dma.done.wait [#allocation12], 9216  }
  0x35   :  { %4052 = vsyncadd [#allocation12], 4294958080 }
  0x36   :  { %4053 = dma.done.wait [#allocation15], 2048  }
  0x37   :  { %4054 = vsyncadd [#allocation15], 4294965248 }
  0x38   :  { %4055 = dma.done.wait [#allocation18], 1024  }
  0x39   :  { %4056 = vsyncadd [#allocation18], 4294966272  ;;  %s4466_s26 = sld [smem:[#allocation31_spill]]  ;;  %v4073_v6 = vmov 0.0   ;;  %vm298_vm8 = vcmask 31744   ;;  %vm349_vm9 = vcmask 1041408  }
  0x3a   :  { %s4467_s3 = sld [smem:[#allocation32_spill]]  ;;  %v3503_v30 = vld [vmem:[#allocation2 + $0x78] sm:$0xff]  ;;  %v3502_v32 = vld [vmem:[#allocation2 + $0x70] sm:$0xff]  ;;  %v3501_v35 = vld [vmem:[#allocation2 + $0x68] sm:$0xff]  ;;  %s2652_s19 = sshll.u32 %s4449_s24, 4  ;;  %s2653_s19 = int_to_ptr.hbm [resolvable:$true] %s2652_s19 }
  0x3b   :  { %641 = vmatpush.bf16.msra.mxu2 %v3503_v30  ;;  %v3495_v31 = vld [vmem:[#allocation2 + $0x38] sm:$0xff]  ;;  %v3494_v34 = vld [vmem:[#allocation2 + $0x30] sm:$0xff]  ;;  %v3493_v37 = vld [vmem:[#allocation2 + $0x28] sm:$0xff]  ;;  %s4468_s9 = sld [smem:[#allocation33_spill]]  ;;  %s4074_s21 = smov [#allocation20]  }
  0x3c   :  { %v3511_v33 = vld [vmem:[#allocation2 + $0xb8] sm:$0xff]  ;;  %627 = vmatpush.bf16.msra.mxu1 %v3495_v31  ;;  %v3510_v36 = vld [vmem:[#allocation2 + $0xb0] sm:$0xff]  ;;  %v3500_v38 = vld [vmem:[#allocation2 + $0x60] sm:$0xff]  ;;  %s4469_s0 = sld [smem:[#allocation35_spill]]  ;;  %s4076_s28 = smov 16  }
  0x3d   :  { %655 = vmatpush.bf16.msra.mxu3 %v3511_v33  ;;  %v3509_v39 = vld [vmem:[#allocation2 + $0xa8] sm:$0xff]  ;;  %v3492_v40 = vld [vmem:[#allocation2 + $0x20] sm:$0xff]  ;;  %v3499_v41 = vld [vmem:[#allocation2 + $0x58] sm:$0xff]  ;;  %s4470_s17 = sld [smem:[#allocation37_spill]]  ;;  %s4078_s24 = smov [#allocation22]  }
  0x3e   :  { %v3508_v42 = vld [vmem:[#allocation2 + $0xa0] sm:$0xff]  ;;  %v3491_v43 = vld [vmem:[#allocation2 + $0x18] sm:$0xff]  ;;  %v3498_v44 = vld [vmem:[#allocation2 + $0x50] sm:$0xff]  ;;  %s4471_s11 = sld [smem:[#allocation39_spill]]  ;;  %s2663_s1 = sshll.u32 %s4450_s25, 4  ;;  %s2664_s1 = int_to_ptr.hbm [resolvable:$true] %s2663_s1 }
  0x3f   :  { %v247_v0 = vld [vmem:[%s4466_s26] sm:$0x3]  ;;  %v248_v1 = vld [vmem:[%s4466_s26 + $0x2] sm:$0x3]  ;;  %v249_v2 = vld [vmem:[%s4466_s26 + $0x4] sm:$0x3]  ;;  %642 = vmatpush.bf16.msra.mxu2 %v3502_v32 }
  0x40   :  { %v250_v3 = vld [vmem:[%s4466_s26 + $0x6] sm:$0x3]  ;;  %vm255_vm0 = vcmp.ne.f32.partialorder %v247_v0, %v247_v0  ;;  %vm256_vm1 = vcmp.ne.f32.partialorder %v248_v1, %v248_v1  ;;  %vm257_vm2 = vcmp.ne.f32.partialorder %v249_v2, %v249_v2  ;;  %v251_v4 = vld [vmem:[%s4466_s26 + $0x8] sm:$0x3]  ;;  %v252_v5 = vld [vmem:[%s4466_s26 + $0xa] sm:$0x3]  ;;  %628 = vmatpush.bf16.msra.mxu1 %v3494_v34 }
  0x41   :  { %vm258_vm3 = vcmp.ne.f32.partialorder %v250_v3, %v250_v3  ;;  %v263_v7 = vsel %vm255_vm0, 1.0, %v4073_v6  ;;  %v264_v8 = vsel %vm256_vm1, 1.0, %v4073_v6  ;;  %v265_v9 = vsel %vm257_vm2, 1.0, %v4073_v6  ;;  %v253_v10 = vld [vmem:[%s4466_s26 + $0xc] sm:$0x3]  ;;  %656 = vmatpush.bf16.msra.mxu3 %v3510_v36  ;;  %v3507_v45 = vld [vmem:[#allocation2 + $0x98] sm:$0xff] }
  0x42   :  { %v266_v11 = vsel %vm258_vm3, 1.0, %v4073_v6  ;;  %279 = vst [vmem:[#allocation1] ss:$4 sm:$0xff] %v263_v7  ;;  %v254_v12 = vld [vmem:[%s4466_s26 + $0xe] sm:$0x3]  ;;  %vm259_vm4 = vcmp.ne.f32.partialorder %v251_v4, %v251_v4  ;;  %vm260_vm5 = vcmp.ne.f32.partialorder %v252_v5, %v252_v5  ;;  %vm261_vm6 = vcmp.ne.f32.partialorder %v253_v10, %v253_v10  ;;  %v3490_v47 = vld [vmem:[#allocation2 + $0x10] sm:$0xff] }
  0x43   :  { %281 = vst [vmem:[#allocation1 + $0x1] ss:$4 sm:$0xff] %v264_v8  ;;  %vm262_vm7 = vcmp.ne.f32.partialorder %v254_v12, %v254_v12  ;;  %v267_v13 = vsel %vm259_vm4, 1.0, %v4073_v6  ;;  %v268_v14 = vsel %vm260_vm5, 1.0, %v4073_v6  ;;  %v269_v15 = vsel %vm261_vm6, 1.0, %v4073_v6  ;;  %643 = vmatpush.bf16.msra.mxu2 %v3501_v35  ;;  %v3497_v48 = vld [vmem:[#allocation2 + $0x48] sm:$0xff] }
  0x44   :  { %283 = vst [vmem:[#allocation1 + $0x2] ss:$4 sm:$0xff] %v265_v9  ;;  %v270_v16 = vsel %vm262_vm7, 1.0, %v4073_v6  ;;  %v341_v21 = vld [vmem:[%s4467_s3] sm:$0x3]  ;;  %629 = vmatpush.bf16.msra.mxu1 %v3493_v37  ;;  %v3506_v49 = vld [vmem:[#allocation2 + $0x90] sm:$0xff]  ;;  %v236_v8 = vlaneseq }
  0x45   :  { %285 = vst [vmem:[#allocation1 + $0x3] ss:$4 sm:$0xff] %v266_v11  ;;  %v351_v22 = vsel %vm349_vm9, %v341_v21, 0  ;;  %657 = vmatpush.bf16.msra.mxu3 %v3509_v39  ;;  %v3706_v46 = vld [vmem:[%s4468_s9] ss:$0 sm:$0xff]  ;;  %v3489_v52 = vld [vmem:[#allocation2 + $0x8] sm:$0xff] }
  0x46   :  { %287 = vst [vmem:[#allocation1 + $0x20] ss:$4 sm:$0xff] %v267_v13  ;;  %360 = vmatpush.bf16.msra.mxu0 %v351_v22  ;;  %v3496_v53 = vld [vmem:[#allocation2 + $0x40] sm:$0xff]  ;;  %v3505_v54 = vld [vmem:[#allocation2 + $0x88] sm:$0xff]  ;;  %v4316_v11 = vshrl.u32 %v236_v8, 7  ;;  %s2650_s9 = sshll.u32 %s4074_s21, 4  ;;  %s2651_s9 = int_to_ptr.vmem [resolvable:$true] %s2650_s9 }
  0x47   :  { %289 = vst [vmem:[#allocation1 + $0x21] ss:$4 sm:$0xff] %v268_v14  ;;  %644 = vmatpush.bf16.msra.mxu2 %v3500_v38  ;;  %v3488_v58 = vld [vmem:[#allocation2] sm:$0xff]  ;;  %v3529_v8 = vld [vmem:[#allocation5 + $0x88] sm:$0xff]  ;;  %s4075_s26 = smov [#allocation19]  }
  0x48   :  { %291 = vst [vmem:[#allocation1 + $0x22] ss:$4 sm:$0xff] %v269_v15  ;;  %630 = vmatpush.bf16.msra.mxu1 %v3492_v40  ;;  %v3504_v59 = vld [vmem:[#allocation2 + $0x80] sm:$0xff]  ;;  %v4319_v15 = vadd.s32 8, %v4316_v11  ;;  %vm239_vm12 = vcmp.ge.s32.totalorder %v4316_v11, 2  ;;  %vm387_vm13 = vcmp.lt.s32.totalorder %v4316_v11, 2 }
  0x49   :  { %293 = vst [vmem:[#allocation1 + $0x23] ss:$4 sm:$0xff] %v270_v16  ;;  %658 = vmatpush.bf16.msra.mxu3 %v3508_v42  ;;  %vm400_vm14 = vcmp.lt.s32.totalorder %v4316_v11, 6  ;;  %v3519_v42 = vld [vmem:[#allocation5 + $0x38] sm:$0xff]  ;;  %vm1066_vm1 = vcmp.lt.s32.totalorder %v4316_v11, 4  ;;  %vm243_vm2 = vcmp.ge.s32.totalorder %v4316_v11, 4 }
  0x4a   :  { %vm242_vm15 = vcmp.lt.s32.totalorder %v4319_v15, 14  ;;  %919 = vmatpush.bf16.msrb.mxu0 %v3519_v42  ;;  %vm246_vm0 = vcmp.lt.s32.totalorder %v4319_v15, 12  ;;  %v3617_v11 = vld [vmem:[#allocation11 + $0xc8] sm:$0xff]  ;;  %v3592_v15 = vld [vmem:[#allocation11] sm:$0xff]  ;;  %s2636_s13 = sshll.u32 %s4075_s26, 4  ;;  %s2637_s13 = int_to_ptr.vmem [resolvable:$true] %s2636_s13 }
  0x4b   :  { %645 = vmatpush.bf16.msra.mxu2 %v3499_v41  ;;  %v3527_v41 = vld [vmem:[#allocation5 + $0x78] sm:$0xff] }
  0x4c   :  { %v294_v17 = vld.sshfl [vmem:[#allocation1] sm:$0xff pattern:$0x73625140]  ;;  %631 = vmatpush.bf16.msra.mxu1 %v3491_v43  ;;  %v3526_v43 = vld [vmem:[#allocation5 + $0x70] sm:$0xff] }
  0x4d   :  { %v299_v18 = vsel %vm298_vm8, %v294_v17, -inf  ;;  %319 = vst [vmem:[#allocation1] ss:$4 sm:$0xff] %v247_v0  ;;  %659 = vmatpush.bf16.msra.mxu3 %v3507_v45  ;;  %v3518_v45 = vld [vmem:[#allocation5 + $0x30] sm:$0xff] }
  0x4e   :  { %321 = vst [vmem:[#allocation1 + $0x1] ss:$4 sm:$0xff] %v248_v1  ;;  %300 = vmax.xlane.f32.xlu0 %v299_v18  ;;  %920 = vmatpush.bf16.msrb.mxu0 %v3518_v45 }
  0x4f   :  { %323 = vst [vmem:[#allocation1 + $0x2] ss:$4 sm:$0xff] %v249_v2  ;;  %646 = vmatpush.bf16.msra.mxu2 %v3498_v44  ;;  %v3535_v44 = vld [vmem:[#allocation5 + $0xb8] sm:$0xff] }
  0x50   :  { %325 = vst [vmem:[#allocation1 + $0x3] ss:$4 sm:$0xff] %v250_v3  ;;  %v295_v19 = vld.sshfl [vmem:[#allocation1 + $0x20] sm:$0xff pattern:$0x73625140]  ;;  %632 = vmatpush.bf16.msra.mxu1 %v3490_v47  ;;  %v3534_v47 = vld [vmem:[#allocation5 + $0xb0] sm:$0xff] }
  0x51   :  { %327 = vst [vmem:[#allocation1 + $0x20] ss:$4 sm:$0xff] %v251_v4  ;;  %v302_v20 = vsel %vm298_vm8, %v295_v19, -inf  ;;  %660 = vmatpush.bf16.msra.mxu3 %v3506_v49  ;;  %v3524_v49 = vld [vmem:[#allocation5 + $0x60] sm:$0xff] }
  0x52   :  { %329 = vst [vmem:[#allocation1 + $0x21] ss:$4 sm:$0xff] %v252_v5 }
  0x53   :  { %331 = vst [vmem:[#allocation1 + $0x22] ss:$4 sm:$0xff] %v253_v10  ;;  %647 = vmatpush.bf16.msra.mxu2 %v3497_v48  ;;  %v3517_v48 = vld [vmem:[#allocation5 + $0x28] sm:$0xff] }
  0x54   :  { %333 = vst [vmem:[#allocation1 + $0x23] ss:$4 sm:$0xff] %v254_v12  ;;  %633 = vmatpush.bf16.msra.mxu1 %v3489_v52  ;;  %921 = vmatpush.bf16.msrb.mxu0 %v3517_v48  ;;  %v3707_v52 = vld [vmem:[%s4469_s0] ss:$0 sm:$0xff] }
  0x55   :  { %661 = vmatpush.bf16.msra.mxu3 %v3505_v54  ;;  %v3523_v54 = vld [vmem:[#allocation5 + $0x58] sm:$0xff] }
  0x56   :  { %303 = vmax.xlane.f32.xlu0 %v302_v20 }
  0x57   :  { %v334_v24 = vld.sshfl [vmem:[#allocation1] sm:$0xff pattern:$0x73625140]  ;;  %648 = vmatpush.bf16.msra.mxu2 %v3496_v53  ;;  %v3516_v53 = vld [vmem:[#allocation5 + $0x20] sm:$0xff] }
  0x58   :  { %634 = vmatpush.bf16.msra.mxu1 %v3488_v58  ;;  %922 = vmatpush.bf16.msrb.mxu0 %v3516_v53 }
  0x59   :  { %662 = vmatpush.bf16.msra.mxu3 %v3504_v59  ;;  %v3515_v59 = vld [vmem:[#allocation5 + $0x18] sm:$0xff] }
  0x5b   :  { %v335_v25 = vld.sshfl [vmem:[#allocation1 + $0x20] sm:$0xff pattern:$0x73625140]  ;;  %947 = vmatpush.bf16.msrb.mxu2 %v3535_v44 }
  0x5c   :  { %933 = vmatpush.bf16.msrb.mxu1 %v3527_v41  ;;  %923 = vmatpush.bf16.msrb.mxu0 %v3515_v59 }
  0x5f   :  { %948 = vmatpush.bf16.msrb.mxu2 %v3534_v47 }
  0x60   :  { %934 = vmatpush.bf16.msrb.mxu1 %v3526_v43 }
  0xc1   :  { %v301_v23 = vpop.xlane.xlu0 %300 }
  0xc2   :  { %vm305_vm10 = vcmp.gt.f32.partialorder %v301_v23, 0.0 }
  0xc3   :  { %v338_v27 = vsel %vm305_vm10, 0.0, %v334_v24 }
  0xc9   :  { %v304_v26 = vpop.xlane.xlu0 %303 }
  0xca   :  { %vm306_vm11 = vcmp.gt.f32.partialorder %v304_v26, 0.0 }
  0xcb   :  { %v339_v28 = vsel %vm306_vm11, 0.0, %v335_v25 }
  0xcc   :  { %v340_v29 = vpack.c.bf16 %v339_v28, %v338_v27 }
  0xce   :  { %2687 = vmatmul.msk.bf16.vlgmr.msra.gmra.mxu0 %vm298_vm8, %v340_v29 }
 0x14b   :  { %v362_v50 = vpop.f32.mrf.mxu0 }
 0x14c   :  { %v4303_v51 = vadd.f32 %v3706_v46, %v362_v50  ;;  %v3533_v50 = vld [vmem:[#allocation5 + $0xa8] sm:$0xff] }
 0x14d   :  { %949 = vmatpush.bf16.msrb.mxu2 %v3533_v50 }
 0x14e   :  { %v367_v55 = vmul.f32 %v4303_v51, %v4303_v51 }
 0x150   :  { %v369_v56 = vmul.f32 %v367_v55, %v4303_v51  ;;  %v3532_v55 = vld [vmem:[#allocation5 + $0xa0] sm:$0xff] }
 0x151   :  { %950 = vmatpush.bf16.msrb.mxu2 %v3532_v55 }
 0x152   :  { %v371_v57 = vmul.f32 0.044715, %v369_v56 }
 0x153   :  { %v364_v60 = vpop.f32.mrf.mxu0 }
 0x154   :  { %v373_v61 = vadd.f32 %v371_v57, %v4303_v51  ;;  %v4309_v62 = vadd.f32 %v3706_v46, %v364_v60  ;;  %v3525_v46 = vld [vmem:[#allocation5 + $0x68] sm:$0xff]  ;;  %v3522_v60 = vld [vmem:[#allocation5 + $0x50] sm:$0xff] }
 0x155   :  { %935 = vmatpush.bf16.msrb.mxu1 %v3525_v46 }
 0x156   :  { %v368_v63 = vmul.f32 %v4309_v62, %v4309_v62  ;;  %v375_v0 = vmul.f32 0.7978846, %v373_v61  ;;  %v3531_v61 = vld [vmem:[#allocation5 + $0x98] sm:$0xff] }
 0x157   :  { %951 = vmatpush.bf16.msrb.mxu2 %v3531_v61 }
 0x158   :  { %v370_v1 = vmul.f32 %v368_v63, %v4309_v62  ;;  %3717 = vtanh.f32 %v375_v0  ;;  %v3514_v0 = vld [vmem:[#allocation5 + $0x10] sm:$0xff] }
 0x159   :  { %936 = vmatpush.bf16.msrb.mxu1 %v3524_v49  ;;  %924 = vmatpush.bf16.msrb.mxu0 %v3514_v0 }
 0x15a   :  { %v372_v2 = vmul.f32 0.044715, %v370_v1  ;;  %v3521_v1 = vld [vmem:[#allocation5 + $0x48] sm:$0xff] }
 0x15c   :  { %v374_v3 = vadd.f32 %v372_v2, %v4309_v62  ;;  %v3530_v2 = vld [vmem:[#allocation5 + $0x90] sm:$0xff] }
 0x15d   :  { %937 = vmatpush.bf16.msrb.mxu1 %v3523_v54  ;;  %952 = vmatpush.bf16.msrb.mxu2 %v3530_v2  ;;  %v3540_v2 = vld [vmem:[#allocation10 + $0x20] sm:$0xff] }
 0x15e   :  { %v3718_v4 = vpop.eup %3717  ;;  %v376_v5 = vmul.f32 0.7978846, %v374_v3 }
 0x15f   :  { %v379_v6 = vadd.f32 1.0, %v3718_v4 }
 0x160   :  { %3719 = vtanh.f32 %v376_v5 }
 0x161   :  { %v381_v7 = vmul.f32 0.5, %v379_v6  ;;  %938 = vmatpush.bf16.msrb.mxu1 %v3522_v60  ;;  %v3513_v6 = vld [vmem:[#allocation5 + $0x8] sm:$0xff]  ;;  %953 = vmatpush.bf16.msrb.mxu2 %v3529_v8  ;;  %v3551_v8 = vld [vmem:[#allocation7 + $0x38] sm:$0xff] }
 0x162   :  { %925 = vmatpush.bf16.msrb.mxu0 %v3513_v6  ;;  %v3559_v6 = vld [vmem:[#allocation7 + $0x78] sm:$0xff] }
 0x163   :  { %v383_v10 = vmul.f32 %v381_v7, %v4303_v51  ;;  %v3520_v7 = vld [vmem:[#allocation5 + $0x40] sm:$0xff] }
 0x165   :  { %v411_v14 = vpack.c.bf16 %v383_v10, %v383_v10  ;;  %v385_v17 = vrot.slane %v383_v10, 6  ;;  %v398_v20 = vrot.slane %v383_v10, 2  ;;  %939 = vmatpush.bf16.msrb.mxu1 %v3521_v1  ;;  %v3541_v1 = vld [vmem:[#allocation10 + $0x28] sm:$0xff] }
 0x166   :  { %v3720_v9 = vpop.eup %3719 }
 0x167   :  { %v380_v12 = vadd.f32 1.0, %v3720_v9  ;;  %v421_v22 = vunpack.c.l.b16 %v411_v14 }
 0x169   :  { %v382_v13 = vmul.f32 0.5, %v380_v12  ;;  %940 = vmatpush.bf16.msrb.mxu1 %v3520_v7  ;;  %v3536_v7 = vld [vmem:[#allocation10] sm:$0xff] }
 0x16b   :  { %v384_v16 = vmul.f32 %v382_v13, %v4309_v62 }
 0x16d   :  { %v412_v18 = vpack.c.bf16 %v384_v16, %v384_v16  ;;  %v386_v19 = vrot.slane %v384_v16, 6  ;;  %v399_v21 = vrot.slane %v384_v16, 2 }
 0x16f   :  { %v422_v23 = vunpack.c.l.b16 %v412_v18  ;;  %v388_v24 = vsel %vm387_vm13, %v385_v17, %v386_v19  ;;  %v389_v25 = vsel %vm387_vm13, %v386_v19, %v385_v17  ;;  %v401_v26 = vsel %vm400_vm14, %v398_v20, %v399_v21  ;;  %v3512_v17 = vld [vmem:[#allocation5] sm:$0xff] }
 0x170   :  { %v394_v27 = vsel %vm239_vm12, %v389_v25, 0.0  ;;  %v397_v28 = vpack.c.bf16 %v388_v24, %v388_v24  ;;  %v402_v29 = vsel %vm400_vm14, %v399_v21, %v398_v20  ;;  %v409_v30 = vpack.c.bf16 %v401_v26, %v401_v26  ;;  %v3528_v18 = vld [vmem:[#allocation5 + $0x80] sm:$0xff]  ;;  %926 = vmatpush.bf16.msrb.mxu0 %v3512_v17  ;;  %v3543_v25 = vld [vmem:[#allocation10 + $0x38] sm:$0xff] }
 0x171   :  { %v423_v31 = vpack.c.b16 %v422_v23, %v421_v22  ;;  %v396_v32 = vpack.c.bf16 %v394_v27, %v394_v27  ;;  %v408_v33 = vsel %vm242_vm15, %v402_v29, 0.0  ;;  %954 = vmatpush.bf16.msrb.mxu2 %v3528_v18  ;;  %1032 = vmatpush.bf16.msrb.mxu3 %v3543_v25  ;;  %v3542_v27 = vld [vmem:[#allocation10 + $0x30] sm:$0xff]  ;;  %v3556_v17 = vld [vmem:[#allocation7 + $0x60] sm:$0xff]  ;;  %v3565_v18 = vld [vmem:[#allocation7 + $0xa8] sm:$0xff] }
 0x172   :  { %v416_v34 = vunpack.c.l.b16 %v397_v28  ;;  %v410_v35 = vpack.c.bf16 %v408_v33, %v408_v33  ;;  %v427_v36 = vunpack.c.l.b16 %v409_v30  ;;  %v3547_v25 = vld [vmem:[#allocation7 + $0x18] sm:$0xff] }
 0x173   :  { %649 = vmatmul.bf16.vlgmr.msra.gmra.mxu2 %v423_v31  ;;  %v415_v37 = vunpack.c.l.b16 %v396_v32 }
 0x174   :  { %v428_v38 = vunpack.c.l.b16 %v410_v35  ;;  %1301 = vmatpush.bf16.msra.mxu0 %v3551_v8 }
 0x175   :  { %v417_v39 = vpack.c.b16 %v416_v34, %v415_v37  ;;  %1033 = vmatpush.bf16.msrb.mxu3 %v3542_v27 }
 0x176   :  { %v429_v40 = vpack.c.b16 %v428_v38, %v427_v36 }
 0x177   :  { %635 = vmatmul.bf16.vlgmr.msra.gmra.mxu1 %v417_v39 }
 0x178   :  { %663 = vmatmul.bf16.vlgmr.msra.gmra.mxu3 %v429_v40  ;;  %1315 = vmatpush.bf16.msra.mxu1 %v3559_v6 }
 0x179   :  { %1034 = vmatpush.bf16.msrb.mxu3 %v3541_v1 }
 0x17d   :  { %1035 = vmatpush.bf16.msrb.mxu3 %v3540_v2 }
 0x1f4   :  { %v636_v56 = vpop.f32.mrf.mxu1 }
 0x1f5   :  { %v637_v57 = vadd.f32 %v3707_v52, %v636_v56 }
 0x1f6   :  { %v650_v58 = vpop.f32.mrf.mxu2 }
 0x1f7   :  { %v651_v63 = vadd.f32 %v650_v58, %v637_v57 }
 0x1fb   :  { %v664_v3 = vpop.f32.mrf.mxu3 }
 0x1fc   :  { %v665_v4 = vadd.f32 %v664_v3, %v651_v63  ;;  %v638_v5 = vpop.f32.mrf.mxu1  ;;  %v3539_v3 = vld [vmem:[#allocation10 + $0x18] sm:$0xff] }
 0x1fd   :  { %v639_v10 = vadd.f32 %v3707_v52, %v638_v5  ;;  %1036 = vmatpush.bf16.msrb.mxu3 %v3539_v3  ;;  %v3537_v5 = vld [vmem:[#allocation10 + $0x8] sm:$0xff] }
 0x1fe   :  { %v669_v9 = vmul.f32 %v665_v4, %v665_v4  ;;  %v652_v12 = vpop.f32.mrf.mxu2 }
 0x1ff   :  { %v653_v16 = vadd.f32 %v652_v12, %v639_v10  ;;  %v3567_v10 = vld [vmem:[#allocation7 + $0xb8] sm:$0xff]  ;;  %v3550_v12 = vld [vmem:[#allocation7 + $0x30] sm:$0xff] }
 0x200   :  { %v671_v13 = vmul.f32 %v669_v9, %v665_v4  ;;  %v3558_v9 = vld [vmem:[#allocation7 + $0x70] sm:$0xff]  ;;  %1329 = vmatpush.bf16.msra.mxu2 %v3567_v10  ;;  %1302 = vmatpush.bf16.msra.mxu0 %v3550_v12 }
 0x201   :  { %1316 = vmatpush.bf16.msra.mxu1 %v3558_v9 }
 0x202   :  { %v673_v14 = vmul.f32 0.044715, %v671_v13  ;;  %v3557_v13 = vld [vmem:[#allocation7 + $0x68] sm:$0xff] }
 0x203   :  { %v666_v19 = vpop.f32.mrf.mxu3 }
 0x204   :  { %v675_v20 = vadd.f32 %v673_v14, %v665_v4  ;;  %v667_v21 = vadd.f32 %v666_v19, %v653_v16  ;;  %v3566_v14 = vld [vmem:[#allocation7 + $0xb0] sm:$0xff]  ;;  %v3549_v16 = vld [vmem:[#allocation7 + $0x28] sm:$0xff]  ;;  %v3708_v19 = vld [vmem:[%s4470_s17] ss:$0 sm:$0xff]  ;;  %s4077_s17 = smov 1  }
 0x205   :  { %1317 = vmatpush.bf16.msra.mxu1 %v3557_v13  ;;  %1330 = vmatpush.bf16.msra.mxu2 %v3566_v14 }
 0x206   :  { %v677_v22 = vmul.f32 0.7978846, %v675_v20  ;;  %v670_v23 = vmul.f32 %v667_v21, %v667_v21  ;;  %1303 = vmatpush.bf16.msra.mxu0 %v3549_v16  ;;  %v3548_v20 = vld [vmem:[#allocation7 + $0x20] sm:$0xff] }
 0x208   :  { %3721 = vtanh.f32 %v677_v22  ;;  %v672_v24 = vmul.f32 %v670_v23, %v667_v21  ;;  %v3564_v22 = vld [vmem:[#allocation7 + $0xa0] sm:$0xff] }
 0x209   :  { %1318 = vmatpush.bf16.msra.mxu1 %v3556_v17  ;;  %1331 = vmatpush.bf16.msra.mxu2 %v3565_v18 }
 0x20a   :  { %v674_v26 = vmul.f32 0.044715, %v672_v24  ;;  %1304 = vmatpush.bf16.msra.mxu0 %v3548_v20 }
 0x20c   :  { %v676_v28 = vadd.f32 %v674_v26, %v667_v21  ;;  %v3554_v26 = vld [vmem:[#allocation7 + $0x50] sm:$0xff] }
 0x20d   :  { %1332 = vmatpush.bf16.msra.mxu2 %v3564_v22 }
 0x20e   :  { %v3722_v29 = vpop.eup %3721  ;;  %v678_v30 = vmul.f32 0.7978846, %v676_v28  ;;  %v3563_v28 = vld [vmem:[#allocation7 + $0x98] sm:$0xff]  ;;  %1305 = vmatpush.bf16.msra.mxu0 %v3547_v25 }
 0x20f   :  { %v681_v31 = vadd.f32 1.0, %v3722_v29  ;;  %v3575_v25 = vld [vmem:[#allocation8 + $0x38] sm:$0xff] }
 0x210   :  { %3723 = vtanh.f32 %v678_v30  ;;  %v3546_v30 = vld [vmem:[#allocation7 + $0x10] sm:$0xff] }
 0x211   :  { %v683_v32 = vmul.f32 0.5, %v681_v31  ;;  %v3553_v31 = vld [vmem:[#allocation7 + $0x48] sm:$0xff]  ;;  %1333 = vmatpush.bf16.msra.mxu2 %v3563_v28  ;;  %v3574_v28 = vld [vmem:[#allocation8 + $0x30] sm:$0xff] }
 0x212   :  { %1306 = vmatpush.bf16.msra.mxu0 %v3546_v30  ;;  %v3590_v30 = vld [vmem:[#allocation8 + $0xb0] sm:$0xff] }
 0x213   :  { %v685_v34 = vmul.f32 %v683_v32, %v665_v4  ;;  %v3538_v4 = vld [vmem:[#allocation10 + $0x10] sm:$0xff] }
 0x214   :  { %1037 = vmatpush.bf16.msrb.mxu3 %v3538_v4 }
 0x215   :  { %v703_v37 = vpack.c.bf16 %v685_v34, %v685_v34  ;;  %v687_v39 = vrot.slane %v685_v34, 6  ;;  %v695_v42 = vrot.slane %v685_v34, 2 }
 0x216   :  { %v3724_v33 = vpop.eup %3723 }
 0x217   :  { %v682_v35 = vadd.f32 1.0, %v3724_v33  ;;  %v713_v44 = vunpack.c.l.b16 %v703_v37  ;;  %v3562_v33 = vld [vmem:[#allocation7 + $0x90] sm:$0xff] }
 0x218   :  { %1038 = vmatpush.bf16.msrb.mxu3 %v3537_v5  ;;  %1334 = vmatpush.bf16.msra.mxu2 %v3562_v33  ;;  %v3589_v33 = vld [vmem:[#allocation8 + $0xa8] sm:$0xff] }
 0x219   :  { %v684_v36 = vmul.f32 0.5, %v682_v35 }
 0x21b   :  { %v686_v38 = vmul.f32 %v684_v36, %v667_v21  ;;  %v3555_v21 = vld [vmem:[#allocation7 + $0x58] sm:$0xff] }
 0x21c   :  { %1039 = vmatpush.bf16.msrb.mxu3 %v3536_v7  ;;  %1319 = vmatpush.bf16.msra.mxu1 %v3555_v21 }
 0x21d   :  { %v704_v40 = vpack.c.bf16 %v686_v38, %v686_v38  ;;  %v688_v41 = vrot.slane %v686_v38, 6  ;;  %v696_v43 = vrot.slane %v686_v38, 2  ;;  %v3545_v38 = vld [vmem:[#allocation7 + $0x8] sm:$0xff] }
 0x21e   :  { %1307 = vmatpush.bf16.msra.mxu0 %v3545_v38 }
 0x21f   :  { %v714_v45 = vunpack.c.l.b16 %v704_v40  ;;  %v689_v46 = vsel %vm387_vm13, %v687_v39, %v688_v41  ;;  %v690_v47 = vsel %vm387_vm13, %v688_v41, %v687_v39  ;;  %v697_v48 = vsel %vm400_vm14, %v695_v42, %v696_v43  ;;  %v3552_v39 = vld [vmem:[#allocation7 + $0x40] sm:$0xff]  ;;  %v3561_v40 = vld [vmem:[#allocation7 + $0x88] sm:$0xff] }
 0x220   :  { %v691_v49 = vsel %vm239_vm12, %v690_v47, 0.0  ;;  %v694_v50 = vpack.c.bf16 %v689_v46, %v689_v46  ;;  %v698_v52 = vsel %vm400_vm14, %v696_v43, %v695_v42  ;;  %v701_v53 = vpack.c.bf16 %v697_v48, %v697_v48  ;;  %1320 = vmatpush.bf16.msra.mxu1 %v3554_v26  ;;  %1335 = vmatpush.bf16.msra.mxu2 %v3561_v40  ;;  %v3544_v48 = vld [vmem:[#allocation7] sm:$0xff]  ;;  %v3582_v26 = vld [vmem:[#allocation8 + $0x70] sm:$0xff]  ;;  %v3571_v40 = vld [vmem:[#allocation8 + $0x18] sm:$0xff] }
 0x221   :  { %v715_v54 = vpack.c.b16 %v714_v45, %v713_v44  ;;  %v693_v55 = vpack.c.bf16 %v691_v49, %v691_v49  ;;  %v700_v56 = vsel %vm242_vm15, %v698_v52, 0.0  ;;  %v3560_v49 = vld [vmem:[#allocation7 + $0x80] sm:$0xff]  ;;  %1589 = vmatpush.bf16.msra.mxu3 %v3575_v25 }
 0x222   :  { %v708_v57 = vunpack.c.l.b16 %v694_v50  ;;  %v702_v58 = vpack.c.bf16 %v700_v56, %v700_v56  ;;  %v719_v59 = vunpack.c.l.b16 %v701_v53  ;;  %1308 = vmatpush.bf16.msra.mxu0 %v3544_v48  ;;  %v3612_v25 = vld [vmem:[#allocation11 + $0xa0] sm:$0xff] }
 0x223   :  { %941 = vmatmul.bf16.vlgmr.msrb.gmra.mxu1 %v715_v54  ;;  %v707_v60 = vunpack.c.l.b16 %v693_v55 }
 0x224   :  { %v720_v61 = vunpack.c.l.b16 %v702_v58  ;;  %1321 = vmatpush.bf16.msra.mxu1 %v3553_v31  ;;  %1336 = vmatpush.bf16.msra.mxu2 %v3560_v49  ;;  %v3573_v31 = vld [vmem:[#allocation8 + $0x28] sm:$0xff] }
 0x225   :  { %v709_v63 = vpack.c.b16 %v708_v57, %v707_v60  ;;  %1590 = vmatpush.bf16.msra.mxu3 %v3574_v28  ;;  %v3595_v28 = vld [vmem:[#allocation11 + $0x18] sm:$0xff] }
 0x226   :  { %v721_v0 = vpack.c.b16 %v720_v61, %v719_v59 }
 0x227   :  { %927 = vmatmul.bf16.vlgmr.msrb.gmra.mxu0 %v709_v63 }
 0x228   :  { %955 = vmatmul.bf16.vlgmr.msrb.gmra.mxu2 %v721_v0  ;;  %1322 = vmatpush.bf16.msra.mxu1 %v3552_v39 }
 0x229   :  { %1591 = vmatpush.bf16.msra.mxu3 %v3573_v31  ;;  %v3611_v31 = vld [vmem:[#allocation11 + $0x98] sm:$0xff] }
 0x2a0   :  { %v942_v27 = vpop.f32.mrf.mxu1 }
 0x2a4   :  { %v928_v23 = vpop.f32.mrf.mxu0 }
 0x2a5   :  { %v929_v24 = vadd.f32 %v3708_v19, %v928_v23 }
 0x2a7   :  { %v943_v29 = vadd.f32 %v942_v27, %v929_v24  ;;  %v3583_v24 = vld [vmem:[#allocation8 + $0x78] sm:$0xff] }
 0x2a8   :  { %v944_v42 = vpop.f32.mrf.mxu1  ;;  %1603 = vmatpush.bf16.msrb.mxu0 %v3583_v24  ;;  %v3591_v27 = vld [vmem:[#allocation8 + $0xb8] sm:$0xff]  ;;  %v3604_v24 = vld [vmem:[#allocation11 + $0x60] sm:$0xff] }
 0x2a9   :  { %1617 = vmatpush.bf16.msrb.mxu1 %v3591_v27 }
 0x2ab   :  { %v956_v32 = vpop.f32.mrf.mxu2 }
 0x2ac   :  { %v957_v34 = vadd.f32 %v956_v32, %v943_v29  ;;  %v930_v35 = vpop.f32.mrf.mxu0  ;;  %1604 = vmatpush.bf16.msrb.mxu0 %v3582_v26  ;;  %v3581_v29 = vld [vmem:[#allocation8 + $0x68] sm:$0xff]  ;;  %v3580_v32 = vld [vmem:[#allocation8 + $0x60] sm:$0xff] }
 0x2ad   :  { %v931_v37 = vadd.f32 %v3708_v19, %v930_v35  ;;  %1618 = vmatpush.bf16.msrb.mxu1 %v3590_v30  ;;  %v3572_v35 = vld [vmem:[#allocation8 + $0x20] sm:$0xff] }
 0x2ae   :  { %v961_v36 = vadd.f32 %v957_v34, %v4303_v51  ;;  %v3710_v34 = vld [vmem:[%s4471_s11] ss:$0 sm:$0xff]  ;;  %1592 = vmatpush.bf16.msra.mxu3 %v3572_v35  ;;  %v3620_v26 = vld [vmem:[#allocation11 + $0xe0] sm:$0xff]  ;;  %s2661_s11 = sshll.u32 %s4078_s24, 4  ;;  %s2662_s11 = int_to_ptr.vmem [resolvable:$true] %s2661_s11 }
 0x2af   :  { %v945_v44 = vadd.f32 %v944_v42, %v931_v37  ;;  %v3588_v37 = vld [vmem:[#allocation8 + $0xa0] sm:$0xff]  ;;  %v3587_v42 = vld [vmem:[#allocation8 + $0x98] sm:$0xff] }
 0x2b0   :  { %v1046_v41 = vmul.f32 %v961_v36, %v961_v36  ;;  %1605 = vmatpush.bf16.msrb.mxu0 %v3581_v29  ;;  %v3603_v29 = vld [vmem:[#allocation11 + $0x58] sm:$0xff] }
 0x2b1   :  { %1619 = vmatpush.bf16.msrb.mxu1 %v3589_v33 }
 0x2b2   :  { %v1048_v43 = vmul.f32 %v1046_v41, %v961_v36  ;;  %v3578_v41 = vld [vmem:[#allocation8 + $0x50] sm:$0xff]  ;;  %1593 = vmatpush.bf16.msra.mxu3 %v3571_v40 }
 0x2b3   :  { %v958_v45 = vpop.f32.mrf.mxu2 }
 0x2b4   :  { %v1050_v46 = vmul.f32 0.044715, %v1048_v43  ;;  %v959_v47 = vadd.f32 %v958_v45, %v945_v44  ;;  %1606 = vmatpush.bf16.msrb.mxu0 %v3580_v32  ;;  %v3570_v45 = vld [vmem:[#allocation8 + $0x10] sm:$0xff]  ;;  %v3619_v32 = vld [vmem:[#allocation11 + $0xd8] sm:$0xff] }
 0x2b5   :  { %1620 = vmatpush.bf16.msrb.mxu1 %v3588_v37  ;;  %v3602_v37 = vld [vmem:[#allocation11 + $0x50] sm:$0xff] }
 0x2b6   :  { %v1052_v51 = vadd.f32 %v1050_v46, %v961_v36  ;;  %v962_v50 = vadd.f32 %v959_v47, %v4309_v62  ;;  %v3577_v46 = vld [vmem:[#allocation8 + $0x48] sm:$0xff]  ;;  %v3586_v47 = vld [vmem:[#allocation8 + $0x90] sm:$0xff]  ;;  %1594 = vmatpush.bf16.msra.mxu3 %v3570_v45 }
 0x2b8   :  { %v1054_v52 = vmul.f32 0.7978846, %v1052_v51  ;;  %v1047_v53 = vmul.f32 %v962_v50, %v962_v50  ;;  %v963_v54 = vpack.c.bf16 %v962_v50, %v961_v36 }
 0x2b9   :  { %1621 = vmatpush.bf16.msrb.mxu1 %v3587_v42 }
 0x2ba   :  { %3725 = vtanh.f32 %v1054_v52  ;;  %v1049_v55 = vmul.f32 %v1047_v53, %v962_v50  ;;  %1040 = vmatmul.bf16.vlgmr.msrb.gmra.mxu3 %v963_v54  ;;  %v3576_v52 = vld [vmem:[#allocation8 + $0x40] sm:$0xff]  ;;  %v3585_v53 = vld [vmem:[#allocation8 + $0x88] sm:$0xff] }
 0x2bc   :  { %v1051_v56 = vmul.f32 0.044715, %v1049_v55 }
 0x2bd   :  { %1622 = vmatpush.bf16.msrb.mxu1 %v3586_v47 }
 0x2be   :  { %v1053_v57 = vadd.f32 %v1051_v56, %v962_v50 }
 0x2c0   :  { %v3726_v58 = vpop.eup %3725  ;;  %v1055_v59 = vmul.f32 0.7978846, %v1053_v57 }
 0x2c1   :  { %v1058_v60 = vadd.f32 1.0, %v3726_v58  ;;  %1623 = vmatpush.bf16.msrb.mxu1 %v3585_v53 }
 0x2c2   :  { %3727 = vtanh.f32 %v1055_v59 }
 0x2c3   :  { %v1060_v61 = vmul.f32 0.5, %v1058_v60  ;;  %v3568_v60 = vld [vmem:[#allocation8] sm:$0xff] }
 0x2c5   :  { %v1062_v1 = vmul.f32 %v1060_v61, %v961_v36  ;;  %v3579_v36 = vld [vmem:[#allocation8 + $0x58] sm:$0xff]  ;;  %v3584_v61 = vld [vmem:[#allocation8 + $0x80] sm:$0xff] }
 0x2c6   :  { %1607 = vmatpush.bf16.msrb.mxu0 %v3579_v36  ;;  %1624 = vmatpush.bf16.msrb.mxu1 %v3584_v61  ;;  %v3594_v36 = vld [vmem:[#allocation11 + $0x10] sm:$0xff]  ;;  %v3601_v61 = vld [vmem:[#allocation11 + $0x48] sm:$0xff] }
 0x2c7   :  { %v1085_v3 = vpack.c.bf16 %v1062_v1, %v1062_v1  ;;  %v1064_v4 = vrot.slane %v1062_v1, 4 }
 0x2c8   :  { %v3728_v63 = vpop.eup %3727 }
 0x2c9   :  { %v1059_v0 = vadd.f32 1.0, %v3728_v63  ;;  %v1095_v7 = vunpack.c.l.b16 %v1085_v3  ;;  %v3599_v3 = vld [vmem:[#allocation11 + $0x38] sm:$0xff] }
 0x2ca   :  { %1608 = vmatpush.bf16.msrb.mxu0 %v3578_v41  ;;  %1839 = vmatpush.bf16.msrb.mxu2 %v3599_v3  ;;  %v3639_v3 = vld [vmem:[#allocation11 + $0x178] sm:$0xff] }
 0x2cb   :  { %v1061_v2 = vmul.f32 0.5, %v1059_v0 }
 0x2cd   :  { %v1063_v62 = vmul.f32 %v1061_v2, %v962_v50  ;;  %v3569_v50 = vld [vmem:[#allocation8 + $0x8] sm:$0xff] }
 0x2ce   :  { %1609 = vmatpush.bf16.msrb.mxu0 %v3577_v46  ;;  %1595 = vmatpush.bf16.msra.mxu3 %v3569_v50 }
 0x2cf   :  { %v1065_v5 = vrot.slane %v1063_v62, 4  ;;  %v1086_v6 = vpack.c.bf16 %v1063_v62, %v1063_v62 }
 0x2d1   :  { %v1096_v8 = vunpack.c.l.b16 %v1086_v6  ;;  %v1067_v9 = vsel %vm1066_vm1, %v1064_v4, %v1065_v5  ;;  %v1068_v10 = vsel %vm1066_vm1, %v1065_v5, %v1064_v4  ;;  %v3607_v4 = vld [vmem:[#allocation11 + $0x78] sm:$0xff] }
 0x2d2   :  { %v1073_v12 = vsel %vm243_vm2, %v1068_v10, 0.0  ;;  %v1076_v13 = vpack.c.bf16 %v1067_v9, %v1067_v9  ;;  %v1082_v14 = vsel %vm246_vm0, %v1068_v10, 0.0  ;;  %1610 = vmatpush.bf16.msrb.mxu0 %v3576_v52  ;;  %1596 = vmatpush.bf16.msra.mxu3 %v3568_v60  ;;  %v3615_v5 = vld [vmem:[#allocation11 + $0xb8] sm:$0xff]  ;;  %v3606_v9 = vld [vmem:[#allocation11 + $0x70] sm:$0xff]  ;;  %v3593_v60 = vld [vmem:[#allocation11 + $0x8] sm:$0xff] }
 0x2d3   :  { %v1097_v16 = vpack.c.b16 %v1096_v8, %v1095_v7  ;;  %v1075_v17 = vpack.c.bf16 %v1073_v12, %v1073_v12  ;;  %v1084_v18 = vpack.c.bf16 %v1082_v14, %v1082_v14  ;;  %v3623_v7 = vld [vmem:[#allocation11 + $0xf8] sm:$0xff]  ;;  %v3598_v8 = vld [vmem:[#allocation11 + $0x30] sm:$0xff] }
 0x2d4   :  { %v1090_v19 = vunpack.c.l.b16 %v1076_v13  ;;  %v3614_v12 = vld [vmem:[#allocation11 + $0xb0] sm:$0xff]  ;;  %1840 = vmatpush.bf16.msrb.mxu2 %v3598_v8 }
 0x2d5   :  { %1323 = vmatmul.bf16.vlgmr.msra.gmra.mxu1 %v1097_v16  ;;  %v1089_v20 = vunpack.c.l.b16 %v1075_v17  ;;  %v1102_v21 = vunpack.c.l.b16 %v1084_v18  ;;  %v3622_v13 = vld [vmem:[#allocation11 + $0xf0] sm:$0xff]  ;;  %v3597_v16 = vld [vmem:[#allocation11 + $0x28] sm:$0xff] }
 0x2d6   :  { %1900 = vmatpush.bf16.msrb.mxu3 %v3607_v4  ;;  %2022 = vmatpush.bf16.msra.mxu1 %v3623_v7  ;;  %v3605_v17 = vld [vmem:[#allocation11 + $0x68] sm:$0xff]  ;;  %v3647_v4 = vld [vmem:[#allocation11 + $0x1b8] sm:$0xff]  ;;  %v3638_v7 = vld [vmem:[#allocation11 + $0x170] sm:$0xff] }
 0x2d7   :  { %v1091_v22 = vpack.c.b16 %v1090_v19, %v1089_v20  ;;  %v1103_v23 = vpack.c.b16 %v1102_v21, %v1090_v19  ;;  %v3613_v20 = vld [vmem:[#allocation11 + $0xa8] sm:$0xff]  ;;  %v3646_v8 = vld [vmem:[#allocation11 + $0x1b0] sm:$0xff] }
 0x2d8   :  { %v3621_v21 = vld [vmem:[#allocation11 + $0xe8] sm:$0xff]  ;;  %1841 = vmatpush.bf16.msrb.mxu2 %v3597_v16  ;;  %v3628_v16 = vld [vmem:[#allocation11 + $0x120] sm:$0xff] }
 0x2d9   :  { %1309 = vmatmul.bf16.vlgmr.msra.gmra.mxu0 %v1091_v22  ;;  %1337 = vmatmul.bf16.vlgmr.msra.gmra.mxu2 %v1103_v23  ;;  %v3596_v23 = vld [vmem:[#allocation11 + $0x20] sm:$0xff] }
 0x2da   :  { %1961 = vmatpush.bf16.msra.mxu0 %v3615_v5  ;;  %1901 = vmatpush.bf16.msrb.mxu3 %v3606_v9  ;;  %v3655_v5 = vld [vmem:[#allocation11 + $0x1f8] sm:$0xff]  ;;  %v3654_v9 = vld [vmem:[#allocation11 + $0x1f0] sm:$0xff] }
 0x2db   :  { %2023 = vmatpush.bf16.msra.mxu1 %v3622_v13  ;;  %v3645_v13 = vld [vmem:[#allocation11 + $0x1a8] sm:$0xff] }
 0x2dc   :  { %1842 = vmatpush.bf16.msrb.mxu2 %v3596_v23  ;;  %v3643_v23 = vld [vmem:[#allocation11 + $0x198] sm:$0xff] }
 0x2de   :  { %1962 = vmatpush.bf16.msra.mxu0 %v3614_v12  ;;  %1902 = vmatpush.bf16.msrb.mxu3 %v3605_v17  ;;  %v3637_v12 = vld [vmem:[#allocation11 + $0x168] sm:$0xff]  ;;  %v3636_v17 = vld [vmem:[#allocation11 + $0x160] sm:$0xff] }
 0x2df   :  { %2024 = vmatpush.bf16.msra.mxu1 %v3621_v21 }
 0x2e0   :  { %1843 = vmatpush.bf16.msrb.mxu2 %v3595_v28  ;;  %v3650_v28 = vld [vmem:[#allocation11 + $0x1d0] sm:$0xff] }
 0x2e2   :  { %1963 = vmatpush.bf16.msra.mxu0 %v3613_v20  ;;  %1903 = vmatpush.bf16.msrb.mxu3 %v3604_v24  ;;  %v3627_v20 = vld [vmem:[#allocation11 + $0x118] sm:$0xff] }
 0x2e3   :  { %2025 = vmatpush.bf16.msra.mxu1 %v3620_v26  ;;  %v3651_v24 = vld [vmem:[#allocation11 + $0x1d8] sm:$0xff]  ;;  %v3634_v26 = vld [vmem:[#allocation11 + $0x150] sm:$0xff] }
 0x2e4   :  { %1844 = vmatpush.bf16.msrb.mxu2 %v3594_v36  ;;  %v3640_v36 = vld [vmem:[#allocation11 + $0x180] sm:$0xff] }
 0x2e6   :  { %1964 = vmatpush.bf16.msra.mxu0 %v3612_v25  ;;  %1904 = vmatpush.bf16.msrb.mxu3 %v3603_v29  ;;  %v3626_v25 = vld [vmem:[#allocation11 + $0x110] sm:$0xff]  ;;  %v3625_v29 = vld [vmem:[#allocation11 + $0x108] sm:$0xff] }
 0x2e7   :  { %2026 = vmatpush.bf16.msra.mxu1 %v3619_v32  ;;  %v3649_v32 = vld [vmem:[#allocation11 + $0x1c8] sm:$0xff] }
 0x2e8   :  { %1845 = vmatpush.bf16.msrb.mxu2 %v3593_v60 }
 0x2ea   :  { %1965 = vmatpush.bf16.msra.mxu0 %v3611_v31  ;;  %1905 = vmatpush.bf16.msrb.mxu3 %v3602_v37  ;;  %v3641_v31 = vld [vmem:[#allocation11 + $0x188] sm:$0xff]  ;;  %v3648_v37 = vld [vmem:[#allocation11 + $0x1c0] sm:$0xff] }
 0x2ec   :  { %1846 = vmatpush.bf16.msrb.mxu2 %v3592_v15 }
 0x2ee   :  { %1906 = vmatpush.bf16.msrb.mxu3 %v3601_v61 }
 0x33d   :  { %v1041_v21 = vpop.f32.mrf.mxu3 }
 0x352   :  { %v1324_v43 = vpop.f32.mrf.mxu1 }
 0x356   :  { %v1310_v38 = vpop.f32.mrf.mxu0 }
 0x357   :  { %v1311_v39 = vadd.f32 %v3710_v34, %v1310_v38  ;;  %v3610_v38 = vld [vmem:[#allocation11 + $0x90] sm:$0xff] }
 0x358   :  { %1966 = vmatpush.bf16.msra.mxu0 %v3610_v38  ;;  %v3711_v38 = vld [vmem:[%s4435_s10] ss:$0 sm:$0xff] }
 0x359   :  { %v1325_v44 = vadd.f32 %v1324_v43, %v1311_v39  ;;  %v3618_v39 = vld [vmem:[#allocation11 + $0xd0] sm:$0xff] }
 0x35a   :  { %v1326_v57 = vpop.f32.mrf.mxu1  ;;  %2027 = vmatpush.bf16.msra.mxu1 %v3618_v39 }
 0x35c   :  { %v1338_v48 = vpop.f32.mrf.mxu2 }
 0x35d   :  { %v4372_v49 = vadd.f32 %v1338_v48, %v1325_v44 }
 0x35e   :  { %v1312_v51 = vpop.f32.mrf.mxu0  ;;  %2028 = vmatpush.bf16.msra.mxu1 %v3617_v11 }
 0x35f   :  { %v1343_v54 = vmul.f32 %v4372_v49, %v4372_v49  ;;  %v1313_v55 = vadd.f32 %v3710_v34, %v1312_v51 }
 0x361   :  { %v1345_v56 = vmul.f32 %v1343_v54, %v4372_v49  ;;  %v1327_v59 = vadd.f32 %v1326_v57, %v1313_v55 }
 0x363   :  { %v1347_v58 = vmul.f32 0.044715, %v1345_v56 }
 0x364   :  { %v1340_v63 = vpop.f32.mrf.mxu2 }
 0x365   :  { %v1349_v0 = vadd.f32 %v1347_v58, %v4372_v49  ;;  %v1341_v1 = vadd.f32 %v1340_v63, %v1327_v59  ;;  %v3609_v63 = vld [vmem:[#allocation11 + $0x88] sm:$0xff] }
 0x366   :  { %1967 = vmatpush.bf16.msra.mxu0 %v3609_v63 }
 0x367   :  { %v1351_v2 = vmul.f32 0.7978846, %v1349_v0  ;;  %v1344_v62 = vmul.f32 %v1341_v1, %v1341_v1  ;;  %v3631_v0 = vld [vmem:[#allocation11 + $0x138] sm:$0xff] }
 0x368   :  { %2083 = vmatpush.bf16.msra.mxu2 %v3631_v0 }
 0x369   :  { %3729 = vtanh.f32 %v1351_v2  ;;  %v1346_v6 = vmul.f32 %v1344_v62, %v1341_v1  ;;  %v3608_v2 = vld [vmem:[#allocation11 + $0x80] sm:$0xff] }
 0x36a   :  { %v3616_v62 = vld [vmem:[#allocation11 + $0xc0] sm:$0xff]  ;;  %1968 = vmatpush.bf16.msra.mxu0 %v3608_v2 }
 0x36b   :  { %v1348_v10 = vmul.f32 0.044715, %v1346_v6  ;;  %2029 = vmatpush.bf16.msra.mxu1 %v3616_v62  ;;  %v3630_v6 = vld [vmem:[#allocation11 + $0x130] sm:$0xff] }
 0x36c   :  { %2084 = vmatpush.bf16.msra.mxu2 %v3630_v6  ;;  %v3661_v6 = vld [vmem:[#allocation13 + $0x28] sm:$0xff] }
 0x36d   :  { %v1350_v14 = vadd.f32 %v1348_v10, %v1341_v1  ;;  %v3629_v10 = vld [vmem:[#allocation11 + $0x128] sm:$0xff] }
 0x36f   :  { %v3730_v18 = vpop.eup %3729  ;;  %v1352_v19 = vmul.f32 0.7978846, %v1350_v14  ;;  %v3653_v14 = vld [vmem:[#allocation11 + $0x1e8] sm:$0xff] }
 0x370   :  { %v1355_v22 = vadd.f32 1.0, %v3730_v18  ;;  %2085 = vmatpush.bf16.msra.mxu2 %v3629_v10  ;;  %v3644_v18 = vld [vmem:[#allocation11 + $0x1a0] sm:$0xff]  ;;  %v3657_v10 = vld [vmem:[#allocation13 + $0x8] sm:$0xff] }
 0x371   :  { %3731 = vtanh.f32 %v1352_v19  ;;  %v3652_v19 = vld [vmem:[#allocation11 + $0x1e0] sm:$0xff] }
 0x372   :  { %v1357_v27 = vmul.f32 0.5, %v1355_v22  ;;  %v3635_v22 = vld [vmem:[#allocation11 + $0x158] sm:$0xff] }
 0x374   :  { %v1359_v33 = vmul.f32 %v1357_v27, %v4372_v49  ;;  %2086 = vmatpush.bf16.msra.mxu2 %v3628_v16  ;;  %v3642_v27 = vld [vmem:[#allocation11 + $0x190] sm:$0xff] }
 0x376   :  { %v1373_v41 = vpack.c.bf16 %v1359_v33, %v1359_v33  ;;  %v1361_v42 = vrot.slane %v1359_v33, 4  ;;  %v3624_v33 = vld [vmem:[#allocation11 + $0x100] sm:$0xff] }
 0x377   :  { %v3732_v30 = vpop.eup %3731 }
 0x378   :  { %v1356_v34 = vadd.f32 1.0, %v3732_v30  ;;  %v1383_v45 = vunpack.c.l.b16 %v1373_v41  ;;  %2087 = vmatpush.bf16.msra.mxu2 %v3627_v20  ;;  %v3633_v30 = vld [vmem:[#allocation11 + $0x148] sm:$0xff]  ;;  %v3709_v41 = vld [vmem:[%s4437_s12] ss:$0 sm:$0xff] }
 0x37a   :  { %v1358_v35 = vmul.f32 0.5, %v1356_v34  ;;  %v1043_v34 = vpop.f32.mrf.mxu3 }
 0x37b   :  { %v1044_v60 = vadd.f32 %v3709_v41, %v1043_v34 }
 0x37c   :  { %v1360_v40 = vmul.f32 %v1358_v35, %v1341_v1  ;;  %v3600_v1 = vld [vmem:[#allocation11 + $0x40] sm:$0xff]  ;;  %2088 = vmatpush.bf16.msra.mxu2 %v3626_v25 }
 0x37d   :  { %1907 = vmatpush.bf16.msrb.mxu3 %v3600_v1  ;;  %v3632_v35 = vld [vmem:[#allocation11 + $0x140] sm:$0xff] }
 0x37e   :  { %v1362_v43 = vrot.slane %v1360_v40, 4  ;;  %v1374_v44 = vpack.c.bf16 %v1360_v40, %v1360_v40 }
 0x380   :  { %v1384_v46 = vunpack.c.l.b16 %v1374_v44  ;;  %v1363_v47 = vsel %vm1066_vm1, %v1361_v42, %v1362_v43  ;;  %v1364_v48 = vsel %vm1066_vm1, %v1362_v43, %v1361_v42  ;;  %2089 = vmatpush.bf16.msra.mxu2 %v3625_v29 }
 0x381   :  { %v1365_v49 = vsel %vm243_vm2, %v1364_v48, 0.0  ;;  %v1368_v51 = vpack.c.bf16 %v1363_v47, %v1363_v47  ;;  %v1370_v50 = vsel %vm246_vm0, %v1364_v48, 0.0 }
 0x382   :  { %v1385_v52 = vpack.c.b16 %v1384_v46, %v1383_v45  ;;  %v1367_v53 = vpack.c.bf16 %v1365_v49, %v1365_v49  ;;  %v1372_v54 = vpack.c.bf16 %v1370_v50, %v1370_v50  ;;  %v1042_v45 = vadd.f32 %v3709_v41, %v1041_v21 }
 0x383   :  { %v1378_v55 = vunpack.c.l.b16 %v1368_v51 }
 0x384   :  { %1611 = vmatmul.bf16.vlgmr.msrb.gmra.mxu0 %v1385_v52  ;;  %v1377_v56 = vunpack.c.l.b16 %v1367_v53  ;;  %v1390_v57 = vunpack.c.l.b16 %v1372_v54  ;;  %2090 = vmatpush.bf16.msra.mxu2 %v3624_v33  ;;  %v3667_v33 = vld [vmem:[#allocation14 + $0x18] sm:$0xff] }
 0x385   :  { %2205 = vmatpush.bf16.msrb.mxu0 %v3647_v4  ;;  %v3663_v4 = vld [vmem:[#allocation13 + $0x38] sm:$0xff] }
 0x386   :  { %v1379_v58 = vpack.c.b16 %v1378_v55, %v1377_v56  ;;  %v1391_v59 = vpack.c.b16 %v1390_v57, %v1378_v55 }
 0x388   :  { %1597 = vmatmul.bf16.vlgmr.msra.gmra.mxu3 %v1379_v58  ;;  %1625 = vmatmul.bf16.vlgmr.msrb.gmra.mxu1 %v1391_v59 }
 0x389   :  { %2144 = vmatpush.bf16.msra.mxu3 %v3639_v3  ;;  %2266 = vmatpush.bf16.msrb.mxu1 %v3655_v5  ;;  %v3662_v5 = vld [vmem:[#allocation13 + $0x30] sm:$0xff] }
 0x38a   :  { %2206 = vmatpush.bf16.msrb.mxu0 %v3646_v8  ;;  %v3659_v8 = vld [vmem:[#allocation13 + $0x18] sm:$0xff] }
 0x38d   :  { %2145 = vmatpush.bf16.msra.mxu3 %v3638_v7  ;;  %2267 = vmatpush.bf16.msrb.mxu1 %v3654_v9  ;;  %v3660_v7 = vld [vmem:[#allocation13 + $0x20] sm:$0xff]  ;;  %v3658_v9 = vld [vmem:[#allocation13 + $0x10] sm:$0xff] }
 0x38e   :  { %2207 = vmatpush.bf16.msrb.mxu0 %v3645_v13 }
 0x391   :  { %2146 = vmatpush.bf16.msra.mxu3 %v3637_v12  ;;  %2268 = vmatpush.bf16.msrb.mxu1 %v3653_v14  ;;  %v3656_v12 = vld [vmem:[#allocation13] sm:$0xff] }
 0x392   :  { %2208 = vmatpush.bf16.msrb.mxu0 %v3644_v18 }
 0x395   :  { %2147 = vmatpush.bf16.msra.mxu3 %v3636_v17  ;;  %2269 = vmatpush.bf16.msrb.mxu1 %v3652_v19  ;;  %v3671_v17 = vld [vmem:[#allocation14 + $0x38] sm:$0xff]  ;;  %v3670_v19 = vld [vmem:[#allocation14 + $0x30] sm:$0xff] }
 0x396   :  { %2209 = vmatpush.bf16.msrb.mxu0 %v3643_v23  ;;  %v3669_v23 = vld [vmem:[#allocation14 + $0x28] sm:$0xff] }
 0x399   :  { %2148 = vmatpush.bf16.msra.mxu3 %v3635_v22  ;;  %2270 = vmatpush.bf16.msrb.mxu1 %v3651_v24 }
 0x39a   :  { %2210 = vmatpush.bf16.msrb.mxu0 %v3642_v27 }
 0x39d   :  { %2149 = vmatpush.bf16.msra.mxu3 %v3634_v26  ;;  %2271 = vmatpush.bf16.msrb.mxu1 %v3650_v28  ;;  %v3668_v28 = vld [vmem:[#allocation14 + $0x20] sm:$0xff] }
 0x39e   :  { %2211 = vmatpush.bf16.msrb.mxu0 %v3641_v31 }
 0x3a1   :  { %2150 = vmatpush.bf16.msra.mxu3 %v3633_v30  ;;  %2272 = vmatpush.bf16.msrb.mxu1 %v3649_v32 }
 0x3a2   :  { %2212 = vmatpush.bf16.msrb.mxu0 %v3640_v36 }
 0x3a5   :  { %2151 = vmatpush.bf16.msra.mxu3 %v3632_v35  ;;  %2273 = vmatpush.bf16.msrb.mxu1 %v3648_v37 }
 0x401   :  { %v1612_v39 = vpop.f32.mrf.mxu0 }
 0x405   :  { %v1626_v43 = vpop.f32.mrf.mxu1 }
 0x409   :  { %v1614_v53 = vpop.f32.mrf.mxu0 }
 0x40b   :  { %v1598_v40 = vpop.f32.mrf.mxu3 }
 0x40c   :  { %v1599_v42 = vadd.f32 %v3711_v38, %v1598_v40  ;;  %v3666_v40 = vld [vmem:[#allocation14 + $0x10] sm:$0xff] }
 0x40d   :  { %v1628_v58 = vpop.f32.mrf.mxu1 }
 0x40e   :  { %v1613_v44 = vadd.f32 %v1612_v39, %v1599_v42 }
 0x410   :  { %v1627_v46 = vadd.f32 %v1626_v43, %v1613_v44 }
 0x412   :  { %v1631_v47 = vadd.f32 %v1627_v46, %v1042_v45 }
 0x413   :  { %v1600_v48 = vpop.f32.mrf.mxu3 }
 0x414   :  { %v1601_v49 = vadd.f32 %v3711_v38, %v1600_v48  ;;  %v1647_v51 = vpack.c.bf16 %v1631_v47, %v1631_v47  ;;  %v1635_v50 = vrot.slane %v1631_v47, 2  ;;  %v1636_v52 = vrot.slane %v1631_v47, 4 }
 0x415   :  { %v1637_v54 = vrot.slane %v1631_v47, 6  ;;  %v3712_v47 = vld [vmem:[%s4439_s14] ss:$0 sm:$0xff] }
 0x416   :  { %v1615_v55 = vadd.f32 %v1614_v53, %v1601_v49  ;;  %1655 = vst [vmem:[#allocation19] sm:$0x1] %v1647_v51  ;;  %1847 = vmatmul.bf16.vlgmr.msrb.gmra.mxu2 %v1647_v51  ;;  %v1648_v56 = vpack.c.bf16 %v1635_v50, %v1635_v50  ;;  %v1649_v57 = vpack.c.bf16 %v1636_v52, %v1636_v52 }
 0x417   :  { %v1650_v59 = vpack.c.bf16 %v1637_v54, %v1637_v54  ;;  %2369 = vmatpush.bf16.msrb.mxu2 %v3663_v4  ;;  %v3672_v4 = vld [vmem:[#allocation16] sm:$0xff] }
 0x418   :  { %v1629_v61 = vadd.f32 %v1628_v58, %v1615_v55  ;;  %1656 = vst [vmem:[#allocation19 + $0x1] sm:$0x1] %v1648_v56  ;;  %1908 = vmatmul.bf16.vlgmr.msrb.gmra.mxu3 %v1648_v56  ;;  %1969 = vmatmul.bf16.vlgmr.msra.gmra.mxu0 %v1649_v57  ;;  %v3665_v55 = vld [vmem:[#allocation14 + $0x8] sm:$0xff]  ;;  %v3664_v56 = vld [vmem:[#allocation14] sm:$0xff]  ;;  %v3678_v58 = vld [vmem:[#allocation16 + $0x30] sm:$0xff] }
 0x419   :  { %1657 = vst [vmem:[#allocation19 + $0x2] sm:$0x1] %v1649_v57  ;;  %2030 = vmatmul.bf16.vlgmr.msra.gmra.mxu1 %v1650_v59  ;;  %2452 = vmatpush.bf16.msrb.mxu3 %v3671_v17  ;;  %v3679_v57 = vld [vmem:[#allocation16 + $0x38] sm:$0xff] }
 0x41a   :  { %v1632_v63 = vadd.f32 %v1629_v61, %v1044_v60  ;;  %1658 = vst [vmem:[#allocation19 + $0x3] sm:$0x1] %v1650_v59  ;;  %2534 = vmatpush.bf16.msra.mxu0 %v3679_v57  ;;  %v3677_v59 = vld [vmem:[#allocation16 + $0x28] sm:$0xff]  ;;  %v3676_v60 = vld [vmem:[#allocation16 + $0x20] sm:$0xff]  ;;  %v3675_v61 = vld [vmem:[#allocation16 + $0x18] sm:$0xff] }
 0x41b   :  { %2370 = vmatpush.bf16.msrb.mxu2 %v3662_v5  ;;  %v3687_v5 = vld [vmem:[#allocation17 + $0x38] sm:$0xff] }
 0x41c   :  { %v1651_v11 = vpack.c.bf16 %v1632_v63, %v1632_v63  ;;  %v1638_v15 = vrot.slane %v1632_v63, 2  ;;  %v1639_v0 = vrot.slane %v1632_v63, 4  ;;  %v1640_v1 = vrot.slane %v1632_v63, 6  ;;  %v3674_v63 = vld [vmem:[#allocation16 + $0x10] sm:$0xff]  ;;  %2617 = vmatpush.bf16.msra.mxu1 %v3687_v5 }
 0x41d   :  { %2453 = vmatpush.bf16.msrb.mxu3 %v3670_v19  ;;  %v3680_v19 = vld [vmem:[#allocation17] sm:$0xff] }
 0x41e   :  { %1659 = vst [vmem:[#allocation19 + $0x4] sm:$0x1] %v1651_v11  ;;  %v1652_v2 = vpack.c.bf16 %v1638_v15, %v1638_v15  ;;  %v1653_v62 = vpack.c.bf16 %v1639_v0, %v1639_v0  ;;  %v1654_v3 = vpack.c.bf16 %v1640_v1, %v1640_v1  ;;  %2535 = vmatpush.bf16.msra.mxu0 %v3678_v58  ;;  %v3673_v15 = vld [vmem:[#allocation16 + $0x8] sm:$0xff] }
 0x41f   :  { %2371 = vmatpush.bf16.msrb.mxu2 %v3661_v6  ;;  %v3686_v6 = vld [vmem:[#allocation17 + $0x30] sm:$0xff] }
 0x420   :  { %1660 = vst [vmem:[#allocation19 + $0x5] sm:$0x1] %v1652_v2  ;;  %2618 = vmatpush.bf16.msra.mxu1 %v3686_v6 }
 0x421   :  { %1661 = vst [vmem:[#allocation19 + $0x6] sm:$0x1] %v1653_v62  ;;  %2454 = vmatpush.bf16.msrb.mxu3 %v3669_v23 }
 0x422   :  { %1662 = vst [vmem:[#allocation19 + $0x7] sm:$0x1] %v1654_v3  ;;  %2536 = vmatpush.bf16.msra.mxu0 %v3677_v59 }
 0x423   :  { %2372 = vmatpush.bf16.msrb.mxu2 %v3660_v7  ;;  %v3685_v7 = vld [vmem:[#allocation17 + $0x28] sm:$0xff] }
 0x424   :  { %2619 = vmatpush.bf16.msra.mxu1 %v3685_v7 }
 0x425   :  { %2455 = vmatpush.bf16.msrb.mxu3 %v3668_v28 }
 0x426   :  { %2091 = vmatmul.bf16.vlgmr.msra.gmra.mxu2 %v1651_v11  ;;  %2537 = vmatpush.bf16.msra.mxu0 %v3676_v60  ;;  %v3713_v11 = vld [vmem:[%s4441_s16] ss:$0 sm:$0xff] }
 0x427   :  { %2373 = vmatpush.bf16.msrb.mxu2 %v3659_v8  ;;  %v3684_v8 = vld [vmem:[#allocation17 + $0x20] sm:$0xff] }
 0x428   :  { %2152 = vmatmul.bf16.vlgmr.msra.gmra.mxu3 %v1652_v2  ;;  %2213 = vmatmul.bf16.vlgmr.msrb.gmra.mxu0 %v1653_v62 }
 0x429   :  { %2274 = vmatmul.bf16.vlgmr.msrb.gmra.mxu1 %v1654_v3  ;;  %2456 = vmatpush.bf16.msrb.mxu3 %v3667_v33 }
 0x42a   :  { %2538 = vmatpush.bf16.msra.mxu0 %v3675_v61  ;;  %2620 = vmatpush.bf16.msra.mxu1 %v3684_v8 }
 0x42b   :  { %2374 = vmatpush.bf16.msrb.mxu2 %v3658_v9  ;;  %v3683_v9 = vld [vmem:[#allocation17 + $0x18] sm:$0xff] }
 0x42d   :  { %2457 = vmatpush.bf16.msrb.mxu3 %v3666_v40 }
 0x42e   :  { %2539 = vmatpush.bf16.msra.mxu0 %v3674_v63  ;;  %2621 = vmatpush.bf16.msra.mxu1 %v3683_v9 }
 0x42f   :  { %2375 = vmatpush.bf16.msrb.mxu2 %v3657_v10  ;;  %v3682_v10 = vld [vmem:[#allocation17 + $0x10] sm:$0xff] }
 0x431   :  { %2458 = vmatpush.bf16.msrb.mxu3 %v3665_v55 }
 0x432   :  { %2540 = vmatpush.bf16.msra.mxu0 %v3673_v15  ;;  %2622 = vmatpush.bf16.msra.mxu1 %v3682_v10 }
 0x433   :  { %2376 = vmatpush.bf16.msrb.mxu2 %v3656_v12  ;;  %v3714_v12 = vld [vmem:[%s4443_s18] ss:$0 sm:$0xff] }
 0x435   :  { %2459 = vmatpush.bf16.msrb.mxu3 %v3664_v56 }
 0x436   :  { %2541 = vmatpush.bf16.msra.mxu0 %v3672_v4 }
 0x495   :  { %v1970_v13 = vpop.f32.mrf.mxu0 }
 0x496   :  { %v2031_v14 = vpop.f32.mrf.mxu1  ;;  %v2282_v29 = vsel %vm349_vm9, %v1970_v13, 0.0 }
 0x497   :  { %v2284_v34 = vsel %vm349_vm9, %v2031_v14, 0.0 }
 0x499   :  { %v1848_v16 = vpop.f32.mrf.mxu2 }
 0x49a   :  { %v2279_v24 = vsel %vm349_vm9, %v1848_v16, 0.0 }
 0x49b   :  { %v1909_v18 = vpop.f32.mrf.mxu3 }
 0x49c   :  { %v2280_v21 = vsel %vm349_vm9, %v1909_v18, 0.0  ;;  %v3681_v18 = vld [vmem:[#allocation17 + $0x8] sm:$0xff] }
 0x49d   :  { %v1972_v20 = vpop.f32.mrf.mxu0  ;;  %v2281_v25 = vadd.f32 %v2280_v21, %v2279_v24  ;;  %2623 = vmatpush.bf16.msra.mxu1 %v3681_v18 }
 0x49e   :  { %v2033_v22 = vpop.f32.mrf.mxu1  ;;  %v3715_v20 = vld [vmem:[%s4445_s20] ss:$0 sm:$0xff]  ;;  %s2638_s20 = sshll.u32 %s4448_s23, 4  ;;  %s2639_s20 = int_to_ptr.hbm [resolvable:$true] %s2638_s20 }
 0x49f   :  { %v2283_v30 = vadd.f32 %v2282_v29, %v2281_v25  ;;  %2644 = dma.vmem_to_hbm [thread:$0]  %s2637_s13, 128, %s2639_s20, [#allocation4], %s4076_s28, %s4076_s28, %s4077_s17  }
 0x4a1   :  { %v1850_v26 = vpop.f32.mrf.mxu2  ;;  %v2285_v36 = vadd.f32 %v2284_v34, %v2283_v30  ;;  %2624 = vmatpush.bf16.msra.mxu1 %v3680_v19 }
 0x4a2   :  { %v3716_v26 = vld [vmem:[%s4447_s22] ss:$0 sm:$0xff] }
 0x4a3   :  { %v1911_v27 = vpop.f32.mrf.mxu3 }
 0x4a5   :  { %v2214_v31 = vpop.f32.mrf.mxu0 }
 0x4a6   :  { %v2275_v32 = vpop.f32.mrf.mxu1  ;;  %v2290_v44 = vsel %vm349_vm9, %v2214_v31, 0.0 }
 0x4a7   :  { %v2292_v48 = vsel %vm349_vm9, %v2275_v32, 0.0 }
 0x4a9   :  { %v2092_v35 = vpop.f32.mrf.mxu2 }
 0x4aa   :  { %v2286_v37 = vsel %vm349_vm9, %v2092_v35, 0.0 }
 0x4ab   :  { %v2287_v38 = vadd.f32 %v2286_v37, %v2285_v36  ;;  %v2153_v39 = vpop.f32.mrf.mxu3 }
 0x4ac   :  { %v2288_v41 = vsel %vm349_vm9, %v2153_v39, 0.0 }
 0x4ad   :  { %v2289_v42 = vadd.f32 %v2288_v41, %v2287_v38  ;;  %v2216_v43 = vpop.f32.mrf.mxu0 }
 0x4ae   :  { %v2277_v45 = vpop.f32.mrf.mxu1 }
 0x4af   :  { %v2291_v46 = vadd.f32 %v2290_v44, %v2289_v42 }
 0x4b1   :  { %v2293_v49 = vadd.f32 %v2292_v48, %v2291_v46  ;;  %v2094_v51 = vpop.f32.mrf.mxu2 }
 0x4b3   :  { %v2298_v50 = vadd.f32 %v3712_v47, %v2293_v49  ;;  %v2155_v52 = vpop.f32.mrf.mxu3 }
 0x4b5   :  { %v2299_v53 = vmax.f32 %v2298_v50, 0.0 }
 0x4b7   :  { %v2300_v54 = vpack.c.bf16 %v2299_v53, %v2299_v53 }
 0x4b9   :  { %2377 = vmatmul.bf16.vlgmr.msrb.gmra.mxu2 %v2300_v54 }
 0x53c   :  { %v2378_v0 = vpop.f32.mrf.mxu2 }
 0x53d   :  { %v2379_v1 = vadd.f32 %v3713_v11, %v2378_v0 }
 0x53f   :  { %v2382_v2 = vmax.f32 %v2379_v1, 0.0 }
 0x541   :  { %v2383_v62 = vpack.c.bf16 %v2382_v2, %v2382_v2 }
 0x543   :  { %2460 = vmatmul.bf16.vlgmr.msrb.gmra.mxu3 %v2383_v62 }
 0x544   :  { %v2380_v3 = vpop.f32.mrf.mxu2 }
 0x5c6   :  { %v2461_v13 = vpop.f32.mrf.mxu3 }
 0x5c7   :  { %v2462_v14 = vadd.f32 %v3714_v12, %v2461_v13 }
 0x5c9   :  { %v2465_v16 = vpack.c.bf16 %v2462_v14, %v2462_v14  ;;  %2630 = vst [vmem:[#allocation20] sm:$0x3] %v2462_v14 }
 0x5ca   :  { %2655 = dma.vmem_to_hbm [thread:$0]  %s2651_s9, 32, %s2653_s19, [#allocation21]  }
 0x5cb   :  { %2542 = vmatmul.bf16.vlgmr.msra.gmra.mxu0 %v2465_v16 }
 0x5ce   :  { %v2463_v17 = vpop.f32.mrf.mxu3 }
 0x648   :  { %v2543_v21 = vpop.f32.mrf.mxu0 }
 0x649   :  { %v2544_v22 = vadd.f32 %v3715_v20, %v2543_v21 }
 0x64b   :  { %v2547_v23 = vmax.f32 %v2544_v22, 0.0 }
 0x64d   :  { %v2548_v24 = vpack.c.bf16 %v2547_v23, %v2547_v23 }
 0x64f   :  { %2625 = vmatmul.bf16.vlgmr.msra.gmra.mxu1 %v2548_v24 }
 0x650   :  { %v2545_v25 = vpop.f32.mrf.mxu0 }
 0x6cc   :  { %v2626_v27 = vpop.f32.mrf.mxu1 }
 0x6cd   :  { %v2627_v28 = vadd.f32 %v3716_v26, %v2626_v27 }
 0x6cf   :  { %2631 = vst [vmem:[#allocation22] sm:$0x3] %v2627_v28 }
 0x6d0   :  { %2666 = dma.vmem_to_hbm [thread:$0]  %s2662_s11, 32, %s2664_s1, [#allocation21]  }
 0x6d4   :  { %v2628_v29 = vpop.f32.mrf.mxu1 }
 0x6d5   :  { %4057 = dma.done.wait [#allocation4], 128  }
 0x6d6   :  { %4058 = vsyncadd [#allocation4], 4294967168 }
 0x6d7   :  { %4059 = dma.done.wait [#allocation21], 64  }
 0x6d8   :  { %4060 = vsyncadd [#allocation21], 4294967232 }
 0x6d9   :  { %2679 = vsyncpa [#allocation3], 1 }
 0x6da   :  { %2680 = vsyncpa [#allocation6], 1 }
 0x6db   :  { %2681 = vsyncpa [#allocation9], 1 }
 0x6dc   :  { %2682 = vsyncpa [#allocation12], 1 }
 0x6dd   :  { %2683 = vsyncpa [#allocation15], 1 }
 0x6de   :  { %2684 = vsyncpa [#allocation18], 1 }
 0x6df   :  { %2685 = vsyncpa [#allocation4], 1 }
 0x6e0   :  { %2686 = vsyncpa [#allocation21], 1 }

</bundles_post_ra>
